<compile_context>
chip_gen: v7x
topology: tpu7x:2x2x1
jax: 0.10.0
libtpu: 0.0.40
codegen_flags: <defaults>
</compile_context>

<pallas_src>
import functools

import jax
import jax.numpy as jnp
import numpy as np
from jax.experimental import pallas as pl
from jax.experimental.pallas import tpu as pltpu


CONV_MAX_TB = 64    # images per conv grid step (~11 MB per-step VMEM at 64)
FC_MAX_TM = 1024    # classifier rows per grid step (~16 MB per-step VMEM)


# ----------------------------------------------------------------------------
# Pallas kernels
# ----------------------------------------------------------------------------
def _conv_pool_kernel(z_ref, w_ref, b_ref, o_ref, *, hp, wp, c_out):
    """Fused 3x3 conv (pad 1) + bias + ReLU + 2x2/stride-2 max-pool.

    Operates on the space-to-depth grid of the layer input, so the pooled
    output is produced directly by 9 shifted contiguous-window dots.

    z_ref: (TB, hp+2, wp+2, K) bf16  s2d activation: zero ring + extra zero
           rows/cols so the 8-aligned (hp, wp) compute grid stays in bounds.
    w_ref: (9, K, 4*c_out)     bf16  per-tap weights; the 4 pool-position
           filter variants concatenated along the output dim (resident).
    b_ref: (1, c_out)          f32   bias (resident).
    o_ref: (TB*hp*wp, c_out)   bf16  pooled activation, rows in (n, i, j) order.
    """
    tb = z_ref.shape[0]
    k = z_ref.shape[3]
    m = tb * hp * wp

    acc = None
    for di in range(3):
        for dj in range(3):
            patch = z_ref[:, di:di + hp, dj:dj + wp, :].reshape(m, k)
            part = jnp.dot(patch, w_ref[di * 3 + dj],
                           preferred_element_type=jnp.float32)
            acc = part if acc is None else acc + part

    # Max over the four pool-position filter blocks (lane blocks of c_out).
    z = jnp.maximum(
        jnp.maximum(acc[:, 0 * c_out:1 * c_out], acc[:, 1 * c_out:2 * c_out]),
        jnp.maximum(acc[:, 2 * c_out:3 * c_out], acc[:, 3 * c_out:4 * c_out]))
    # relu(max_i(conv_i) + b) == maxpool(relu(conv + b)): the bias is
    # per-channel (shared by the pool window) and ReLU is monotone.
    o_ref[...] = jnp.maximum(z + b_ref[...], 0.0).astype(o_ref.dtype)


def _classifier_kernel(x_ref, w1_ref, b1_ref, w2_ref, b2_ref, o_ref):
    """Fused fc1 + ReLU + fc2 (both weights resident in VMEM)."""
    h = jnp.dot(x_ref[...], w1_ref[...], preferred_element_type=jnp.float32)
    h = jnp.maximum(h + b1_ref[...], 0.0)
    z = jnp.dot(h.astype(w2_ref.dtype), w2_ref[...],
                preferred_element_type=jnp.float32)
    o_ref[...] = (z + b2_ref[...]).astype(o_ref.dtype)


def conv_pool(z, w, b, *, hp, wp, tb):
    """z: (NB, hp+2, wp+2, K) bf16, w: (9, K, 4C) bf16, b: (1, C) f32
       -> (NB*hp*wp, C) bf16 pooled activation."""
    nb, hz, wz, k = z.shape
    c4 = w.shape[2]
    c_out = c4 // 4
    kernel = functools.partial(_conv_pool_kernel, hp=hp, wp=wp, c_out=c_out)
    return pl.pallas_call(
        kernel,
        out_shape=jax.ShapeDtypeStruct((nb * hp * wp, c_out), jnp.bfloat16),
        grid=(nb // tb,),
        in_specs=[
            pl.BlockSpec((tb, hz, wz, k), lambda i: (i, 0, 0, 0)),
            pl.BlockSpec((9, k, c4), lambda i: (0, 0, 0)),      # resident
            pl.BlockSpec((1, c_out), lambda i: (0, 0)),         # resident
        ],
        out_specs=pl.BlockSpec((tb * hp * wp, c_out), lambda i: (i, 0)),
        compiler_params=pltpu.CompilerParams(dimension_semantics=("parallel",)),
    )(z, w, b)


def classifier(flat, w1, b1, w2, b2, *, tm):
    """flat: (M, K) bf16 -> (M, 128) f32, fc1 + ReLU + fc2 fused."""
    m, k = flat.shape
    n1 = w1.shape[1]
    n2 = w2.shape[1]
    return pl.pallas_call(
        _classifier_kernel,
        out_shape=jax.ShapeDtypeStruct((m, n2), jnp.float32),
        grid=(m // tm,),
        in_specs=[
            pl.BlockSpec((tm, k), lambda i: (i, 0)),
            pl.BlockSpec((k, n1), lambda i: (0, 0)),            # resident
            pl.BlockSpec((1, n1), lambda i: (0, 0)),
            pl.BlockSpec((n1, n2), lambda i: (0, 0)),           # resident
            pl.BlockSpec((1, n2), lambda i: (0, 0)),
        ],
        out_specs=pl.BlockSpec((tm, n2), lambda i: (i, 0)),
        compiler_params=pltpu.CompilerParams(dimension_semantics=("parallel",)),
    )(flat, w1, b1, w2, b2)


# ----------------------------------------------------------------------------
# Glue (layout prep only; all FLOPs live in the kernels above)
# ----------------------------------------------------------------------------
def _round_up(x, m):
    return (x + m - 1) // m * m


def _split(total, max_tile, align=1):
    """(padded_total, tile): near-equal aligned tiles, >= 2 tiles if total >= 2.

    >= 2 tiles keeps both v7x TensorCores busy at small batch; near-equal
    tiles cap padding waste at < `align` rows instead of most of a tile.
    """
    n_tiles = max(pl.cdiv(total, max_tile), 2 if total >= 2 else 1)
    tile = _round_up(pl.cdiv(total, n_tiles), align)
    return tile * n_tiles, tile


def _space_to_depth(x):
    """(N, H, W, C) -> (N, H//2, W//2, 4C); channel index = (u*2 + v)*C + c."""
    n, h, w, c = x.shape
    x = x.reshape(n, h // 2, 2, w // 2, 2, c)
    x = jnp.transpose(x, (0, 1, 3, 2, 4, 5))
    return x.reshape(n, h // 2, w // 2, 4 * c)


def _pooled_s2d_conv_weights(w_hwio, k_pad=None):
    """Scatter a (3,3,Cin,Cout) filter into the s2d formulation.

    Returns (9, 4*Cin[, padded], 4*Cout) bf16 where tap t = (di)*3 + dj indexes
    the s2d-grid offset (di-1, dj-1), the input dim is the s2d channel
    (u*2+v)*Cin + c, and the output dim concatenates the 4 pool-position
    filter variants f = py*2 + px.
    """
    w = np.asarray(w_hwio, np.float32)
    c_in, c_out = w.shape[2], w.shape[3]
    k = 4 * c_in
    wc = np.zeros((9, k, 4 * c_out), np.float32)
    for py in range(2):
        for px in range(2):
            f = py * 2 + px
            for di in range(3):
                for dj in range(3):
                    t = di * 3 + dj
                    for u in range(2):
                        for v in range(2):
                            dy = 2 * (di - 1) + u + 1 - py
                            dx = 2 * (dj - 1) + v + 1 - px
                            if 0 <= dy < 3 and 0 <= dx < 3:
                                kin = (u * 2 + v) * c_in
                                wc[t, kin:kin + c_in,
                                   f * c_out:(f + 1) * c_out] = w[dy, dx]
    if k_pad is not None and k_pad > k:
        wc = np.pad(wc, ((0, 0), (0, k_pad - k), (0, 0)))
    return jnp.asarray(wc, jnp.bfloat16)


def init_params(key):
    """PyTorch-default-style uniform(-1/sqrt(fan_in), ...) init, PyTorch layout."""
    ks = jax.random.split(key, 8)

    def unif(k, shape, fan_in):
        bound = 1.0 / np.sqrt(fan_in)
        return jax.random.uniform(k, shape, jnp.float32, -bound, bound)

    return {
        "w1": unif(ks[0], (3, 3, 1, 32), 9),                    # HWIO
        "b1": unif(ks[1], (32,), 9),
        "w2": unif(ks[2], (3, 3, 32, 64), 288),                 # HWIO
        "b2": unif(ks[3], (64,), 288),
        "w_fc1": unif(ks[4], (64 * 7 * 7, 128), 64 * 7 * 7),    # rows in CHW order
        "b_fc1": unif(ks[5], (128,), 64 * 7 * 7),
        "w_fc2": unif(ks[6], (128, 10), 128),
        "b_fc2": unif(ks[7], (10,), 128),
    }


def prepare_params(params):
    """One-time host-side re-layout of the PyTorch-convention weights."""
    # fc1 rows: CHW-flatten order -> HWC-flatten order (removes runtime transpose).
    w_fc1 = (params["w_fc1"].reshape(64, 7, 7, 128)
             .transpose(1, 2, 0, 3).reshape(64 * 7 * 7, 128))
    # fc2: pad 10 -> 128 output lanes for dense stores; sliced back to 10 outside.
    w_fc2 = jnp.pad(params["w_fc2"], ((0, 0), (0, 128 - 10)))
    b_fc2 = jnp.pad(params["b_fc2"], ((0, 128 - 10),))
    return {
        "w1": _pooled_s2d_conv_weights(params["w1"], k_pad=8),   # (9, 8, 128)
        "b1": params["b1"].reshape(1, 32).astype(jnp.float32),
        "w2": _pooled_s2d_conv_weights(params["w2"]),            # (9, 128, 256)
        "b2": params["b2"].reshape(1, 64).astype(jnp.float32),
        "w_fc1": w_fc1.astype(jnp.bfloat16),
        "b_fc1": params["b_fc1"].reshape(1, 128).astype(jnp.float32),
        "w_fc2": w_fc2.astype(jnp.bfloat16),
        "b_fc2": b_fc2.reshape(1, 128).astype(jnp.float32),
    }


@jax.jit
def fashion_simple_net(x_nchw, kp):
    """Forward pass matching FashionSimpleNet.forward (eval mode)."""
    n = x_nchw.shape[0]
    n_pad, tb = _split(n, CONV_MAX_TB)           # shared batch tiling, >=2 steps

    x = jnp.transpose(x_nchw, (0, 2, 3, 1))                       # NHWC (n,28,28,1)
    x = jnp.pad(x, ((0, n_pad - n), (0, 0), (0, 0), (0, 0)))

    # conv1 (1->32, 3x3, pad 1) + ReLU + 2x2 max-pool  (one fused kernel).
    # s2d grid 14x14, K = 4 (padded to 8); compute grid padded to 16x16 so
    # in-kernel reshapes keep 8-aligned sublane groups; pads: 1 zero ring +
    # 3 extra zero rows/cols for the 2 garbage grid rows.
    z1 = _space_to_depth(x)                                       # (n_pad,14,14,4)
    z1 = jnp.pad(z1, ((0, 0), (1, 3), (1, 3), (0, 4))).astype(jnp.bfloat16)
    y1 = conv_pool(z1, kp["w1"], kp["b1"], hp=16, wp=16, tb=tb)   # (n_pad*256, 32)
    y1 = y1.reshape(n_pad, 16, 16, 32)[:, :14, :14, :]            # valid 14x14

    # conv2 (32->64, 3x3, pad 1) + ReLU + 2x2 max-pool  (one fused kernel).
    # s2d grid 7x7, K = 128 (full lane width); compute grid padded to 8x8.
    z2 = _space_to_depth(y1)                                      # (n_pad,7,7,128)
    z2 = jnp.pad(z2, ((0, 0), (1, 2), (1, 2), (0, 0)))
    y2 = conv_pool(z2, kp["w2"], kp["b2"], hp=8, wp=8, tb=tb)     # (n_pad*64, 64)
    y2 = y2.reshape(n_pad, 8, 8, 64)[:n, :7, :7, :]               # (n,7,7,64)

    # Flatten is free: rows are already (h, w) with channels last (HWC) and
    # w_fc1 was permuted to that order once at prepare time.
    flat = y2.reshape(n, 7 * 7 * 64)

    # classifier: dropout (eval: identity) + fc1 + ReLU + fc2 fused,
    # lane-dense (padded-to-128) output.
    m_pad, tm = _split(n, FC_MAX_TM, align=8)
    flat = jnp.pad(flat, ((0, m_pad - n), (0, 0)))
    out = classifier(flat, kp["w_fc1"], kp["b_fc1"], kp["w_fc2"], kp["b_fc2"],
                     tm=tm)
    return out[:n, :10]                                           # (N, 10) f32


# ----------------------------------------------------------------------------
# Pure-JAX reference (PyTorch-convention weights) for a sanity check
# ----------------------------------------------------------------------------
def reference_forward(x_nchw, params):
    dn = ("NHWC", "HWIO", "NHWC")
    hi = jax.lax.Precision.HIGHEST
    x = jnp.transpose(x_nchw, (0, 2, 3, 1))
    y = jax.lax.conv_general_dilated(x, params["w1"], (1, 1), "SAME",
                                     dimension_numbers=dn, precision=hi)
    y = jax.nn.relu(y + params["b1"])
    y = jax.lax.reduce_window(y, -jnp.inf, jax.lax.max,
                              (1, 2, 2, 1), (1, 2, 2, 1), "VALID")
    y = jax.lax.conv_general_dilated(y, params["w2"], (1, 1), "SAME",
                                     dimension_numbers=dn, precision=hi)
    y = jax.nn.relu(y + params["b2"])
    y = jax.lax.reduce_window(y, -jnp.inf, jax.lax.max,
                              (1, 2, 2, 1), (1, 2, 2, 1), "VALID")
    flat = jnp.transpose(y, (0, 3, 1, 2)).reshape(x.shape[0], -1)
    h = jax.nn.relu(jnp.dot(flat, params["w_fc1"], precision=hi) + params["b_fc1"])
    return jnp.dot(h, params["w_fc2"], precision=hi) + params["b_fc2"]


if __name__ == "__main__":
    key = jax.random.PRNGKey(0)
    k_x, k_p = jax.random.split(key)
    # FashionMNIST-style input (the 64*7*7 flatten in the module requires 28x28).
    x = jax.random.normal(k_x, (2, 1, 28, 28), dtype=jnp.float32)
    params = init_params(k_p)
    kernel_params = prepare_params(params)

    out = jax.block_until_ready(fashion_simple_net(x, kernel_params))
    assert out.shape == (2, 10) and out.dtype == jnp.float32

    ref = jax.block_until_ready(reference_forward(x, params))
    scale = max(float(jnp.max(jnp.abs(ref))), 1.0)
    max_err = float(jnp.max(jnp.abs(out - ref)))
    assert max_err <= 5e-2 * scale, f"mismatch vs reference: {max_err}"

    print("KERNEL_OK")
</pallas_src>

<mosaic_0001>
module attributes {stable_mosaic.version = 11 : i64} {
  func.func @_conv_pool_kernel(%arg0: i32, %arg1: memref<1x18x18x8xbf16, #tpu.memory_space<vmem>>, %arg2: memref<9x8x128xbf16, #tpu.memory_space<vmem>>, %arg3: memref<1x32xf32, #tpu.memory_space<vmem>>, %arg4: memref<256x32xbf16, #tpu.memory_space<vmem>>) attributes {dimension_semantics = [#tpu.dimension_semantics<parallel>], iteration_bounds = array<i64: 2>, scalar_prefetch = 0 : i64, scratch_operands = 0 : i64, tpu.core_type = #tpu.core_type<tc>, window_params = [{transform_indices = @transform_0, window_bounds = array<i64: 1, 18, 18, 8>}, {pipeline_mode = #tpu.pipeline_mode<synchronous>, transform_indices = @transform_1, window_bounds = array<i64: 9, 8, 128>}, {pipeline_mode = #tpu.pipeline_mode<synchronous>, transform_indices = @transform_2, window_bounds = array<i64: 1, 32>}, {transform_indices = @transform_3, window_bounds = array<i64: 256, 32>}]} {
    %c0 = arith.constant 0 : index
    %c0_0 = arith.constant 0 : index
    %c0_1 = arith.constant 0 : index
    %c0_2 = arith.constant 0 : index
    %0 = vector.load %arg1[%c0, %c0_0, %c0_1, %c0_2] : memref<1x18x18x8xbf16, #tpu.memory_space<vmem>>, vector<1x16x16x8xbf16>
    %1 = vector.shape_cast %0 : vector<1x16x16x8xbf16> to vector<256x8xbf16>
    %c0_3 = arith.constant 0 : index
    %c0_4 = arith.constant 0 : index
    %c0_5 = arith.constant 0 : index
    %2 = vector.load %arg2[%c0_3, %c0_4, %c0_5] : memref<9x8x128xbf16, #tpu.memory_space<vmem>>, vector<1x8x128xbf16>
    %3 = vector.shape_cast %2 : vector<1x8x128xbf16> to vector<8x128xbf16>
    %cst = arith.constant dense<0.000000e+00> : vector<256x128xf32>
    %4 = tpu.matmul %1, %3, %cst {dimension_numbers = #tpu.dot_dimension_numbers<[1], [0], [0], [1], [0, 0, 1, 1], [], []>} : vector<256x8xbf16>, vector<8x128xbf16>, vector<256x128xf32> -> vector<256x128xf32>
    %c0_6 = arith.constant 0 : index
    %c0_7 = arith.constant 0 : index
    %c1 = arith.constant 1 : index
    %c0_8 = arith.constant 0 : index
    %5 = vector.load %arg1[%c0_6, %c0_7, %c1, %c0_8] : memref<1x18x18x8xbf16, #tpu.memory_space<vmem>>, vector<1x16x16x8xbf16>
    %6 = vector.shape_cast %5 : vector<1x16x16x8xbf16> to vector<256x8xbf16>
    %c1_9 = arith.constant 1 : index
    %c0_10 = arith.constant 0 : index
    %c0_11 = arith.constant 0 : index
    %7 = vector.load %arg2[%c1_9, %c0_10, %c0_11] : memref<9x8x128xbf16, #tpu.memory_space<vmem>>, vector<1x8x128xbf16>
    %8 = vector.shape_cast %7 : vector<1x8x128xbf16> to vector<8x128xbf16>
    %cst_12 = arith.constant dense<0.000000e+00> : vector<256x128xf32>
    %9 = tpu.matmul %6, %8, %cst_12 {dimension_numbers = #tpu.dot_dimension_numbers<[1], [0], [0], [1], [0, 0, 1, 1], [], []>} : vector<256x8xbf16>, vector<8x128xbf16>, vector<256x128xf32> -> vector<256x128xf32>
    %10 = arith.addf %4, %9 : vector<256x128xf32>
    %c0_13 = arith.constant 0 : index
    %c0_14 = arith.constant 0 : index
    %c2 = arith.constant 2 : index
    %c0_15 = arith.constant 0 : index
    %11 = vector.load %arg1[%c0_13, %c0_14, %c2, %c0_15] : memref<1x18x18x8xbf16, #tpu.memory_space<vmem>>, vector<1x16x16x8xbf16>
    %12 = vector.shape_cast %11 : vector<1x16x16x8xbf16> to vector<256x8xbf16>
    %c2_16 = arith.constant 2 : index
    %c0_17 = arith.constant 0 : index
    %c0_18 = arith.constant 0 : index
    %13 = vector.load %arg2[%c2_16, %c0_17, %c0_18] : memref<9x8x128xbf16, #tpu.memory_space<vmem>>, vector<1x8x128xbf16>
    %14 = vector.shape_cast %13 : vector<1x8x128xbf16> to vector<8x128xbf16>
    %cst_19 = arith.constant dense<0.000000e+00> : vector<256x128xf32>
    %15 = tpu.matmul %12, %14, %cst_19 {dimension_numbers = #tpu.dot_dimension_numbers<[1], [0], [0], [1], [0, 0, 1, 1], [], []>} : vector<256x8xbf16>, vector<8x128xbf16>, vector<256x128xf32> -> vector<256x128xf32>
    %16 = arith.addf %10, %15 : vector<256x128xf32>
    %c0_20 = arith.constant 0 : index
    %c1_21 = arith.constant 1 : index
    %c0_22 = arith.constant 0 : index
    %c0_23 = arith.constant 0 : index
    %17 = vector.load %arg1[%c0_20, %c1_21, %c0_22, %c0_23] : memref<1x18x18x8xbf16, #tpu.memory_space<vmem>>, vector<1x16x16x8xbf16>
    %18 = vector.shape_cast %17 : vector<1x16x16x8xbf16> to vector<256x8xbf16>
    %c3 = arith.constant 3 : index
    %c0_24 = arith.constant 0 : index
    %c0_25 = arith.constant 0 : index
    %19 = vector.load %arg2[%c3, %c0_24, %c0_25] : memref<9x8x128xbf16, #tpu.memory_space<vmem>>, vector<1x8x128xbf16>
    %20 = vector.shape_cast %19 : vector<1x8x128xbf16> to vector<8x128xbf16>
    %cst_26 = arith.constant dense<0.000000e+00> : vector<256x128xf32>
    %21 = tpu.matmul %18, %20, %cst_26 {dimension_numbers = #tpu.dot_dimension_numbers<[1], [0], [0], [1], [0, 0, 1, 1], [], []>} : vector<256x8xbf16>, vector<8x128xbf16>, vector<256x128xf32> -> vector<256x128xf32>
    %22 = arith.addf %16, %21 : vector<256x128xf32>
    %c0_27 = arith.constant 0 : index
    %c1_28 = arith.constant 1 : index
    %c1_29 = arith.constant 1 : index
    %c0_30 = arith.constant 0 : index
    %23 = vector.load %arg1[%c0_27, %c1_28, %c1_29, %c0_30] : memref<1x18x18x8xbf16, #tpu.memory_space<vmem>>, vector<1x16x16x8xbf16>
    %24 = vector.shape_cast %23 : vector<1x16x16x8xbf16> to vector<256x8xbf16>
    %c4 = arith.constant 4 : index
    %c0_31 = arith.constant 0 : index
    %c0_32 = arith.constant 0 : index
    %25 = vector.load %arg2[%c4, %c0_31, %c0_32] : memref<9x8x128xbf16, #tpu.memory_space<vmem>>, vector<1x8x128xbf16>
    %26 = vector.shape_cast %25 : vector<1x8x128xbf16> to vector<8x128xbf16>
    %cst_33 = arith.constant dense<0.000000e+00> : vector<256x128xf32>
    %27 = tpu.matmul %24, %26, %cst_33 {dimension_numbers = #tpu.dot_dimension_numbers<[1], [0], [0], [1], [0, 0, 1, 1], [], []>} : vector<256x8xbf16>, vector<8x128xbf16>, vector<256x128xf32> -> vector<256x128xf32>
    %28 = arith.addf %22, %27 : vector<256x128xf32>
    %c0_34 = arith.constant 0 : index
    %c1_35 = arith.constant 1 : index
    %c2_36 = arith.constant 2 : index
    %c0_37 = arith.constant 0 : index
    %29 = vector.load %arg1[%c0_34, %c1_35, %c2_36, %c0_37] : memref<1x18x18x8xbf16, #tpu.memory_space<vmem>>, vector<1x16x16x8xbf16>
    %30 = vector.shape_cast %29 : vector<1x16x16x8xbf16> to vector<256x8xbf16>
    %c5 = arith.constant 5 : index
    %c0_38 = arith.constant 0 : index
    %c0_39 = arith.constant 0 : index
    %31 = vector.load %arg2[%c5, %c0_38, %c0_39] : memref<9x8x128xbf16, #tpu.memory_space<vmem>>, vector<1x8x128xbf16>
    %32 = vector.shape_cast %31 : vector<1x8x128xbf16> to vector<8x128xbf16>
    %cst_40 = arith.constant dense<0.000000e+00> : vector<256x128xf32>
    %33 = tpu.matmul %30, %32, %cst_40 {dimension_numbers = #tpu.dot_dimension_numbers<[1], [0], [0], [1], [0, 0, 1, 1], [], []>} : vector<256x8xbf16>, vector<8x128xbf16>, vector<256x128xf32> -> vector<256x128xf32>
    %34 = arith.addf %28, %33 : vector<256x128xf32>
    %c0_41 = arith.constant 0 : index
    %c2_42 = arith.constant 2 : index
    %c0_43 = arith.constant 0 : index
    %c0_44 = arith.constant 0 : index
    %35 = vector.load %arg1[%c0_41, %c2_42, %c0_43, %c0_44] : memref<1x18x18x8xbf16, #tpu.memory_space<vmem>>, vector<1x16x16x8xbf16>
    %36 = vector.shape_cast %35 : vector<1x16x16x8xbf16> to vector<256x8xbf16>
    %c6 = arith.constant 6 : index
    %c0_45 = arith.constant 0 : index
    %c0_46 = arith.constant 0 : index
    %37 = vector.load %arg2[%c6, %c0_45, %c0_46] : memref<9x8x128xbf16, #tpu.memory_space<vmem>>, vector<1x8x128xbf16>
    %38 = vector.shape_cast %37 : vector<1x8x128xbf16> to vector<8x128xbf16>
    %cst_47 = arith.constant dense<0.000000e+00> : vector<256x128xf32>
    %39 = tpu.matmul %36, %38, %cst_47 {dimension_numbers = #tpu.dot_dimension_numbers<[1], [0], [0], [1], [0, 0, 1, 1], [], []>} : vector<256x8xbf16>, vector<8x128xbf16>, vector<256x128xf32> -> vector<256x128xf32>
    %40 = arith.addf %34, %39 : vector<256x128xf32>
    %c0_48 = arith.constant 0 : index
    %c2_49 = arith.constant 2 : index
    %c1_50 = arith.constant 1 : index
    %c0_51 = arith.constant 0 : index
    %41 = vector.load %arg1[%c0_48, %c2_49, %c1_50, %c0_51] : memref<1x18x18x8xbf16, #tpu.memory_space<vmem>>, vector<1x16x16x8xbf16>
    %42 = vector.shape_cast %41 : vector<1x16x16x8xbf16> to vector<256x8xbf16>
    %c7 = arith.constant 7 : index
    %c0_52 = arith.constant 0 : index
    %c0_53 = arith.constant 0 : index
    %43 = vector.load %arg2[%c7, %c0_52, %c0_53] : memref<9x8x128xbf16, #tpu.memory_space<vmem>>, vector<1x8x128xbf16>
    %44 = vector.shape_cast %43 : vector<1x8x128xbf16> to vector<8x128xbf16>
    %cst_54 = arith.constant dense<0.000000e+00> : vector<256x128xf32>
    %45 = tpu.matmul %42, %44, %cst_54 {dimension_numbers = #tpu.dot_dimension_numbers<[1], [0], [0], [1], [0, 0, 1, 1], [], []>} : vector<256x8xbf16>, vector<8x128xbf16>, vector<256x128xf32> -> vector<256x128xf32>
    %46 = arith.addf %40, %45 : vector<256x128xf32>
    %c0_55 = arith.constant 0 : index
    %c2_56 = arith.constant 2 : index
    %c2_57 = arith.constant 2 : index
    %c0_58 = arith.constant 0 : index
    %47 = vector.load %arg1[%c0_55, %c2_56, %c2_57, %c0_58] : memref<1x18x18x8xbf16, #tpu.memory_space<vmem>>, vector<1x16x16x8xbf16>
    %48 = vector.shape_cast %47 : vector<1x16x16x8xbf16> to vector<256x8xbf16>
    %c8 = arith.constant 8 : index
    %c0_59 = arith.constant 0 : index
    %c0_60 = arith.constant 0 : index
    %49 = vector.load %arg2[%c8, %c0_59, %c0_60] : memref<9x8x128xbf16, #tpu.memory_space<vmem>>, vector<1x8x128xbf16>
    %50 = vector.shape_cast %49 : vector<1x8x128xbf16> to vector<8x128xbf16>
    %cst_61 = arith.constant dense<0.000000e+00> : vector<256x128xf32>
    %51 = tpu.matmul %48, %50, %cst_61 {dimension_numbers = #tpu.dot_dimension_numbers<[1], [0], [0], [1], [0, 0, 1, 1], [], []>} : vector<256x8xbf16>, vector<8x128xbf16>, vector<256x128xf32> -> vector<256x128xf32>
    %52 = arith.addf %46, %51 : vector<256x128xf32>
    %53 = vector.extract_strided_slice %52 {offsets = [0, 0], sizes = [256, 32], strides = [1, 1]} : vector<256x128xf32> to vector<256x32xf32>
    %54 = vector.extract_strided_slice %52 {offsets = [0, 32], sizes = [256, 32], strides = [1, 1]} : vector<256x128xf32> to vector<256x32xf32>
    %55 = arith.maximumf %53, %54 : vector<256x32xf32>
    %56 = vector.extract_strided_slice %52 {offsets = [0, 64], sizes = [256, 32], strides = [1, 1]} : vector<256x128xf32> to vector<256x32xf32>
    %57 = vector.extract_strided_slice %52 {offsets = [0, 96], sizes = [256, 32], strides = [1, 1]} : vector<256x128xf32> to vector<256x32xf32>
    %58 = arith.maximumf %56, %57 : vector<256x32xf32>
    %59 = arith.maximumf %55, %58 : vector<256x32xf32>
    %c0_62 = arith.constant 0 : index
    %c0_63 = arith.constant 0 : index
    %60 = vector.load %arg3[%c0_62, %c0_63] : memref<1x32xf32, #tpu.memory_space<vmem>>, vector<1x32xf32>
    %61 = vector.broadcast %60 : vector<1x32xf32> to vector<256x32xf32>
    %62 = arith.addf %59, %61 : vector<256x32xf32>
    %cst_64 = arith.constant 0.000000e+00 : f32
    %63 = vector.broadcast %cst_64 : f32 to vector<256x32xf32>
    %64 = arith.maximumf %62, %63 : vector<256x32xf32>
    %65 = arith.truncf %64 : vector<256x32xf32> to vector<256x32xbf16>
    %c0_65 = arith.constant 0 : index
    %c0_66 = arith.constant 0 : index
    %66 = vector.load %arg4[%c0_65, %c0_66] : memref<256x32xbf16, #tpu.memory_space<vmem>>, vector<256x32xbf16>
    tpu.vector_store %arg4[%c0_65, %c0_66], %65 {strides = array<i32>} : memref<256x32xbf16, #tpu.memory_space<vmem>>, vector<256x32xbf16>,
    return
  }
  func.func @transform_0(%arg0: i32) -> (i32, i32, i32, i32) {
    %c0_i32 = arith.constant 0 : i32
    %c0_i32_0 = arith.constant 0 : i32
    %c0_i32_1 = arith.constant 0 : i32
    %c0_i32_2 = arith.constant 0 : i32
    return %arg0, %c0_i32, %c0_i32_0, %c0_i32_1 : i32, i32, i32, i32
  }
  func.func @transform_1(%arg0: i32) -> (i32, i32, i32) {
    %c0_i32 = arith.constant 0 : i32
    %c0_i32_0 = arith.constant 0 : i32
    %c0_i32_1 = arith.constant 0 : i32
    %c0_i32_2 = arith.constant 0 : i32
    return %c0_i32, %c0_i32_0, %c0_i32_1 : i32, i32, i32
  }
  func.func @transform_2(%arg0: i32) -> (i32, i32) {
    %c0_i32 = arith.constant 0 : i32
    %c0_i32_0 = arith.constant 0 : i32
    %c0_i32_1 = arith.constant 0 : i32
    return %c0_i32, %c0_i32_0 : i32, i32
  }
  func.func @transform_3(%arg0: i32) -> (i32, i32) {
    %c0_i32 = arith.constant 0 : i32
    %c0_i32_0 = arith.constant 0 : i32
    return %arg0, %c0_i32 : i32, i32
  }
}

module attributes {stable_mosaic.version = 11 : i64} {
  func.func @_conv_pool_kernel(%arg0: i32, %arg1: memref<1x10x10x128xbf16, #tpu.memory_space<vmem>>, %arg2: memref<9x128x256xbf16, #tpu.memory_space<vmem>>, %arg3: memref<1x64xf32, #tpu.memory_space<vmem>>, %arg4: memref<64x64xbf16, #tpu.memory_space<vmem>>) attributes {dimension_semantics = [#tpu.dimension_semantics<parallel>], iteration_bounds = array<i64: 2>, scalar_prefetch = 0 : i64, scratch_operands = 0 : i64, tpu.core_type = #tpu.core_type<tc>, window_params = [{transform_indices = @transform_0, window_bounds = array<i64: 1, 10, 10, 128>}, {pipeline_mode = #tpu.pipeline_mode<synchronous>, transform_indices = @transform_1, window_bounds = array<i64: 9, 128, 256>}, {pipeline_mode = #tpu.pipeline_mode<synchronous>, transform_indices = @transform_2, window_bounds = array<i64: 1, 64>}, {transform_indices = @transform_3, window_bounds = array<i64: 64, 64>}]} {
    %c0 = arith.constant 0 : index
    %c0_0 = arith.constant 0 : index
    %c0_1 = arith.constant 0 : index
    %c0_2 = arith.constant 0 : index
    %0 = vector.load %arg1[%c0, %c0_0, %c0_1, %c0_2] : memref<1x10x10x128xbf16, #tpu.memory_space<vmem>>, vector<1x8x8x128xbf16>
    %1 = vector.shape_cast %0 : vector<1x8x8x128xbf16> to vector<64x128xbf16>
    %c0_3 = arith.constant 0 : index
    %c0_4 = arith.constant 0 : index
    %c0_5 = arith.constant 0 : index
    %2 = vector.load %arg2[%c0_3, %c0_4, %c0_5] : memref<9x128x256xbf16, #tpu.memory_space<vmem>>, vector<1x128x256xbf16>
    %3 = vector.shape_cast %2 : vector<1x128x256xbf16> to vector<128x256xbf16>
    %cst = arith.constant dense<0.000000e+00> : vector<64x256xf32>
    %4 = tpu.matmul %1, %3, %cst {dimension_numbers = #tpu.dot_dimension_numbers<[1], [0], [0], [1], [0, 0, 1, 1], [], []>} : vector<64x128xbf16>, vector<128x256xbf16>, vector<64x256xf32> -> vector<64x256xf32>
    %c0_6 = arith.constant 0 : index
    %c0_7 = arith.constant 0 : index
    %c1 = arith.constant 1 : index
    %c0_8 = arith.constant 0 : index
    %5 = vector.load %arg1[%c0_6, %c0_7, %c1, %c0_8] : memref<1x10x10x128xbf16, #tpu.memory_space<vmem>>, vector<1x8x8x128xbf16>
    %6 = vector.shape_cast %5 : vector<1x8x8x128xbf16> to vector<64x128xbf16>
    %c1_9 = arith.constant 1 : index
    %c0_10 = arith.constant 0 : index
    %c0_11 = arith.constant 0 : index
    %7 = vector.load %arg2[%c1_9, %c0_10, %c0_11] : memref<9x128x256xbf16, #tpu.memory_space<vmem>>, vector<1x128x256xbf16>
    %8 = vector.shape_cast %7 : vector<1x128x256xbf16> to vector<128x256xbf16>
    %cst_12 = arith.constant dense<0.000000e+00> : vector<64x256xf32>
    %9 = tpu.matmul %6, %8, %cst_12 {dimension_numbers = #tpu.dot_dimension_numbers<[1], [0], [0], [1], [0, 0, 1, 1], [], []>} : vector<64x128xbf16>, vector<128x256xbf16>, vector<64x256xf32> -> vector<64x256xf32>
    %10 = arith.addf %4, %9 : vector<64x256xf32>
    %c0_13 = arith.constant 0 : index
    %c0_14 = arith.constant 0 : index
    %c2 = arith.constant 2 : index
    %c0_15 = arith.constant 0 : index
    %11 = vector.load %arg1[%c0_13, %c0_14, %c2, %c0_15] : memref<1x10x10x128xbf16, #tpu.memory_space<vmem>>, vector<1x8x8x128xbf16>
    %12 = vector.shape_cast %11 : vector<1x8x8x128xbf16> to vector<64x128xbf16>
    %c2_16 = arith.constant 2 : index
    %c0_17 = arith.constant 0 : index
    %c0_18 = arith.constant 0 : index
    %13 = vector.load %arg2[%c2_16, %c0_17, %c0_18] : memref<9x128x256xbf16, #tpu.memory_space<vmem>>, vector<1x128x256xbf16>
    %14 = vector.shape_cast %13 : vector<1x128x256xbf16> to vector<128x256xbf16>
    %cst_19 = arith.constant dense<0.000000e+00> : vector<64x256xf32>
    %15 = tpu.matmul %12, %14, %cst_19 {dimension_numbers = #tpu.dot_dimension_numbers<[1], [0], [0], [1], [0, 0, 1, 1], [], []>} : vector<64x128xbf16>, vector<128x256xbf16>, vector<64x256xf32> -> vector<64x256xf32>
    %16 = arith.addf %10, %15 : vector<64x256xf32>
    %c0_20 = arith.constant 0 : index
    %c1_21 = arith.constant 1 : index
    %c0_22 = arith.constant 0 : index
    %c0_23 = arith.constant 0 : index
    %17 = vector.load %arg1[%c0_20, %c1_21, %c0_22, %c0_23] : memref<1x10x10x128xbf16, #tpu.memory_space<vmem>>, vector<1x8x8x128xbf16>
    %18 = vector.shape_cast %17 : vector<1x8x8x128xbf16> to vector<64x128xbf16>
    %c3 = arith.constant 3 : index
    %c0_24 = arith.constant 0 : index
    %c0_25 = arith.constant 0 : index
    %19 = vector.load %arg2[%c3, %c0_24, %c0_25] : memref<9x128x256xbf16, #tpu.memory_space<vmem>>, vector<1x128x256xbf16>
    %20 = vector.shape_cast %19 : vector<1x128x256xbf16> to vector<128x256xbf16>
    %cst_26 = arith.constant dense<0.000000e+00> : vector<64x256xf32>
    %21 = tpu.matmul %18, %20, %cst_26 {dimension_numbers = #tpu.dot_dimension_numbers<[1], [0], [0], [1], [0, 0, 1, 1], [], []>} : vector<64x128xbf16>, vector<128x256xbf16>, vector<64x256xf32> -> vector<64x256xf32>
    %22 = arith.addf %16, %21 : vector<64x256xf32>
    %c0_27 = arith.constant 0 : index
    %c1_28 = arith.constant 1 : index
    %c1_29 = arith.constant 1 : index
    %c0_30 = arith.constant 0 : index
    %23 = vector.load %arg1[%c0_27, %c1_28, %c1_29, %c0_30] : memref<1x10x10x128xbf16, #tpu.memory_space<vmem>>, vector<1x8x8x128xbf16>
    %24 = vector.shape_cast %23 : vector<1x8x8x128xbf16> to vector<64x128xbf16>
    %c4 = arith.constant 4 : index
    %c0_31 = arith.constant 0 : index
    %c0_32 = arith.constant 0 : index
    %25 = vector.load %arg2[%c4, %c0_31, %c0_32] : memref<9x128x256xbf16, #tpu.memory_space<vmem>>, vector<1x128x256xbf16>
    %26 = vector.shape_cast %25 : vector<1x128x256xbf16> to vector<128x256xbf16>
    %cst_33 = arith.constant dense<0.000000e+00> : vector<64x256xf32>
    %27 = tpu.matmul %24, %26, %cst_33 {dimension_numbers = #tpu.dot_dimension_numbers<[1], [0], [0], [1], [0, 0, 1, 1], [], []>} : vector<64x128xbf16>, vector<128x256xbf16>, vector<64x256xf32> -> vector<64x256xf32>
    %28 = arith.addf %22, %27 : vector<64x256xf32>
    %c0_34 = arith.constant 0 : index
    %c1_35 = arith.constant 1 : index
    %c2_36 = arith.constant 2 : index
    %c0_37 = arith.constant 0 : index
    %29 = vector.load %arg1[%c0_34, %c1_35, %c2_36, %c0_37] : memref<1x10x10x128xbf16, #tpu.memory_space<vmem>>, vector<1x8x8x128xbf16>
    %30 = vector.shape_cast %29 : vector<1x8x8x128xbf16> to vector<64x128xbf16>
    %c5 = arith.constant 5 : index
    %c0_38 = arith.constant 0 : index
    %c0_39 = arith.constant 0 : index
    %31 = vector.load %arg2[%c5, %c0_38, %c0_39] : memref<9x128x256xbf16, #tpu.memory_space<vmem>>, vector<1x128x256xbf16>
    %32 = vector.shape_cast %31 : vector<1x128x256xbf16> to vector<128x256xbf16>
    %cst_40 = arith.constant dense<0.000000e+00> : vector<64x256xf32>
    %33 = tpu.matmul %30, %32, %cst_40 {dimension_numbers = #tpu.dot_dimension_numbers<[1], [0], [0], [1], [0, 0, 1, 1], [], []>} : vector<64x128xbf16>, vector<128x256xbf16>, vector<64x256xf32> -> vector<64x256xf32>
    %34 = arith.addf %28, %33 : vector<64x256xf32>
    %c0_41 = arith.constant 0 : index
    %c2_42 = arith.constant 2 : index
    %c0_43 = arith.constant 0 : index
    %c0_44 = arith.constant 0 : index
    %35 = vector.load %arg1[%c0_41, %c2_42, %c0_43, %c0_44] : memref<1x10x10x128xbf16, #tpu.memory_space<vmem>>, vector<1x8x8x128xbf16>
    %36 = vector.shape_cast %35 : vector<1x8x8x128xbf16> to vector<64x128xbf16>
    %c6 = arith.constant 6 : index
    %c0_45 = arith.constant 0 : index
    %c0_46 = arith.constant 0 : index
    %37 = vector.load %arg2[%c6, %c0_45, %c0_46] : memref<9x128x256xbf16, #tpu.memory_space<vmem>>, vector<1x128x256xbf16>
    %38 = vector.shape_cast %37 : vector<1x128x256xbf16> to vector<128x256xbf16>
    %cst_47 = arith.constant dense<0.000000e+00> : vector<64x256xf32>
    %39 = tpu.matmul %36, %38, %cst_47 {dimension_numbers = #tpu.dot_dimension_numbers<[1], [0], [0], [1], [0, 0, 1, 1], [], []>} : vector<64x128xbf16>, vector<128x256xbf16>, vector<64x256xf32> -> vector<64x256xf32>
    %40 = arith.addf %34, %39 : vector<64x256xf32>
    %c0_48 = arith.constant 0 : index
    %c2_49 = arith.constant 2 : index
    %c1_50 = arith.constant 1 : index
    %c0_51 = arith.constant 0 : index
    %41 = vector.load %arg1[%c0_48, %c2_49, %c1_50, %c0_51] : memref<1x10x10x128xbf16, #tpu.memory_space<vmem>>, vector<1x8x8x128xbf16>
    %42 = vector.shape_cast %41 : vector<1x8x8x128xbf16> to vector<64x128xbf16>
    %c7 = arith.constant 7 : index
    %c0_52 = arith.constant 0 : index
    %c0_53 = arith.constant 0 : index
    %43 = vector.load %arg2[%c7, %c0_52, %c0_53] : memref<9x128x256xbf16, #tpu.memory_space<vmem>>, vector<1x128x256xbf16>
    %44 = vector.shape_cast %43 : vector<1x128x256xbf16> to vector<128x256xbf16>
    %cst_54 = arith.constant dense<0.000000e+00> : vector<64x256xf32>
    %45 = tpu.matmul %42, %44, %cst_54 {dimension_numbers = #tpu.dot_dimension_numbers<[1], [0], [0], [1], [0, 0, 1, 1], [], []>} : vector<64x128xbf16>, vector<128x256xbf16>, vector<64x256xf32> -> vector<64x256xf32>
    %46 = arith.addf %40, %45 : vector<64x256xf32>
    %c0_55 = arith.constant 0 : index
    %c2_56 = arith.constant 2 : index
    %c2_57 = arith.constant 2 : index
    %c0_58 = arith.constant 0 : index
    %47 = vector.load %arg1[%c0_55, %c2_56, %c2_57, %c0_58] : memref<1x10x10x128xbf16, #tpu.memory_space<vmem>>, vector<1x8x8x128xbf16>
    %48 = vector.shape_cast %47 : vector<1x8x8x128xbf16> to vector<64x128xbf16>
    %c8 = arith.constant 8 : index
    %c0_59 = arith.constant 0 : index
    %c0_60 = arith.constant 0 : index
    %49 = vector.load %arg2[%c8, %c0_59, %c0_60] : memref<9x128x256xbf16, #tpu.memory_space<vmem>>, vector<1x128x256xbf16>
    %50 = vector.shape_cast %49 : vector<1x128x256xbf16> to vector<128x256xbf16>
    %cst_61 = arith.constant dense<0.000000e+00> : vector<64x256xf32>
    %51 = tpu.matmul %48, %50, %cst_61 {dimension_numbers = #tpu.dot_dimension_numbers<[1], [0], [0], [1], [0, 0, 1, 1], [], []>} : vector<64x128xbf16>, vector<128x256xbf16>, vector<64x256xf32> -> vector<64x256xf32>
    %52 = arith.addf %46, %51 : vector<64x256xf32>
    %53 = vector.extract_strided_slice %52 {offsets = [0, 0], sizes = [64, 64], strides = [1, 1]} : vector<64x256xf32> to vector<64x64xf32>
    %54 = vector.extract_strided_slice %52 {offsets = [0, 64], sizes = [64, 64], strides = [1, 1]} : vector<64x256xf32> to vector<64x64xf32>
    %55 = arith.maximumf %53, %54 : vector<64x64xf32>
    %56 = vector.extract_strided_slice %52 {offsets = [0, 128], sizes = [64, 64], strides = [1, 1]} : vector<64x256xf32> to vector<64x64xf32>
    %57 = vector.extract_strided_slice %52 {offsets = [0, 192], sizes = [64, 64], strides = [1, 1]} : vector<64x256xf32> to vector<64x64xf32>
    %58 = arith.maximumf %56, %57 : vector<64x64xf32>
    %59 = arith.maximumf %55, %58 : vector<64x64xf32>
    %c0_62 = arith.constant 0 : index
    %c0_63 = arith.constant 0 : index
    %60 = vector.load %arg3[%c0_62, %c0_63] : memref<1x64xf32, #tpu.memory_space<vmem>>, vector<1x64xf32>
    %61 = vector.broadcast %60 : vector<1x64xf32> to vector<64x64xf32>
    %62 = arith.addf %59, %61 : vector<64x64xf32>
    %cst_64 = arith.constant 0.000000e+00 : f32
    %63 = vector.broadcast %cst_64 : f32 to vector<64x64xf32>
    %64 = arith.maximumf %62, %63 : vector<64x64xf32>
    %65 = arith.truncf %64 : vector<64x64xf32> to vector<64x64xbf16>
    %c0_65 = arith.constant 0 : index
    %c0_66 = arith.constant 0 : index
    %66 = vector.load %arg4[%c0_65, %c0_66] : memref<64x64xbf16, #tpu.memory_space<vmem>>, vector<64x64xbf16>
    tpu.vector_store %arg4[%c0_65, %c0_66], %65 {strides = array<i32>} : memref<64x64xbf16, #tpu.memory_space<vmem>>, vector<64x64xbf16>,
    return
  }
  func.func @transform_0(%arg0: i32) -> (i32, i32, i32, i32) {
    %c0_i32 = arith.constant 0 : i32
    %c0_i32_0 = arith.constant 0 : i32
    %c0_i32_1 = arith.constant 0 : i32
    %c0_i32_2 = arith.constant 0 : i32
    return %arg0, %c0_i32, %c0_i32_0, %c0_i32_1 : i32, i32, i32, i32
  }
  func.func @transform_1(%arg0: i32) -> (i32, i32, i32) {
    %c0_i32 = arith.constant 0 : i32
    %c0_i32_0 = arith.constant 0 : i32
    %c0_i32_1 = arith.constant 0 : i32
    %c0_i32_2 = arith.constant 0 : i32
    return %c0_i32, %c0_i32_0, %c0_i32_1 : i32, i32, i32
  }
  func.func @transform_2(%arg0: i32) -> (i32, i32) {
    %c0_i32 = arith.constant 0 : i32
    %c0_i32_0 = arith.constant 0 : i32
    %c0_i32_1 = arith.constant 0 : i32
    return %c0_i32, %c0_i32_0 : i32, i32
  }
  func.func @transform_3(%arg0: i32) -> (i32, i32) {
    %c0_i32 = arith.constant 0 : i32
    %c0_i32_0 = arith.constant 0 : i32
    return %arg0, %c0_i32 : i32, i32
  }
}

module attributes {stable_mosaic.version = 11 : i64} {
  func.func @_classifier_kernel(%arg0: i32, %arg1: memref<8x3136xbf16, #tpu.memory_space<vmem>>, %arg2: memref<3136x128xbf16, #tpu.memory_space<vmem>>, %arg3: memref<1x128xf32, #tpu.memory_space<vmem>>, %arg4: memref<128x128xbf16, #tpu.memory_space<vmem>>, %arg5: memref<1x128xf32, #tpu.memory_space<vmem>>, %arg6: memref<8x128xf32, #tpu.memory_space<vmem>>) attributes {dimension_semantics = [#tpu.dimension_semantics<parallel>], iteration_bounds = array<i64: 2>, scalar_prefetch = 0 : i64, scratch_operands = 0 : i64, tpu.core_type = #tpu.core_type<tc>, window_params = [{transform_indices = @transform_0, window_bounds = array<i64: 8, 3136>}, {pipeline_mode = #tpu.pipeline_mode<synchronous>, transform_indices = @transform_1, window_bounds = array<i64: 3136, 128>}, {pipeline_mode = #tpu.pipeline_mode<synchronous>, transform_indices = @transform_2, window_bounds = array<i64: 1, 128>}, {pipeline_mode = #tpu.pipeline_mode<synchronous>, transform_indices = @transform_3, window_bounds = array<i64: 128, 128>}, {pipeline_mode = #tpu.pipeline_mode<synchronous>, transform_indices = @transform_4, window_bounds = array<i64: 1, 128>}, {transform_indices = @transform_5, window_bounds = array<i64: 8, 128>}]} {
    %c0 = arith.constant 0 : index
    %c0_0 = arith.constant 0 : index
    %0 = vector.load %arg1[%c0, %c0_0] : memref<8x3136xbf16, #tpu.memory_space<vmem>>, vector<8x3136xbf16>
    %c0_1 = arith.constant 0 : index
    %c0_2 = arith.constant 0 : index
    %1 = vector.load %arg2[%c0_1, %c0_2] : memref<3136x128xbf16, #tpu.memory_space<vmem>>, vector<3136x128xbf16>
    %cst = arith.constant dense<0.000000e+00> : vector<8x128xf32>
    %2 = tpu.matmul %0, %1, %cst {dimension_numbers = #tpu.dot_dimension_numbers<[1], [0], [0], [1], [0, 0, 1, 1], [], []>} : vector<8x3136xbf16>, vector<3136x128xbf16>, vector<8x128xf32> -> vector<8x128xf32>
    %c0_3 = arith.constant 0 : index
    %c0_4 = arith.constant 0 : index
    %3 = vector.load %arg3[%c0_3, %c0_4] : memref<1x128xf32, #tpu.memory_space<vmem>>, vector<1x128xf32>
    %4 = vector.broadcast %3 : vector<1x128xf32> to vector<8x128xf32>
    %5 = arith.addf %2, %4 : vector<8x128xf32>
    %cst_5 = arith.constant 0.000000e+00 : f32
    %6 = vector.broadcast %cst_5 : f32 to vector<8x128xf32>
    %7 = arith.maximumf %5, %6 : vector<8x128xf32>
    %8 = arith.truncf %7 : vector<8x128xf32> to vector<8x128xbf16>
    %c0_6 = arith.constant 0 : index
    %c0_7 = arith.constant 0 : index
    %9 = vector.load %arg4[%c0_6, %c0_7] : memref<128x128xbf16, #tpu.memory_space<vmem>>, vector<128x128xbf16>
    %cst_8 = arith.constant dense<0.000000e+00> : vector<8x128xf32>
    %10 = tpu.matmul %8, %9, %cst_8 {dimension_numbers = #tpu.dot_dimension_numbers<[1], [0], [0], [1], [0, 0, 1, 1], [], []>} : vector<8x128xbf16>, vector<128x128xbf16>, vector<8x128xf32> -> vector<8x128xf32>
    %c0_9 = arith.constant 0 : index
    %c0_10 = arith.constant 0 : index
    %11 = vector.load %arg5[%c0_9, %c0_10] : memref<1x128xf32, #tpu.memory_space<vmem>>, vector<1x128xf32>
    %12 = vector.broadcast %11 : vector<1x128xf32> to vector<8x128xf32>
    %13 = arith.addf %10, %12 : vector<8x128xf32>
    %c0_11 = arith.constant 0 : index
    %c0_12 = arith.constant 0 : index
    %14 = vector.load %arg6[%c0_11, %c0_12] : memref<8x128xf32, #tpu.memory_space<vmem>>, vector<8x128xf32>
    tpu.vector_store %arg6[%c0_11, %c0_12], %13 {strides = array<i32>} : memref<8x128xf32, #tpu.memory_space<vmem>>, vector<8x128xf32>,
    return
  }
  func.func @transform_0(%arg0: i32) -> (i32, i32) {
    %c0_i32 = arith.constant 0 : i32
    %c0_i32_0 = arith.constant 0 : i32
    return %arg0, %c0_i32 : i32, i32
  }
  func.func @transform_1(%arg0: i32) -> (i32, i32) {
    %c0_i32 = arith.constant 0 : i32
    %c0_i32_0 = arith.constant 0 : i32
    %c0_i32_1 = arith.constant 0 : i32
    return %c0_i32, %c0_i32_0 : i32, i32
  }
  func.func @transform_2(%arg0: i32) -> (i32, i32) {
    %c0_i32 = arith.constant 0 : i32
    %c0_i32_0 = arith.constant 0 : i32
    %c0_i32_1 = arith.constant 0 : i32
    return %c0_i32, %c0_i32_0 : i32, i32
  }
  func.func @transform_3(%arg0: i32) -> (i32, i32) {
    %c0_i32 = arith.constant 0 : i32
    %c0_i32_0 = arith.constant 0 : i32
    %c0_i32_1 = arith.constant 0 : i32
    return %c0_i32, %c0_i32_0 : i32, i32
  }
  func.func @transform_4(%arg0: i32) -> (i32, i32) {
    %c0_i32 = arith.constant 0 : i32
    %c0_i32_0 = arith.constant 0 : i32
    %c0_i32_1 = arith.constant 0 : i32
    return %c0_i32, %c0_i32_0 : i32, i32
  }
  func.func @transform_5(%arg0: i32) -> (i32, i32) {
    %c0_i32 = arith.constant 0 : i32
    %c0_i32_0 = arith.constant 0 : i32
    return %arg0, %c0_i32 : i32, i32
  }
}

</mosaic_0001>

<bundles_post_ra>
// kernel: fashion_simple_net.4
= control target key start
LH: loop header
LB: loop body
LE: loop exit
PB: predicated region body
PF: predicated region fallthrough
CT: control target
= control target key end

     0   :  { %s3602_s12 = smov 0   ;;  %s4518_s0 = inlined_call_operand.vmem [shape: bf16[2,10,10,128], index: 0, kind: input, shape index: {}]   ;;  %s4519_s1 = inlined_call_operand.vmem [shape: bf16[9,128,256], index: 1, kind: input, shape index: {}]   ;;  %s4520_s2 = inlined_call_operand.vmem [shape: f32[1,64], index: 2, kind: input, shape index: {}]   ;;  %s4521_s3 = inlined_call_operand.vmem [shape: bf16[128,64], index: 3, kind: output, shape index: {}]  }
   0x1 LB: > { %s3608_s13 = sadd.s32 4294967295, %s3578_s12   ;;  %p2770_p0 = scmp.ge.s32.totalorder %s3578_s12, 1  ;;  %s3578_s12 = sphi %s3602_s12, %s13_s12  }
   0x2   : > { %p137_p1 = scmp.lt.s32.totalorder %s3578_s12, 3 }
   0x4   : > { %p138_p2 = pnand %p2770_p0, %p137_p1 }
   0x5   : > { %v3344_v0 = vld [vmem:[%s4519_s1 + $0x84] ss:$8 sps:$4 sm:$0xff] (!%p138_p2)   ;;  %v3580_v2 = vmov (!%p138_p2), 0   ;;  %v3348_v3 = vld [vmem:[%s4519_s1 + $0x80] ss:$8 sps:$4 sm:$0xff] (!%p138_p2)   ;;  %p161_p3 = scmp.lt.s32.totalorder (!%p138_p2), %s3608_s13, 1 }
   0x6   : > { %141 = sbr.rel (%p138_p2) target bundleno = 542 (0x21e), region = 32  ;;  %v3346_v1 = vld [vmem:[%s4519_s1 + $0x204] ss:$8 sps:$4 sm:$0xff] (!%p138_p2)   ;;  %465 = vmatprep.mubr.bf16.mxu1 (!%p138_p2), %v3580_v2  ;;  %1436 = vmatprep.mubr.bf16.mxu0 (!%p138_p2), %v3580_v2  ;;  %v3349_v4 = vld [vmem:[%s4519_s1 + $0x200] ss:$8 sps:$4 sm:$0xff] (!%p138_p2)   ;;  %vm707_vm3 = vcmask (!%p138_p2), 1042432  }
   0x7   : > { %433 = vmatprep.subr.bf16.mxu1 (!%p138_p2), %v3344_v0  ;;  %1404 = vmatprep.subr.bf16.mxu0 (!%p138_p2), %v3346_v1  ;;  %v3350_v5 = vld [vmem:[%s4519_s1 + $0x94] ss:$8 sps:$4 sm:$0xff] (!%p138_p2)   ;;  %v3354_v7 = vld [vmem:[%s4519_s1 + $0x90] ss:$8 sps:$4 sm:$0xff] (!%p138_p2)   ;;  %v3356_v9 = vld [vmem:[%s4519_s1 + $0xa4] ss:$8 sps:$4 sm:$0xff] (!%p138_p2)  }
   0x8   : > { %434 = vmatpush1.bf16.msra.mxu1 (!%p138_p2), %v3348_v3  ;;  %1405 = vmatpush1.bf16.msra.mxu0 (!%p138_p2), %v3349_v4  ;;  %v3352_v6 = vld [vmem:[%s4519_s1 + $0x214] ss:$8 sps:$4 sm:$0xff] (!%p138_p2)   ;;  %v3355_v8 = vld [vmem:[%s4519_s1 + $0x210] ss:$8 sps:$4 sm:$0xff] (!%p138_p2)   ;;  %v3358_v10 = vld [vmem:[%s4519_s1 + $0x224] ss:$8 sps:$4 sm:$0xff] (!%p138_p2)  }
   0x9   : > { %435 = vmatprep.subr.bf16.mxu1 (!%p138_p2), %v3350_v5  ;;  %1406 = vmatprep.subr.bf16.mxu0 (!%p138_p2), %v3352_v6  ;;  %v3360_v11 = vld [vmem:[%s4519_s1 + $0xa0] ss:$8 sps:$4 sm:$0xff] (!%p138_p2)   ;;  %v3362_v13 = vld [vmem:[%s4519_s1 + $0xb4] ss:$8 sps:$4 sm:$0xff] (!%p138_p2)   ;;  %v3366_v15 = vld [vmem:[%s4519_s1 + $0xb0] ss:$8 sps:$4 sm:$0xff] (!%p138_p2)  }
   0xa   : > { %v3361_v12 = vld [vmem:[%s4519_s1 + $0x220] ss:$8 sps:$4 sm:$0xff] (!%p138_p2)   ;;  %v3364_v14 = vld [vmem:[%s4519_s1 + $0x234] ss:$8 sps:$4 sm:$0xff] (!%p138_p2)   ;;  %v3367_v16 = vld [vmem:[%s4519_s1 + $0x230] ss:$8 sps:$4 sm:$0xff] (!%p138_p2)  }
   0xb   : > { %v3368_v17 = vld [vmem:[%s4519_s1 + $0xc4] ss:$8 sps:$4 sm:$0xff] (!%p138_p2)   ;;  %v3372_v19 = vld [vmem:[%s4519_s1 + $0xc0] ss:$8 sps:$4 sm:$0xff] (!%p138_p2)   ;;  %v3374_v21 = vld [vmem:[%s4519_s1 + $0xd4] ss:$8 sps:$4 sm:$0xff] (!%p138_p2)  }
   0xc   : > { %436 = vmatpush1.bf16.msra.mxu1 (!%p138_p2), %v3354_v7  ;;  %1407 = vmatpush1.bf16.msra.mxu0 (!%p138_p2), %v3355_v8  ;;  %v3370_v18 = vld [vmem:[%s4519_s1 + $0x244] ss:$8 sps:$4 sm:$0xff] (!%p138_p2)   ;;  %v3373_v20 = vld [vmem:[%s4519_s1 + $0x240] ss:$8 sps:$4 sm:$0xff] (!%p138_p2)   ;;  %v3376_v22 = vld [vmem:[%s4519_s1 + $0x254] ss:$8 sps:$4 sm:$0xff] (!%p138_p2)  }
   0xd   : > { %437 = vmatprep.subr.bf16.mxu1 %v3356_v9  ;;  %1408 = vmatprep.subr.bf16.mxu0 %v3358_v10  ;;  %s162_s17 = scalar_select %p161_p3, %s3608_s13, 1  ;;  %vm205_vm0 = vsmask.f32 3328  ;;  %v3378_v23 = vld [vmem:[%s4519_s1 + $0xd0] ss:$8 sps:$4 sm:$0xff]   ;;  %vm708_vm4 = vcmask 1046532  }
   0xe   : > { %vm206_vm1 = vsmask.f32 7440  ;;  %v3379_v24 = vld [vmem:[%s4519_s1 + $0x250] ss:$8 sps:$4 sm:$0xff]   ;;  %v3380_v25 = vld [vmem:[%s4519_s1 + $0xe4] ss:$8 sps:$4 sm:$0xff]   ;;  %vm3982_vm5 = vmor %vm707_vm3, %vm708_vm4 }
   0xf   : > { %s3333_s26 = smul.u32 80, %s162_s17  ;;  %v3382_v26 = vld [vmem:[%s4519_s1 + $0x264] ss:$8 sps:$4 sm:$0xff]   ;;  %v3384_v29 = vld [vmem:[%s4519_s1 + $0xe0] ss:$8 sps:$4 sm:$0xff]   ;;  %vm3742_vm2 = vmor %vm205_vm0, %vm206_vm1  ;;  %s2772_s17 = sshll.u32 %s3608_s13, 3 }
  0x10   : > { %438 = vmatpush1.bf16.msra.mxu1 %v3360_v11  ;;  %1409 = vmatpush1.bf16.msra.mxu0 %v3361_v12  ;;  %v3385_v38 = vld [vmem:[%s4519_s1 + $0x260] ss:$8 sps:$4 sm:$0xff]   ;;  %v3386_v39 = vld [vmem:[%s4519_s1 + $0xf4] ss:$8 sps:$4 sm:$0xff]   ;;  %v3390_v47 = vld [vmem:[%s4519_s1 + $0xf0] ss:$8 sps:$4 sm:$0xff]  }
  0x11   : > { %439 = vmatprep.subr.bf16.mxu1 %v3362_v13  ;;  %1410 = vmatprep.subr.bf16.mxu0 %v3364_v14  ;;  %s3685_s10 = scalar_lea.vmem %s4518_s0, %s3333_s26  ;;  %v3388_v42 = vld [vmem:[%s4519_s1 + $0x274] ss:$8 sps:$4 sm:$0xff]   ;;  %v3391_v48 = vld [vmem:[%s4519_s1 + $0x270] ss:$8 sps:$4 sm:$0xff]   ;;  %v3394_v0 = vld [vmem:[%s4519_s1 + $0x4] ss:$8 sps:$4 sm:$0xff]  }
  0x12   : > { %v3700_v27 = vld [vmem:[%s3685_s10] sm:$0xf]  ;;  %v3703_v28 = vld [vmem:[%s3685_s10 + $0x8] sm:$0xf]  ;;  %v3709_v30 = vld [vmem:[%s3685_s10 + $0x4] sm:$0x1] }
  0x13   : > { %v3712_v31 = vld [vmem:[%s3685_s10 + $0xc] sm:$0x1]  ;;  %v209_v32 = vshrl.u32 %v3700_v27, 16  ;;  %v212_v33 = vshll.u32 %v3700_v27, 16  ;;  %v218_v34 = vshll.u32 %v3709_v30, 16  ;;  %v223_v35 = vshrl.u32 %v3703_v28, 16 }
  0x14   : > { %440 = vmatpush1.bf16.msra.mxu1 %v3366_v15  ;;  %1411 = vmatpush1.bf16.msra.mxu0 %v3367_v16  ;;  %v226_v36 = vshll.u32 %v3703_v28, 16  ;;  %v232_v37 = vshll.u32 %v3712_v31, 16  ;;  %v2918_v50 = vld [vmem:[%s3685_s10 + $0x8] sm:$0xf]  ;;  %v3737_v51 = vld [vmem:[%s3685_s10 + $0xc] sm:$0x1] }
  0x15   : > { %441 = vmatprep.subr.bf16.mxu1 %v3368_v17  ;;  %1412 = vmatprep.subr.bf16.mxu0 %v3370_v18  ;;  %v211_v40 = vrot.slane %v209_v32, 4  ;;  %v214_v41 = vrot.slane %v212_v33, 5  ;;  %v220_v43 = vrot.slane %v218_v34, 5  ;;  %v225_v44 = vrot.slane %v223_v35, 4  ;;  %v2920_v52 = vld [vmem:[%s3685_s10 + $0x10] sm:$0xf] }
  0x16   : > { %v228_v45 = vrot.slane %v226_v36, 5  ;;  %v234_v46 = vrot.slane %v232_v37, 5  ;;  %v3747_v55 = vld [vmem:[%s3685_s10 + $0x14] sm:$0x1]  ;;  %v1180_v56 = vshrl.u32 %v2918_v50, 16  ;;  %v1183_v57 = vshll.u32 %v2918_v50, 16 }
  0x17   : > { %v215_v49 = vor.u32 %v214_v41, %v211_v40  ;;  %v1189_v58 = vshll.u32 %v3737_v51, 16  ;;  %v1194_v60 = vshrl.u32 %v2920_v52, 16  ;;  %v1197_v61 = vshll.u32 %v2920_v52, 16  ;;  %v3397_v7 = vld [vmem:[%s4519_s1 + $0x284] ss:$8 sps:$4 sm:$0xff]   ;;  %p167_p4 = scmp.lt.s32.totalorder %s2772_s17, 15 }
  0x18   : > { %442 = vmatpush1.bf16.msra.mxu1 %v3372_v19  ;;  %1413 = vmatpush1.bf16.msra.mxu0 %v3373_v20  ;;  %v229_v54 = vor.u32 %v228_v45, %v225_v44  ;;  %v1203_v62 = vshll.u32 %v3747_v55, 16  ;;  %v1182_v1 = vrot.slane %v1180_v56, 4  ;;  %v1185_v3 = vrot.slane %v1183_v57, 5  ;;  %v3392_v12 = vld [vmem:[%s4519_s1] ss:$8 sps:$4 sm:$0xff]  }
  0x19   : > { %443 = vmatprep.subr.bf16.mxu1 %v3374_v21  ;;  %1414 = vmatprep.subr.bf16.mxu0 %v3376_v22  ;;  %v216_v59 = vrot.slane %v215_v49, 4  ;;  %v1196_v5 = vrot.slane %v1194_v60, 4  ;;  %v1199_v6 = vrot.slane %v1197_v61, 5  ;;  %v1191_v10 = vrot.slane %v1189_v58, 5  ;;  %v3400_v16 = vld [vmem:[%s4519_s1 + $0x14] ss:$8 sps:$4 sm:$0xff]  }
  0x1a   : > { %v230_v63 = vrot.slane %v229_v54, 4  ;;  %v1186_v9 = vor.u32 %v1185_v3, %v1182_v1  ;;  %v1205_v14 = vrot.slane %v1203_v62, 5  ;;  %v3768_v17 = vld [vmem:[%s3685_s10 + $0x10] sm:$0xf]  ;;  %v3395_v19 = vld [vmem:[%s4519_s1 + $0x280] ss:$8 sps:$4 sm:$0xff]  }
  0x1b   : > { %v221_v4 = vsel %vm3742_vm2, %v216_v59, %v220_v43  ;;  %v1200_v13 = vor.u32 %v1199_v6, %v1196_v5  ;;  %v3398_v20 = vld [vmem:[%s4519_s1 + $0x10] ss:$8 sps:$4 sm:$0xff]   ;;  %v3780_v22 = vld [vmem:[%s3685_s10 + $0x14] sm:$0x1]  ;;  %v2924_v49 = vld [vmem:[%s3685_s10 + $0x20] sm:$0xf] }
  0x1c   : > { %444 = vmatpush1.bf16.msra.mxu1 %v3378_v23  ;;  %1415 = vmatpush1.bf16.msra.mxu0 %v3379_v24  ;;  %v235_v8 = vsel %vm3742_vm2, %v230_v63, %v234_v46  ;;  %v1187_v15 = vrot.slane %v1186_v9, 4  ;;  %v3777_v21 = vld [vmem:[%s3685_s10 + $0x18] sm:$0xf]  ;;  %v237_v23 = vshrl.u32 %v3768_v17, 16  ;;  %v3403_v34 = vld [vmem:[%s4519_s1 + $0x294] ss:$8 sps:$4 sm:$0xff]  }
  0x1d   : > { %445 = vmatprep.subr.bf16.mxu1 %v3380_v25  ;;  %1416 = vmatprep.subr.bf16.mxu0 %v3382_v26  ;;  %v2790_v11 = vcombine.low %v221_v4, %v235_v8  ;;  %v1201_v18 = vrot.slane %v1200_v13, 4  ;;  %v3786_v25 = vld [vmem:[%s3685_s10 + $0x1c] sm:$0x1]  ;;  %v240_v26 = vshll.u32 %v3768_v17, 16  ;;  %v251_v32 = vshrl.u32 %v3777_v21, 16  ;;  %s4527_s17 = smov (!%p167_p4, %s2772_s17), 15 }
  0x1e   : > { %v1192_v24 = vsel %vm3742_vm2, %v1187_v15, %v1191_v10  ;;  %v239_v35 = vrot.slane %v237_v23, 4  ;;  %v254_v36 = vshll.u32 %v3777_v21, 16  ;;  %v260_v37 = vshll.u32 %v3786_v25, 16  ;;  %v3401_v43 = vld [vmem:[%s4519_s1 + $0x290] ss:$8 sps:$4 sm:$0xff]   ;;  %s2773_s13 = sshll.u32 %s4527_s17, 2 }
  0x1f   : > { %v1206_v33 = vsel %vm3742_vm2, %v1201_v18, %v1205_v14  ;;  %v253_v41 = vrot.slane %v251_v32, 4  ;;  %v2922_v46 = vld [vmem:[%s3685_s10 + $0x18] sm:$0xf]  ;;  %v3811_v50 = vld [vmem:[%s3685_s10 + $0x24] sm:$0x1]  ;;  %v1222_v59 = vshrl.u32 %v2924_v49, 16  ;;  %s4487_s22 = scalar_lea.vmem %s4521_s3, %s2773_s13 }
  0x20   : > { %446 = vmatpush1.bf16.msra.mxu1 %v3384_v29  ;;  %1417 = vmatpush1.bf16.msra.mxu0 %v3385_v38  ;;  %v246_v29 = vshll.u32 %v3780_v22, 16  ;;  %v2950_v38 = vcombine.low %v1192_v24, %v1206_v33  ;;  %v256_v44 = vrot.slane %v254_v36, 5  ;;  %v262_v45 = vrot.slane %v260_v37, 5  ;;  %v3404_v57 = vld [vmem:[%s4519_s1 + $0x20] ss:$8 sps:$4 sm:$0xff]  }
  0x21   : > { %447 = vmatprep.subr.bf16.mxu1 %v3386_v39  ;;  %1418 = vmatprep.subr.bf16.mxu0 %v3388_v42  ;;  %v242_v39 = vrot.slane %v240_v26, 5  ;;  %v3406_v42 = vld [vmem:[%s4519_s1 + $0x24] ss:$8 sps:$4 sm:$0xff]   ;;  %v1208_v52 = vshrl.u32 %v2922_v46, 16  ;;  %v1211_v54 = vshll.u32 %v2922_v46, 16  ;;  %v1225_v60 = vshll.u32 %v2924_v49, 16 }
  0x22   : > { %v248_v40 = vrot.slane %v246_v29, 5  ;;  %v257_v56 = vor.u32 %v256_v44, %v253_v41  ;;  %v3409_v1 = vld [vmem:[%s4519_s1 + $0x2a4] ss:$8 sps:$4 sm:$0xff]   ;;  %v1224_v4 = vrot.slane %v1222_v59, 4  ;;  %v3407_v6 = vld [vmem:[%s4519_s1 + $0x2a0] ss:$8 sps:$4 sm:$0xff]  }
  0x23   : > { %v1210_v62 = vrot.slane %v1208_v52, 4  ;;  %v1213_v63 = vrot.slane %v1211_v54, 5  ;;  %v1227_v5 = vrot.slane %v1225_v60, 5  ;;  %v3410_v14 = vld [vmem:[%s4519_s1 + $0x30] ss:$8 sps:$4 sm:$0xff]   ;;  %vm2701_vm6 = vcmask 519168  }
  0x24   : > { %448 = vmatpush1.bf16.msra.mxu1 %v3390_v47  ;;  %1419 = vmatpush1.bf16.msra.mxu0 %v3391_v48  ;;  %v3807_v47 = vld [vmem:[%s3685_s10 + $0x1c] sm:$0x1]  ;;  %v243_v48 = vor.u32 %v242_v39, %v239_v35  ;;  %v258_v3 = vrot.slane %v257_v56, 4  ;;  %v3845_v23 = vld [vmem:[%s3685_s10 + $0x24] sm:$0x1] }
  0x25   : > { %610 = vmatprep.subr.bf16.mxu1 %v3394_v0  ;;  %1662 = vmatprep.subr.bf16.mxu0 %v3397_v7  ;;  %v1217_v58 = vshll.u32 %v3807_v47, 16  ;;  %v1231_v0 = vshll.u32 %v3811_v50, 16  ;;  %v1214_v8 = vor.u32 %v1213_v63, %v1210_v62  ;;  %v1228_v13 = vor.u32 %v1227_v5, %v1224_v4  ;;  %v3415_v15 = vld [vmem:[%s4519_s1 + $0x2b4] ss:$8 sps:$4 sm:$0xff]   ;;  %v3413_v29 = vld [vmem:[%s4519_s1 + $0x2b0] ss:$8 sps:$4 sm:$0xff]  }
  0x26   : > { %v244_v61 = vrot.slane %v243_v48, 4  ;;  %v3852_v32 = vld [vmem:[%s3685_s10 + $0x2c] sm:$0x1]  ;;  %v3416_v44 = vld [vmem:[%s4519_s1 + $0x40] ss:$8 sps:$4 sm:$0xff]  }
  0x27   : > { %466 = vmatmul.mubr.bf16.vlgmr.msra.gmra.mrb[0].mxu1 %v2790_v11  ;;  %1437 = vmatmul.mubr.bf16.vlgmr.msra.gmra.mrb[0].mxu0 %v2950_v38  ;;  %v1219_v9 = vrot.slane %v1217_v58, 5  ;;  %v1233_v10 = vrot.slane %v1231_v0, 5  ;;  %v3412_v11 = vld [vmem:[%s4519_s1 + $0x34] ss:$8 sps:$4 sm:$0xff]   ;;  %v1229_v26 = vrot.slane %v1228_v13, 4  ;;  %v288_v39 = vshll.u32 %v3852_v32, 16 }
  0x28   : > { %611 = vmatpush1.bf16.msra.mxu1 %v3392_v12  ;;  %475 = vmatprep.mubr.bf16.mxu1 %v3580_v2  ;;  %v249_v7 = vsel %vm3742_vm2, %v244_v61, %v248_v40  ;;  %v263_v12 = vsel %vm3742_vm2, %v258_v3, %v262_v45  ;;  %v3418_v49 = vld [vmem:[%s4519_s1 + $0x44] ss:$8 sps:$4 sm:$0xff]   ;;  %v2926_v52 = vld [vmem:[%s3685_s10 + $0x28] sm:$0xf]  ;;  %v3876_v58 = vld [vmem:[%s3685_s10 + $0x34] sm:$0x1] }
  0x29   : > { %612 = vmatprep.subr.bf16.mxu1 %v3400_v16  ;;  %1663 = vmatpush1.bf16.msra.mxu0 %v3395_v19  ;;  %v3839_v16 = vld [vmem:[%s3685_s10 + $0x20] sm:$0xf]  ;;  %v2791_v18 = vcombine.low %v249_v7, %v263_v12  ;;  %v1215_v19 = vrot.slane %v1214_v8, 4  ;;  %v1234_v40 = vsel %vm3742_vm2, %v1229_v26, %v1233_v10  ;;  %v290_v48 = vrot.slane %v288_v39, 5  ;;  %v3872_v56 = vld [vmem:[%s3685_s10 + $0x2c] sm:$0x1] }
  0x2a   : > { %1664 = vmatprep.subr.bf16.mxu0 %v3403_v34  ;;  %1446 = vmatprep.mubr.bf16.mxu0 %v3580_v2  ;;  %v265_v24 = vshrl.u32 %v3839_v16, 16  ;;  %v268_v33 = vshll.u32 %v3839_v16, 16  ;;  %v274_v34 = vshll.u32 %v3845_v23, 16  ;;  %v1236_v60 = vshrl.u32 %v2926_v52, 16  ;;  %v3419_v63 = vld [vmem:[%s4519_s1 + $0x2c0] ss:$8 sps:$4 sm:$0xff]  }
  0x2b   : > { %v1220_v36 = vsel %vm3742_vm2, %v1215_v19, %v1219_v9  ;;  %v1239_v61 = vshll.u32 %v2926_v52, 16  ;;  %v1245_v62 = vshll.u32 %v3872_v56, 16  ;;  %v1259_v4 = vshll.u32 %v3876_v58, 16  ;;  %v3421_v5 = vld [vmem:[%s4519_s1 + $0x2c4] ss:$8 sps:$4 sm:$0xff]  }
  0x2c   : > { %613 = vmatpush1.bf16.msra.mxu1 %v3398_v20  ;;  %v3842_v20 = vld [vmem:[%s3685_s10 + $0x28] sm:$0xf]  ;;  %v267_v37 = vrot.slane %v265_v24, 4  ;;  %v270_v41 = vrot.slane %v268_v33, 5  ;;  %v2951_v45 = vcombine.low %v1220_v36, %v1234_v40  ;;  %v1238_v7 = vrot.slane %v1236_v60, 4 }
  0x2d   : > { %614 = vmatprep.subr.bf16.mxu1 %v3406_v42  ;;  %1665 = vmatpush1.bf16.msra.mxu0 %v3401_v43  ;;  %v279_v35 = vshrl.u32 %v3842_v20, 16  ;;  %v282_v38 = vshll.u32 %v3842_v20, 16  ;;  %v276_v42 = vrot.slane %v274_v34, 5  ;;  %v1241_v8 = vrot.slane %v1239_v61, 5  ;;  %v3424_v19 = vld [vmem:[%s4519_s1 + $0x54] ss:$8 sps:$4 sm:$0xff]  }
  0x2e   : > { %1666 = vmatprep.subr.bf16.mxu0 %v3409_v1  ;;  %v271_v54 = vor.u32 %v270_v41, %v267_v37  ;;  %v1247_v9 = vrot.slane %v1245_v62, 5  ;;  %v1261_v13 = vrot.slane %v1259_v4, 5  ;;  %v3425_v24 = vld [vmem:[%s4519_s1 + $0x2d0] ss:$8 sps:$4 sm:$0xff]   ;;  %v3427_v26 = vld [vmem:[%s4519_s1 + $0x2d4] ss:$8 sps:$4 sm:$0xff]  }
  0x2f   : > { %476 = vmatmul.mubr.bf16.gmra.mrb[4].mxu1 %v2791_v18  ;;  %v281_v43 = vrot.slane %v279_v35, 4  ;;  %v284_v46 = vrot.slane %v282_v38, 5  ;;  %1447 = vmatmul.mubr.bf16.gmra.mrb[4].mxu0 %v2951_v45  ;;  %v1242_v18 = vor.u32 %v1241_v8, %v1238_v7  ;;  %v3904_v34 = vld [vmem:[%s3685_s10 + $0x30] sm:$0xf]  ;;  %v3907_v35 = vld [vmem:[%s3685_s10 + $0x38] sm:$0xf] }
  0x30   : > { %615 = vmatpush1.bf16.msra.mxu1 %v3404_v57  ;;  %485 = vmatprep.mubr.bf16.mxu1 %v3580_v2  ;;  %v2928_v57 = vld [vmem:[%s3685_s10 + $0x30] sm:$0xf]  ;;  %v272_v0 = vrot.slane %v271_v54, 4  ;;  %v3910_v36 = vld [vmem:[%s3685_s10 + $0x34] sm:$0x1]  ;;  %v293_v39 = vshrl.u32 %v3904_v34, 16 }
  0x31   : > { %616 = vmatprep.subr.bf16.mxu1 %v3412_v11  ;;  %1667 = vmatpush1.bf16.msra.mxu0 %v3407_v6  ;;  %v285_v59 = vor.u32 %v284_v46, %v281_v43  ;;  %v1250_v1 = vshrl.u32 %v2928_v57, 16  ;;  %v1253_v3 = vshll.u32 %v2928_v57, 16  ;;  %v1243_v37 = vrot.slane %v1242_v18, 4  ;;  %v3913_v38 = vld [vmem:[%s3685_s10 + $0x3c] sm:$0x1] }
  0x32   : > { %1668 = vmatprep.subr.bf16.mxu0 %v3415_v15  ;;  %1456 = vmatprep.mubr.bf16.mxu0 %v3580_v2  ;;  %v277_v10 = vsel %vm3742_vm2, %v272_v0, %v276_v42  ;;  %v296_v40 = vshll.u32 %v3904_v34, 16  ;;  %v302_v41 = vshll.u32 %v3910_v36, 16  ;;  %v307_v43 = vshrl.u32 %v3907_v35, 16  ;;  %v3428_v54 = vld [vmem:[%s4519_s1 + $0x60] ss:$8 sps:$4 sm:$0xff]  }
  0x33   : > { %v286_v6 = vrot.slane %v285_v59, 4  ;;  %v1252_v11 = vrot.slane %v1250_v1, 4  ;;  %v1255_v12 = vrot.slane %v1253_v3, 5  ;;  %v316_v45 = vshll.u32 %v3913_v38, 16  ;;  %v3430_v62 = vld [vmem:[%s4519_s1 + $0x64] ss:$8 sps:$4 sm:$0xff]  }
  0x34   : > { %617 = vmatpush1.bf16.msra.mxu1 %v3410_v14  ;;  %v3422_v14 = vld [vmem:[%s4519_s1 + $0x50] ss:$8 sps:$4 sm:$0xff]   ;;  %v1248_v46 = vsel %vm3742_vm2, %v1243_v37, %v1247_v9  ;;  %v304_v52 = vrot.slane %v302_v41, 5  ;;  %v309_v59 = vrot.slane %v307_v43, 4  ;;  %v3934_v3 = vld [vmem:[%s3685_s10 + $0x3c] sm:$0x1] }
  0x35   : > { %618 = vmatprep.subr.bf16.mxu1 %v3418_v49  ;;  %1669 = vmatpush1.bf16.msra.mxu0 %v3413_v29  ;;  %v291_v15 = vsel %vm3742_vm2, %v286_v6, %v290_v48  ;;  %v1256_v33 = vor.u32 %v1255_v12, %v1252_v11  ;;  %v295_v48 = vrot.slane %v293_v39, 4  ;;  %v298_v49 = vrot.slane %v296_v40, 5  ;;  %v2930_v1 = vld [vmem:[%s3685_s10 + $0x38] sm:$0xf]  ;;  %v2932_v4 = vld [vmem:[%s3685_s10 + $0x40] sm:$0xf] }
  0x36   : > { %1670 = vmatprep.subr.bf16.mxu0 %v3421_v5  ;;  %v2792_v29 = vcombine.low %v277_v10, %v291_v15  ;;  %v318_v61 = vrot.slane %v316_v45, 5  ;;  %v3938_v6 = vld [vmem:[%s3685_s10 + $0x44] sm:$0x1]  ;;  %v1264_v7 = vshrl.u32 %v2930_v1, 16  ;;  %v1267_v8 = vshll.u32 %v2930_v1, 16 }
  0x37   : > { %v1257_v42 = vrot.slane %v1256_v33, 4  ;;  %v299_v0 = vor.u32 %v298_v49, %v295_v48  ;;  %v1273_v9 = vshll.u32 %v3934_v3, 16  ;;  %v1278_v11 = vshrl.u32 %v2932_v4, 16  ;;  %v3434_v37 = vld [vmem:[%s4519_s1 + $0x70] ss:$8 sps:$4 sm:$0xff]  }
  0x38   : > { %619 = vmatpush1.bf16.msra.mxu1 %v3416_v44  ;;  %v310_v44 = vshll.u32 %v3907_v35, 16  ;;  %v1281_v12 = vshll.u32 %v2932_v4, 16  ;;  %v1266_v18 = vrot.slane %v1264_v7, 4  ;;  %v3439_v48 = vld [vmem:[%s4519_s1 + $0x2f4] ss:$8 sps:$4 sm:$0xff]  }
  0x39   : > { %1671 = vmatpush1.bf16.msra.mxu0 %v3419_v63  ;;  %620 = vmatprep.subr.bf16.mxu1 %v3424_v19  ;;  %v1262_v57 = vsel %vm3742_vm2, %v1257_v42, %v1261_v13  ;;  %v300_v10 = vrot.slane %v299_v0, 4  ;;  %v1287_v13 = vshll.u32 %v3938_v6, 16  ;;  %v1269_v19 = vrot.slane %v1267_v8, 5  ;;  %v3436_v42 = vld [vmem:[%s4519_s1 + $0x74] ss:$8 sps:$4 sm:$0xff]  }
  0x3a   : > { %1672 = vmatprep.subr.bf16.mxu0 %v3427_v26  ;;  %486 = vmatmul.mubr.bf16.gmra.mrb[8].mxu1 %v2792_v29  ;;  %v312_v60 = vrot.slane %v310_v44, 5  ;;  %v2952_v63 = vcombine.low %v1248_v46, %v1262_v57  ;;  %v1280_v29 = vrot.slane %v1278_v11, 4  ;;  %v1283_v33 = vrot.slane %v1281_v12, 5  ;;  %v3437_v46 = vld [vmem:[%s4519_s1 + $0x2f0] ss:$8 sps:$4 sm:$0xff]  }
  0x3b   : > { %495 = vmatprep.mubr.bf16.mxu1 %v3580_v2  ;;  %v305_v26 = vsel %vm3742_vm2, %v300_v10, %v304_v52  ;;  %v1270_v40 = vor.u32 %v1269_v19, %v1266_v18  ;;  %v1275_v41 = vrot.slane %v1273_v9, 5  ;;  %v1289_v45 = vrot.slane %v1287_v13, 5  ;;  %v3443_v52 = vld [vmem:[%s4519_s1 + $0x104] ss:$8 sps:$4 sm:$0xff]   ;;  %v2970_v57 = vld [vmem:[%s3685_s10 + $0x8] sm:$0xe] }
  0x3c   : > { %621 = vmatpush1.bf16.msra.mxu1 %v3422_v14  ;;  %v313_v5 = vor.u32 %v312_v60, %v309_v59  ;;  %1457 = vmatmul.mubr.bf16.gmra.mrb[8].mxu0 %v2952_v63  ;;  %v3431_v14 = vld [vmem:[%s4519_s1 + $0x2e0] ss:$8 sps:$4 sm:$0xff]   ;;  %v1284_v44 = vor.u32 %v1283_v33, %v1280_v29  ;;  %v2971_v59 = vld [vmem:[%s3685_s10 + $0x10] sm:$0xe]  ;;  %v1519_v60 = vrot.slane %v3737_v51, 5  ;;  %v2978_v0 = vrot.slane %v2970_v57, 9 }
  0x3d   : > { %1673 = vmatpush1.bf16.msra.mxu0 %v3425_v24  ;;  %622 = vmatprep.subr.bf16.mxu1 %v3430_v62  ;;  %v3433_v24 = vld [vmem:[%s4519_s1 + $0x2e4] ss:$8 sps:$4 sm:$0xff]   ;;  %v1271_v49 = vrot.slane %v1270_v40, 4  ;;  %v1523_v62 = vrot.slane %v3747_v55, 5  ;;  %v2979_v1 = vrot.slane %v2971_v59, 9  ;;  %v2810_v55 = vcombine.low %v3700_v27, %v3703_v28 }
  0x3e   : > { %1466 = vmatprep.mubr.bf16.mxu0 %v3580_v2  ;;  %v314_v15 = vrot.slane %v313_v5, 4  ;;  %1674 = vmatprep.subr.bf16.mxu0 %v3433_v24  ;;  %v3446_v51 = vld [vmem:[%s4519_s1 + $0x304] ss:$8 sps:$4 sm:$0xff]   ;;  %v3441_v7 = vld [vmem:[%s4519_s1 + $0x100] ss:$8 sps:$4 sm:$0xff]   ;;  %v1520_v8 = vsel %vm3982_vm5, %v2978_v0, %v1519_v60  ;;  %v1527_v13 = vrot.slane %v3807_v47, 5  ;;  %v2811_v29 = vcombine.low %v3768_v17, %v3777_v21 }
  0x3f   : > { %v1524_v9 = vsel %vm3982_vm5, %v2979_v1, %v1523_v62  ;;  %v3449_v10 = vld [vmem:[%s4519_s1 + $0x114] ss:$8 sps:$4 sm:$0xff]   ;;  %v2972_v11 = vld [vmem:[%s3685_s10 + $0x18] sm:$0xe]  ;;  %v2973_v27 = vld [vmem:[%s3685_s10 + $0x20] sm:$0xe] }
  0x40   : > { %623 = vmatpush1.bf16.msra.mxu1 %v3428_v54  ;;  %v319_v39 = vsel %vm3742_vm2, %v314_v15, %v318_v61  ;;  %v1285_v54 = vrot.slane %v1284_v44, 4  ;;  %v1276_v61 = vsel %vm3742_vm2, %v1271_v49, %v1275_v41  ;;  %v3002_v28 = vcombine.low %v1520_v8, %v1524_v9  ;;  %v3447_v12 = vld [vmem:[%s4519_s1 + $0x110] ss:$8 sps:$4 sm:$0xff]   ;;  %v3452_v24 = vld [vmem:[%s4519_s1 + $0x314] ss:$8 sps:$4 sm:$0xff]  }
  0x41   : > { %v2793_v43 = vcombine.low %v305_v26, %v319_v39  ;;  %1675 = vmatpush1.bf16.msra.mxu0 %v3431_v14  ;;  %624 = vmatprep.subr.bf16.mxu1 %v3436_v42  ;;  %v3444_v14 = vld [vmem:[%s4519_s1 + $0x300] ss:$8 sps:$4 sm:$0xff]   ;;  %v2980_v15 = vrot.slane %v2972_v11, 9  ;;  %v2981_v18 = vrot.slane %v2973_v27, 9  ;;  %v1531_v19 = vrot.slane %v3811_v50, 5 }
  0x42   : > { %1676 = vmatprep.subr.bf16.mxu0 %v3439_v48  ;;  %v1290_v63 = vsel %vm3742_vm2, %v1285_v54, %v1289_v45  ;;  %v3456_v26 = vld [vmem:[%s4519_s1 + $0x124] ss:$8 sps:$4 sm:$0xff]   ;;  %v3450_v47 = vld [vmem:[%s4519_s1 + $0x310] ss:$8 sps:$4 sm:$0xff]   ;;  %v3454_v50 = vld [vmem:[%s4519_s1 + $0x120] ss:$8 sps:$4 sm:$0xff]   ;;  %v2812_v54 = vcombine.low %v3839_v16, %v3842_v20 }
  0x43   : > { %496 = vmatmul.mubr.bf16.gmra.mrb[12].mxu1 %v2793_v43  ;;  %v2953_v4 = vcombine.low %v1276_v61, %v1290_v63  ;;  %v3459_v33 = vld [vmem:[%s4519_s1 + $0x324] ss:$8 sps:$4 sm:$0xff]   ;;  %v1532_v39 = vsel %vm3982_vm5, %v2981_v18, %v1531_v19  ;;  %v3462_v17 = vld [vmem:[%s4519_s1 + $0x134] ss:$8 sps:$4 sm:$0xff]   ;;  %v2974_v21 = vld [vmem:[%s3685_s10 + $0x28] sm:$0xe] }
  0x44   : > { %625 = vmatpush1.bf16.msra.mxu1 %v3434_v37  ;;  %642 = vmatprep.mubr.bf16.mxu1 %v3580_v2  ;;  %v1528_v37 = vsel %vm3982_vm5, %v2980_v15, %v1527_v13  ;;  %v2975_v40 = vld [vmem:[%s3685_s10 + $0x30] sm:$0xe]  ;;  %v3457_v42 = vld [vmem:[%s4519_s1 + $0x320] ss:$8 sps:$4 sm:$0xff]   ;;  %v1535_v44 = vrot.slane %v3872_v56, 5  ;;  %v1539_v49 = vrot.slane %v3876_v58, 5 }
  0x45   : > { %1677 = vmatpush1.bf16.msra.mxu0 %v3437_v46  ;;  %855 = vmatprep.subr.bf16.mxu1 %v3443_v52  ;;  %v3003_v41 = vcombine.low %v1528_v37, %v1532_v39  ;;  %v3460_v43 = vld [vmem:[%s4519_s1 + $0x130] ss:$8 sps:$4 sm:$0xff]   ;;  %v3465_v45 = vld [vmem:[%s4519_s1 + $0x334] ss:$8 sps:$4 sm:$0xff]   ;;  %v2982_v46 = vrot.slane %v2974_v21, 9  ;;  %v2983_v48 = vrot.slane %v2975_v40, 9 }
  0x46   : > { %1881 = vmatprep.subr.bf16.mxu0 %v3446_v51  ;;  %1467 = vmatmul.mubr.bf16.gmra.mrb[12].mxu0 %v2953_v4  ;;  %v3469_v52 = vld [vmem:[%s4519_s1 + $0x144] ss:$8 sps:$4 sm:$0xff]   ;;  %v3463_v56 = vld [vmem:[%s4519_s1 + $0x330] ss:$8 sps:$4 sm:$0xff]   ;;  %v3467_v57 = vld [vmem:[%s4519_s1 + $0x140] ss:$8 sps:$4 sm:$0xff]  }
  0x47   : > { %1694 = vmatprep.mubr.bf16.mxu0 %v3580_v2  ;;  %v712_v58 = vrot.slane %v3709_v30, 5  ;;  %v716_v59 = vrot.slane %v3712_v31, 5  ;;  %v3472_v60 = vld [vmem:[%s4519_s1 + $0x344] ss:$8 sps:$4 sm:$0xff]   ;;  %v3475_v61 = vld [vmem:[%s4519_s1 + $0x154] ss:$8 sps:$4 sm:$0xff]   ;;  %v1536_v16 = vsel %vm3982_vm5, %v2982_v46, %v1535_v44  ;;  %v1540_v30 = vsel %vm3982_vm5, %v2983_v48, %v1539_v49 }
  0x48   : > { %v2976_v31 = vld [vmem:[%s3685_s10 + $0x38] sm:$0xe]  ;;  %v2977_v20 = vld [vmem:[%s3685_s10 + $0x40] sm:$0xe]  ;;  %v684_v63 = vld [vmem:[%s3685_s10 + $0x8] sm:$0xe] }
  0x49   : > { %v683_v62 = vld [vmem:[%s3685_s10] sm:$0xe]  ;;  %v1543_v51 = vrot.slane %v3934_v3, 5  ;;  %v2831_v4 = vrot.slane %v684_v63, 9  ;;  %v3478_v9 = vld [vmem:[%s4519_s1 + $0x354] ss:$8 sps:$4 sm:$0xff]  }
  0x4a   : > { %v2830_v0 = vrot.slane %v683_v62, 9  ;;  %v3470_v1 = vld [vmem:[%s4519_s1 + $0x340] ss:$8 sps:$4 sm:$0xff]   ;;  %v2984_v3 = vrot.slane %v2976_v31, 9  ;;  %v1547_v11 = vrot.slane %v3938_v6, 5  ;;  %v720_v15 = vrot.slane %v3780_v22, 5 }
  0x4b   : > { %643 = vmatmul.mubr.bf16.vlgmr.msra.gmra.mrb[0].mxu1 %v2810_v55  ;;  %v3004_v55 = vcombine.low %v1536_v16, %v1540_v30  ;;  %v717_v27 = vsel %vm3982_vm5, %v2831_v4, %v716_v59  ;;  %v3476_v13 = vld [vmem:[%s4519_s1 + $0x350] ss:$8 sps:$4 sm:$0xff]   ;;  %v724_v6 = vrot.slane %v3786_v25, 5  ;;  %v3480_v18 = vld [vmem:[%s4519_s1 + $0x160] ss:$8 sps:$4 sm:$0xff]   ;;  %v732_v44 = vrot.slane %v3852_v32, 5 }
  0x4c   : > { %856 = vmatpush1.bf16.msra.mxu1 %v3441_v7  ;;  %652 = vmatprep.mubr.bf16.mxu1 %v3580_v2  ;;  %v3473_v7 = vld [vmem:[%s4519_s1 + $0x150] ss:$8 sps:$4 sm:$0xff]   ;;  %v713_v8 = vsel %vm3982_vm5, %v2830_v0, %v712_v58  ;;  %v3488_v19 = vld [vmem:[%s4519_s1 + $0x174] ss:$8 sps:$4 sm:$0xff]   ;;  %v3494_v40 = vld [vmem:[%s4519_s1 + $0x184] ss:$8 sps:$4 sm:$0xff]  }
  0x4d   : > { %857 = vmatprep.subr.bf16.mxu1 %v3449_v10  ;;  %v2985_v10 = vrot.slane %v2977_v20, 9  ;;  %v686_v25 = vld [vmem:[%s3685_s10 + $0x18] sm:$0xe]  ;;  %v3498_v32 = vld [vmem:[%s4519_s1 + $0x384] ss:$8 sps:$4 sm:$0xff]  }
  0x4e   : > { %1695 = vmatmul.mubr.bf16.vlgmr.msra.gmra.mrb[0].mxu0 %v3002_v28  ;;  %v3482_v28 = vld [vmem:[%s4519_s1 + $0x164] ss:$8 sps:$4 sm:$0xff]   ;;  %v3486_v37 = vld [vmem:[%s4519_s1 + $0x170] ss:$8 sps:$4 sm:$0xff]   ;;  %v3496_v59 = vld [vmem:[%s4519_s1 + $0x380] ss:$8 sps:$4 sm:$0xff]  }
  0x4f   : > { %1882 = vmatpush1.bf16.msra.mxu0 %v3444_v14  ;;  %1704 = vmatprep.mubr.bf16.mxu0 %v3580_v2  ;;  %v2813_v14 = vcombine.low %v3904_v34, %v3907_v35  ;;  %v1544_v34 = vsel %vm3982_vm5, %v2984_v3, %v1543_v51  ;;  %v1548_v22 = vsel %vm3982_vm5, %v2985_v10, %v1547_v11  ;;  %v3489_v48 = vld [vmem:[%s4519_s1 + $0x370] ss:$8 sps:$4 sm:$0xff]   ;;  %v3504_v16 = vld [vmem:[%s4519_s1 + $0x394] ss:$8 sps:$4 sm:$0xff]   ;;  %v3507_v30 = vld [vmem:[%s4519_s1 + $0x1a4] ss:$8 sps:$4 sm:$0xff]  }
  0x50   : > { %858 = vmatpush1.bf16.msra.mxu1 %v3447_v12  ;;  %1883 = vmatprep.subr.bf16.mxu0 %v3452_v24  ;;  %v2854_v12 = vcombine.low %v713_v8, %v717_v27  ;;  %v685_v24 = vld [vmem:[%s3685_s10 + $0x10] sm:$0xe]  ;;  %v690_v20 = vld [vmem:[%s3685_s10 + $0x38] sm:$0xe]  ;;  %v3514_v0 = vld [vmem:[%s4519_s1 + $0x1b4] ss:$8 sps:$4 sm:$0xff]  }
  0x51   : > { %859 = vmatprep.subr.bf16.mxu1 %v3456_v26  ;;  %v2832_v35 = vrot.slane %v685_v24, 9  ;;  %v3485_v26 = vld [vmem:[%s4519_s1 + $0x364] ss:$8 sps:$4 sm:$0xff]   ;;  %v689_v31 = vld [vmem:[%s3685_s10 + $0x30] sm:$0xe]  ;;  %v2837_v63 = vrot.slane %v690_v20, 9 }
  0x52   : > { %v2836_v62 = vrot.slane %v689_v31, 9  ;;  %v3511_v51 = vld [vmem:[%s4519_s1 + $0x3a4] ss:$8 sps:$4 sm:$0xff]   ;;  %v3512_v8 = vld [vmem:[%s4519_s1 + $0x1b0] ss:$8 sps:$4 sm:$0xff]  }
  0x53   : > { %653 = vmatmul.mubr.bf16.gmra.mrb[4].mxu1 %v2811_v29  ;;  %1884 = vmatpush1.bf16.msra.mxu0 %v3450_v47  ;;  %v2833_v47 = vrot.slane %v686_v25, 9  ;;  %v721_v29 = vsel %vm3982_vm5, %v2832_v35, %v720_v15  ;;  %v3517_v3 = vld [vmem:[%s4519_s1 + $0x3b4] ss:$8 sps:$4 sm:$0xff]   ;;  %v3520_v10 = vld [vmem:[%s4519_s1 + $0x1c4] ss:$8 sps:$4 sm:$0xff]  }
  0x54   : > { %860 = vmatpush1.bf16.msra.mxu1 %v3454_v50  ;;  %662 = vmatprep.mubr.bf16.mxu1 %v3580_v2  ;;  %v3005_v50 = vcombine.low %v1544_v34, %v1548_v22  ;;  %v3066_v11 = vld [vmem:[%s3685_s10 + $0x10] sm:$0xf]  ;;  %v4234_v24 = vld [vmem:[%s3685_s10 + $0x1c] sm:$0x1]  ;;  %v3535_v20 = vld [vmem:[%s4519_s1 + $0x3e0] ss:$8 sps:$4 sm:$0xff]  }
  0x55   : > { %861 = vmatprep.subr.bf16.mxu1 %v3462_v17  ;;  %1885 = vmatprep.subr.bf16.mxu0 %v3459_v33  ;;  %v3483_v33 = vld [vmem:[%s4519_s1 + $0x360] ss:$8 sps:$4 sm:$0xff]   ;;  %v725_v39 = vsel %vm3982_vm5, %v2833_v47, %v724_v6  ;;  %v3491_v17 = vld [vmem:[%s4519_s1 + $0x374] ss:$8 sps:$4 sm:$0xff]   ;;  %v3515_v27 = vld [vmem:[%s4519_s1 + $0x3b0] ss:$8 sps:$4 sm:$0xff]  }
  0x56   : > { %1705 = vmatmul.mubr.bf16.gmra.mrb[4].mxu0 %v3003_v41  ;;  %v2855_v21 = vcombine.low %v721_v29, %v725_v39  ;;  %v728_v41 = vrot.slane %v3845_v23, 5  ;;  %v3501_v23 = vld [vmem:[%s4519_s1 + $0x194] ss:$8 sps:$4 sm:$0xff]   ;;  %v1987_v15 = vshrl.u32 %v3066_v11, 16  ;;  %v1990_v6 = vshll.u32 %v3066_v11, 16 }
  0x57   : > { %1886 = vmatpush1.bf16.msra.mxu0 %v3457_v42  ;;  %1714 = vmatprep.mubr.bf16.mxu0 %v3580_v2  ;;  %v3492_v42 = vld [vmem:[%s4519_s1 + $0x180] ss:$8 sps:$4 sm:$0xff]  }
  0x58   : > { %862 = vmatpush1.bf16.msra.mxu1 %v3460_v43  ;;  %1887 = vmatprep.subr.bf16.mxu0 %v3465_v45  ;;  %v687_v43 = vld [vmem:[%s3685_s10 + $0x20] sm:$0xe]  ;;  %v688_v45 = vld [vmem:[%s3685_s10 + $0x28] sm:$0xe]  ;;  %v1989_v22 = vrot.slane %v1987_v15, 4  ;;  %v1992_v25 = vrot.slane %v1990_v6, 5 }
  0x59   : > { %863 = vmatprep.subr.bf16.mxu1 %v3469_v52  ;;  %v2834_v46 = vrot.slane %v687_v43, 9  ;;  %v2835_v49 = vrot.slane %v688_v45, 9  ;;  %v3522_v47 = vld [vmem:[%s4519_s1 + $0x3c0] ss:$8 sps:$4 sm:$0xff]   ;;  %v3548_v6 = vld [vmem:[%s4519_s1 + $0x410] ss:$8 sps:$4 sm:$0xff]  }
  0x5a   : > { %v3070_v39 = vld [vmem:[%s3685_s10 + $0x20] sm:$0xf] }
  0x5b   : > { %663 = vmatmul.mubr.bf16.gmra.mrb[8].mxu1 %v2812_v54  ;;  %1888 = vmatpush1.bf16.msra.mxu0 %v3463_v56  ;;  %v4155_v52 = vsel %vm3982_vm5, %v2834_v46, %v728_v41  ;;  %v3495_v56 = vld [vmem:[%s3685_s10 + $0x10] ss:$8 sps:$4 sm:$0xff]   ;;  %v733_v54 = vsel %vm3982_vm5, %v2835_v49, %v732_v44  ;;  %v3533_v41 = vld [vmem:[%s4519_s1 + $0x1e4] ss:$8 sps:$4 sm:$0xff]   ;;  %v2015_v45 = vshrl.u32 %v3070_v39, 16  ;;  %v2018_v46 = vshll.u32 %v3070_v39, 16 }
  0x5c   : > { %864 = vmatpush1.bf16.msra.mxu1 %v3467_v57  ;;  %672 = vmatprep.mubr.bf16.mxu1 %v3580_v2  ;;  %v3499_v57 = vld [vmem:[%s4519_s1 + $0x190] ss:$8 sps:$4 sm:$0xff]   ;;  %v2856_v58 = vcombine.low %v4155_v52, %v733_v54  ;;  %v3537_v49 = vld [vmem:[%s4519_s1 + $0x3e4] ss:$8 sps:$4 sm:$0xff]   ;;  %v3080_v39 = vld [vmem:[%s3685_s10 + $0x48] sm:$0xf] }
  0x5d   : > { %865 = vmatprep.subr.bf16.mxu1 %v3475_v61  ;;  %1889 = vmatprep.subr.bf16.mxu0 %v3472_v60  ;;  %v736_v60 = vrot.slane %v3910_v36, 5  ;;  %v740_v61 = vrot.slane %v3913_v38, 5  ;;  %v3502_v36 = vld [vmem:[%s4519_s1 + $0x390] ss:$8 sps:$4 sm:$0xff]   ;;  %v3505_v38 = vld [vmem:[%s4519_s1 + $0x1a0] ss:$8 sps:$4 sm:$0xff]  }
  0x5e   : > { %1715 = vmatmul.mubr.bf16.gmra.mrb[8].mxu0 %v3004_v55  ;;  %v3508_v55 = vld [vmem:[%s3685_s10 + $0x20] ss:$8 sps:$4 sm:$0xff]   ;;  %v3528_v44 = vld [vmem:[%s4519_s1 + $0x3d0] ss:$8 sps:$4 sm:$0xff]   ;;  %v4268_v54 = vld [vmem:[%s3685_s10 + $0x24] sm:$0x1] }
  0x5f   : > { %1890 = vmatpush1.bf16.msra.mxu0 %v3470_v1  ;;  %1724 = vmatprep.mubr.bf16.mxu0 %v3580_v2  ;;  %v4190_v1 = vsel %vm3982_vm5, %v2836_v62, %v736_v60  ;;  %v4197_v4 = vsel %vm3982_vm5, %v2837_v63, %v740_v61  ;;  %v4272_v60 = vld [vmem:[%s3685_s10 + $0x2c] sm:$0x1]  ;;  %v2017_v61 = vrot.slane %v2015_v45, 4  ;;  %v3538_v62 = vld [vmem:[%s4519_s1 + $0x1f0] ss:$8 sps:$4 sm:$0xff]  }
  0x60   : > { %866 = vmatpush1.bf16.msra.mxu1 %v3473_v7  ;;  %1891 = vmatprep.subr.bf16.mxu0 %v3478_v9  ;;  %v2857_v7 = vcombine.low %v4190_v1, %v4197_v4  ;;  %v3509_v9 = vld [vmem:[%s4519_s1 + $0x3a0] ss:$8 sps:$4 sm:$0xff]   ;;  %v3074_v63 = vld [vmem:[%s3685_s10 + $0x30] sm:$0xf]  ;;  %v2024_v1 = vshll.u32 %v4268_v54, 16 }
  0x61   : > { %867 = vmatprep.subr.bf16.mxu1 %v3482_v28  ;;  %v3518_v28 = vld [vmem:[%s4519_s1 + $0x1c0] ss:$8 sps:$4 sm:$0xff]   ;;  %v2046_v11 = vshll.u32 %v3074_v63, 16 }
  0x62   : > { %v3544_v4 = vld [vmem:[%s3685_s10 + $0x8] ss:$8 sps:$4 sm:$0xff]  }
  0x63   : > { %673 = vmatmul.mubr.bf16.gmra.mrb[12].mxu1 %v2813_v14  ;;  %1892 = vmatpush1.bf16.msra.mxu0 %v3476_v13  ;;  %v3068_v13 = vld [vmem:[%s3685_s10 + $0x18] sm:$0xf]  ;;  %v3524_v14 = vld [vmem:[%s4519_s1 + $0x3c4] ss:$8 sps:$4 sm:$0xff]  }
  0x64   : > { %868 = vmatpush1.bf16.msra.mxu1 %v3480_v18  ;;  %887 = vmatprep.mubr.bf16.mxu1 %v3580_v2  ;;  %v2001_v18 = vshrl.u32 %v3068_v13, 16  ;;  %v2004_v34 = vshll.u32 %v3068_v13, 16  ;;  %v3550_v13 = vld [vmem:[%s4519_s1 + $0x414] ss:$8 sps:$4 sm:$0xff]  }
  0x65   : > { %869 = vmatprep.subr.bf16.mxu1 %v3488_v19  ;;  %1893 = vmatprep.subr.bf16.mxu0 %v3485_v26  ;;  %v4231_v19 = vld [vmem:[%s3685_s10 + $0x14] sm:$0x1]  ;;  %v3521_v26 = vld [vmem:[%s3685_s10 + $0x30] ss:$8 sps:$4 sm:$0xff]  }
  0x66   : > { %1725 = vmatmul.mubr.bf16.gmra.mrb[12].mxu0 %v3005_v50  ;;  %v2003_v35 = vrot.slane %v2001_v18, 4  ;;  %v2006_v29 = vrot.slane %v2004_v34, 5  ;;  %v3525_v50 = vld [vmem:[%s4519_s1 + $0x1d0] ss:$8 sps:$4 sm:$0xff]   ;;  %v2326_v53 = vrot.slane %v4231_v19, 5 }
  0x67   : > { %1894 = vmatpush1.bf16.msra.mxu0 %v3483_v33  ;;  %1913 = vmatprep.mubr.bf16.mxu0 %v3580_v2  ;;  %v1996_v33 = vshll.u32 %v4231_v19, 16 }
  0x68   : > { %870 = vmatpush1.bf16.msra.mxu1 %v3486_v37  ;;  %1895 = vmatprep.subr.bf16.mxu0 %v3491_v17  ;;  %v2010_v37 = vshll.u32 %v4234_v24, 16  ;;  %v3072_v17 = vld [vmem:[%s3685_s10 + $0x28] sm:$0xf]  ;;  %v2007_v43 = vor.u32 %v2006_v29, %v2003_v35 }
  0x69   : > { %1074 = vmatprep.subr.bf16.mxu1 %v3494_v40  ;;  %v3531_v40 = vld [vmem:[%s4519_s1 + $0x1e0] ss:$8 sps:$4 sm:$0xff]   ;;  %v1998_v52 = vrot.slane %v1996_v33, 5  ;;  %v3554_v33 = vld [vmem:[%s4519_s1 + $0x424] ss:$8 sps:$4 sm:$0xff]  }
  0x6b   : > { %888 = vmatmul.mubr.bf16.vlgmr.msra.gmra.mrb[0].mxu1 %v2854_v12  ;;  %1896 = vmatpush1.bf16.msra.mxu0 %v3489_v48  ;;  %v3527_v12 = vld [vmem:[%s4519_s1 + $0x1d4] ss:$8 sps:$4 sm:$0xff]   ;;  %v2029_v48 = vshrl.u32 %v3072_v17, 16 }
  0x6c   : > { %1075 = vmatpush1.bf16.msra.mxu1 %v3492_v42  ;;  %897 = vmatprep.mubr.bf16.mxu1 %v3580_v2  ;;  %v1993_v42 = vor.u32 %v1992_v25, %v1989_v22  ;;  %v4314_v25 = vld [vmem:[%s3685_s10 + $0x34] sm:$0x1] }
  0x6d   : > { %1076 = vmatprep.subr.bf16.mxu1 %v3501_v23  ;;  %2211 = vmatprep.subr.bf16.mxu0 %v3498_v32  ;;  %v2032_v23 = vshll.u32 %v3072_v17, 16  ;;  %v3540_v32 = vld [vmem:[%s4519_s1 + $0x1f4] ss:$8 sps:$4 sm:$0xff]   ;;  %v3551_v17 = vld [vmem:[%s3685_s10 + $0x18] ss:$8 sps:$4 sm:$0xff]  }
  0x6e   : > { %1914 = vmatmul.mubr.bf16.vlgmr.msra.gmra.mrb[0].mxu0 %v3495_v56  ;;  %v2012_v56 = vrot.slane %v2010_v37, 5  ;;  %v3078_v37 = vld [vmem:[%s3685_s10 + $0x40] sm:$0xf] }
  0x6f   : > { %2212 = vmatpush1.bf16.msra.mxu0 %v3496_v59  ;;  %1923 = vmatprep.mubr.bf16.mxu0 %v3580_v2  ;;  %v2008_v59 = vrot.slane %v2007_v43, 4  ;;  %v2034_v31 = vrot.slane %v2032_v23, 5  ;;  %v2074_v23 = vshll.u32 %v3078_v37, 16 }
  0x70   : > { %1077 = vmatpush1.bf16.msra.mxu1 %v3499_v57  ;;  %2213 = vmatprep.subr.bf16.mxu0 %v3504_v16  ;;  %v3534_v57 = vld [vmem:[%s3685_s10 + $0x40] ss:$8 sps:$4 sm:$0xff]   ;;  %v2020_v16 = vrot.slane %v2018_v46, 5  ;;  %v3557_v46 = vld [vmem:[%s4519_s1 + $0x434] ss:$8 sps:$4 sm:$0xff]  }
  0x71   : > { %1078 = vmatprep.subr.bf16.mxu1 %v3507_v30  ;;  %v2031_v30 = vrot.slane %v2029_v48, 4  ;;  %v2071_v48 = vshrl.u32 %v3078_v37, 16 }
  0x73   : > { %898 = vmatmul.mubr.bf16.gmra.mrb[4].mxu1 %v2855_v21  ;;  %2214 = vmatpush1.bf16.msra.mxu0 %v3502_v36  ;;  %v3530_v21 = vld [vmem:[%s4519_s1 + $0x3d4] ss:$8 sps:$4 sm:$0xff]  }
  0x74   : > { %1079 = vmatpush1.bf16.msra.mxu1 %v3505_v38  ;;  %907 = vmatprep.mubr.bf16.mxu1 %v3580_v2  ;;  %v3543_v36 = vld [vmem:[%s4519_s1 + $0x3f4] ss:$8 sps:$4 sm:$0xff]   ;;  %v3547_v38 = vld [vmem:[%s4519_s1 + $0x404] ss:$8 sps:$4 sm:$0xff]  }
  0x75   : > { %1080 = vmatprep.subr.bf16.mxu1 %v3514_v0  ;;  %2215 = vmatprep.subr.bf16.mxu0 %v3511_v51  ;;  %v3076_v0 = vld [vmem:[%s3685_s10 + $0x38] sm:$0xf]  ;;  %v2038_v51 = vshll.u32 %v4272_v60, 16 }
  0x76   : > { %1924 = vmatmul.mubr.bf16.gmra.mrb[4].mxu0 %v3508_v55 }
  0x77   : > { %2216 = vmatpush1.bf16.msra.mxu0 %v3509_v9  ;;  %1933 = vmatprep.mubr.bf16.mxu0 %v3580_v2  ;;  %v2021_v9 = vor.u32 %v2020_v16, %v2017_v61  ;;  %v2040_v22 = vrot.slane %v2038_v51, 5  ;;  %v4343_v16 = vld [vmem:[%s3685_s10 + $0x44] sm:$0x1] }
  0x78   : > { %1081 = vmatpush1.bf16.msra.mxu1 %v3512_v8  ;;  %2217 = vmatprep.subr.bf16.mxu0 %v3517_v3  ;;  %v3545_v8 = vld [vmem:[%s4519_s1 + $0x400] ss:$8 sps:$4 sm:$0xff]   ;;  %v2035_v3 = vor.u32 %v2034_v31, %v2031_v30  ;;  %v4346_v30 = vld [vmem:[%s3685_s10 + $0x4c] sm:$0x1]  ;;  %v2073_v31 = vrot.slane %v2071_v48, 4  ;;  %v2080_v51 = vshll.u32 %v4343_v16, 16 }
  0x79   : > { %1082 = vmatprep.subr.bf16.mxu1 %v3520_v10  ;;  %v2043_v10 = vshrl.u32 %v3074_v63, 16  ;;  %v2022_v18 = vrot.slane %v2021_v9, 4  ;;  %v3558_v63 = vld [vmem:[%s3685_s10 + $0x28] ss:$8 sps:$4 sm:$0xff]  }
  0x7a   : > { %v2036_v34 = vrot.slane %v2035_v3, 4 }
  0x7b   : > { %908 = vmatmul.mubr.bf16.gmra.mrb[8].mxu1 %v2856_v58  ;;  %2218 = vmatpush1.bf16.msra.mxu0 %v3515_v27  ;;  %v1994_v58 = vrot.slane %v1993_v42, 4  ;;  %v2057_v27 = vshrl.u32 %v3076_v0, 16  ;;  %v2045_v35 = vrot.slane %v2043_v10, 4  ;;  %v3552_v42 = vld [vmem:[%s4519_s1 + $0x420] ss:$8 sps:$4 sm:$0xff]  }
  0x7c   : > { %1083 = vmatpush1.bf16.msra.mxu1 %v3518_v28  ;;  %917 = vmatprep.mubr.bf16.mxu1 %v3580_v2  ;;  %v2060_v28 = vshll.u32 %v3076_v0, 16  ;;  %v3562_v10 = vld [vmem:[%s4519_s1 + $0x450] ss:$8 sps:$4 sm:$0xff]  }
  0x7d   : > { %1084 = vmatprep.subr.bf16.mxu1 %v3527_v12  ;;  %2219 = vmatprep.subr.bf16.mxu0 %v3524_v14  ;;  %v1999_v55 = vsel %vm3742_vm2, %v1994_v58, %v1998_v52  ;;  %v3541_v12 = vld [vmem:[%s4519_s1 + $0x3f0] ss:$8 sps:$4 sm:$0xff]   ;;  %v2026_v14 = vrot.slane %v2024_v1, 5  ;;  %v3559_v1 = vld [vmem:[%s4519_s1 + $0x440] ss:$8 sps:$4 sm:$0xff]  }
  0x7e   : > { %1934 = vmatmul.mubr.bf16.gmra.mrb[8].mxu0 %v3521_v26  ;;  %v2048_v26 = vrot.slane %v2046_v11, 5  ;;  %v2062_v29 = vrot.slane %v2060_v28, 5  ;;  %v3555_v52 = vld [vmem:[%s4519_s1 + $0x430] ss:$8 sps:$4 sm:$0xff]   ;;  %v2082_v11 = vrot.slane %v2080_v51, 5 }
  0x7f   : > { %2220 = vmatpush1.bf16.msra.mxu0 %v3522_v47  ;;  %1943 = vmatprep.mubr.bf16.mxu0 %v3580_v2  ;;  %v2059_v47 = vrot.slane %v2057_v27, 4 }
  0x80   : > { %1085 = vmatpush1.bf16.msra.mxu1 %v3525_v50  ;;  %2221 = vmatprep.subr.bf16.mxu0 %v3530_v21  ;;  %v4317_v50 = vld [vmem:[%s3685_s10 + $0x3c] sm:$0x1]  ;;  %v2027_v21 = vsel %vm3742_vm2, %v2022_v18, %v2026_v14  ;;  %v2049_v43 = vor.u32 %v2048_v26, %v2045_v35  ;;  %v3123_v14 = vld [vmem:[%s3685_s10 + $0x38] sm:$0xe]  ;;  %v3118_v35 = vld [vmem:[%s3685_s10 + $0x10] sm:$0xe] }
  0x81   : > { %1086 = vmatprep.subr.bf16.mxu1 %v3533_v41  ;;  %v2041_v41 = vsel %vm3742_vm2, %v2036_v34, %v2040_v22  ;;  %v2066_v45 = vshll.u32 %v4317_v50, 16  ;;  %v2346_v18 = vrot.slane %v4317_v50, 5  ;;  %v3565_v34 = vld [vmem:[%s3685_s10 + $0x38] ss:$8 sps:$4 sm:$0xff]   ;;  %v3571_v50 = vld [vmem:[%s4519_s1 + $0x474] ss:$8 sps:$4 sm:$0xff]  }
  0x82   : > { %v2050_v58 = vrot.slane %v2049_v43, 4  ;;  %v3566_v22 = vld [vmem:[%s4519_s1 + $0x460] ss:$8 sps:$4 sm:$0xff]   ;;  %v3126_v37 = vrot.slane %v3118_v35, 9 }
  0x83   : > { %918 = vmatmul.mubr.bf16.gmra.mrb[12].mxu1 %v2857_v7  ;;  %2222 = vmatpush1.bf16.msra.mxu0 %v3528_v44  ;;  %v2013_v7 = vsel %vm3742_vm2, %v2008_v59, %v2012_v56  ;;  %v2063_v44 = vor.u32 %v2062_v29, %v2059_v47  ;;  %v2068_v61 = vrot.slane %v2066_v45, 5  ;;  %v3131_v47 = vrot.slane %v3123_v14, 9  ;;  %v3124_v43 = vld [vmem:[%s3685_s10 + $0x40] sm:$0xe] }
  0x84   : > { %1087 = vmatpush1.bf16.msra.mxu1 %v3531_v40  ;;  %1106 = vmatprep.mubr.bf16.mxu1 %v3580_v2  ;;  %v3098_v15 = vcombine.low %v1999_v55, %v2013_v7  ;;  %v2052_v40 = vshll.u32 %v4314_v25, 16  ;;  %v3564_v7 = vld [vmem:[%s4519_s1 + $0x454] ss:$8 sps:$4 sm:$0xff]   ;;  %v3132_v19 = vrot.slane %v3124_v43, 9 }
  0x85   : > { %1088 = vmatprep.subr.bf16.mxu1 %v3540_v32  ;;  %2223 = vmatprep.subr.bf16.mxu0 %v3537_v49  ;;  %v2085_v49 = vshrl.u32 %v3080_v39, 16  ;;  %v2088_v32 = vshll.u32 %v3080_v39, 16  ;;  %v2064_v59 = vrot.slane %v2063_v44, 4  ;;  %v3125_v44 = vld [vmem:[%s3685_s10 + $0x48] sm:$0xe] }
  0x86   : > { %1944 = vmatmul.mubr.bf16.gmra.mrb[12].mxu0 %v3534_v57  ;;  %v2054_v56 = vrot.slane %v2052_v40, 5  ;;  %v3099_v57 = vcombine.low %v2027_v21, %v2041_v41  ;;  %v2347_v40 = vsel %vm3982_vm5, %v3131_v47, %v2346_v18  ;;  %v3133_v48 = vrot.slane %v3125_v44, 9 }
  0x87   : > { %2224 = vmatpush1.bf16.msra.mxu0 %v3535_v20  ;;  %2243 = vmatprep.mubr.bf16.mxu0 %v3580_v2  ;;  %v2076_v20 = vrot.slane %v2074_v23, 5  ;;  %v2069_v55 = vsel %vm3742_vm2, %v2064_v59, %v2068_v61  ;;  %v2354_v23 = vrot.slane %v4346_v30, 5  ;;  %v2334_v61 = vrot.slane %v4268_v54, 5 }
  0x88   : > { %1089 = vmatpush1.bf16.msra.mxu1 %v3538_v62  ;;  %2225 = vmatprep.subr.bf16.mxu0 %v3543_v36  ;;  %v2087_v62 = vrot.slane %v2085_v49, 4  ;;  %v2090_v36 = vrot.slane %v2088_v32, 5  ;;  %v2055_v0 = vsel %vm3742_vm2, %v2050_v58, %v2054_v56  ;;  %v3120_v32 = vld [vmem:[%s3685_s10 + $0x20] sm:$0xe] }
  0x89   : > { %3189 = vmatprep.subr.bf16.mxu1 %v3547_v38  ;;  %v3100_v3 = vcombine.low %v2055_v0, %v2069_v55  ;;  %v2355_v58 = vsel %vm3982_vm5, %v3133_v48, %v2354_v23  ;;  %v3128_v59 = vrot.slane %v3120_v32, 9 }
  0x8a   : > { %v2091_v9 = vor.u32 %v2090_v36, %v2087_v62 }
  0x8b   : > { %1107 = vmatmul.mubr.bf16.vlgmr.msra.gmra.mrb[0].mxu1 %v3544_v4  ;;  %2226 = vmatpush1.bf16.msra.mxu0 %v3541_v12  ;;  %v2094_v4 = vshll.u32 %v4346_v30, 16  ;;  %v2338_v30 = vrot.slane %v4272_v60, 5 }
  0x8c   : > { %3197 = vmatpush1.bf16.msra.mxu1 %v3545_v8  ;;  %1116 = vmatprep.mubr.bf16.mxu1 %v3580_v2  ;;  %v2092_v12 = vrot.slane %v2091_v9, 4 }
  0x8d   : > { %3190 = vmatprep.subr.bf16.mxu1 %v3550_v13  ;;  %2469 = vmatprep.subr.bf16.mxu0 %v3547_v38  ;;  %v3561_v38 = vld [vmem:[%s4519_s1 + $0x444] ss:$8 sps:$4 sm:$0xff]   ;;  %v2096_v27 = vrot.slane %v2094_v4, 5 }
  0x8e   : > { %2244 = vmatmul.mubr.bf16.vlgmr.msra.gmra.mrb[0].mxu0 %v3098_v15  ;;  %v3568_v15 = vld [vmem:[%s4519_s1 + $0x464] ss:$8 sps:$4 sm:$0xff]  }
  0x8f   : > { %2470 = vmatpush1.bf16.msra.mxu0 %v3545_v8  ;;  %2253 = vmatprep.mubr.bf16.mxu0 %v3580_v2  ;;  %v2077_v8 = vor.u32 %v2076_v20, %v2073_v31  ;;  %v2335_v20 = vsel %vm3982_vm5, %v3128_v59, %v2334_v61 }
  0x90   : > { %3198 = vmatpush1.bf16.msra.mxu1 %v3548_v6  ;;  %2471 = vmatprep.subr.bf16.mxu0 %v3550_v13  ;;  %v3122_v13 = vld [vmem:[%s3685_s10 + $0x30] sm:$0xe] }
  0x91   : > { %3191 = vmatprep.subr.bf16.mxu1 %v3554_v33  ;;  %v2078_v28 = vrot.slane %v2077_v8, 4  ;;  %v3130_v26 = vrot.slane %v3122_v13, 9 }
  0x93   : > { %1117 = vmatmul.mubr.bf16.gmra.mrb[4].mxu1 %v3551_v17  ;;  %2472 = vmatpush1.bf16.msra.mxu0 %v3548_v6  ;;  %v2342_v6 = vrot.slane %v4314_v25, 5  ;;  %v2083_v29 = vsel %vm3742_vm2, %v2078_v28, %v2082_v11  ;;  %v2097_v25 = vsel %vm3742_vm2, %v2092_v12, %v2096_v27  ;;  %v3569_v17 = vld [vmem:[%s4519_s1 + $0x470] ss:$8 sps:$4 sm:$0xff]  }
  0x94   : > { %3199 = vmatpush1.bf16.msra.mxu1 %v3552_v42  ;;  %1126 = vmatprep.mubr.bf16.mxu1 %v3580_v2  ;;  %v3101_v39 = vcombine.low %v2083_v29, %v2097_v25 }
  0x95   : > { %3192 = vmatprep.subr.bf16.mxu1 %v3557_v46  ;;  %2473 = vmatprep.subr.bf16.mxu0 %v3554_v33  ;;  %v3119_v33 = vld [vmem:[%s3685_s10 + $0x18] sm:$0xe]  ;;  %v2343_v21 = vsel %vm3982_vm5, %v3130_v26, %v2342_v6 }
  0x96   : > { %2254 = vmatmul.mubr.bf16.gmra.mrb[4].mxu0 %v3099_v57  ;;  %v3127_v41 = vrot.slane %v3119_v33, 9  ;;  %v3152_v45 = vcombine.low %v2343_v21, %v2347_v40 }
  0x97   : > { %2474 = vmatpush1.bf16.msra.mxu0 %v3552_v42  ;;  %2263 = vmatprep.mubr.bf16.mxu0 %v3580_v2  ;;  %v2330_v42 = vrot.slane %v4234_v24, 5  ;;  %v2327_v24 = vsel %vm3982_vm5, %v3126_v37, %v2326_v53 }
  0x98   : > { %3200 = vmatpush1.bf16.msra.mxu1 %v3555_v52  ;;  %2475 = vmatprep.subr.bf16.mxu0 %v3557_v46  ;;  %v2350_v46 = vrot.slane %v4343_v16, 5 }
  0x99   : > { %3193 = vmatprep.subr.bf16.mxu1 %v3561_v38  ;;  %v2331_v49 = vsel %vm3982_vm5, %v3127_v41, %v2330_v42 }
  0x9a   : > { %v3150_v56 = vcombine.low %v2327_v24, %v2331_v49  ;;  %v2351_v57 = vsel %vm3982_vm5, %v3132_v19, %v2350_v46 }
  0x9b   : > { %1127 = vmatmul.mubr.bf16.gmra.mrb[8].mxu1 %v3558_v63  ;;  %2476 = vmatpush1.bf16.msra.mxu0 %v3555_v52  ;;  %v3121_v52 = vld [vmem:[%s3685_s10 + $0x28] sm:$0xe]  ;;  %v3153_v31 = vcombine.low %v2351_v57, %v2355_v58  ;;  %s3581_s10 = smov 64  }
  0x9c   : > { %3201 = vmatpush1.bf16.msra.mxu1 %v3559_v1  ;;  %1136 = vmatprep.mubr.bf16.mxu1 %v3580_v2  ;;  %v3129_v16 = vrot.slane %v3121_v52, 9 }
  0x9d   : > { %3194 = vmatprep.subr.bf16.mxu1 %v3564_v7  ;;  %2477 = vmatprep.subr.bf16.mxu0 %v3561_v38 }
  0x9e   : > { %2264 = vmatmul.mubr.bf16.gmra.mrb[8].mxu0 %v3100_v3  ;;  %v2339_v62 = vsel %vm3982_vm5, %v3129_v16, %v2338_v30 }
  0x9f   : > { %2478 = vmatpush1.bf16.msra.mxu0 %v3559_v1  ;;  %2273 = vmatprep.mubr.bf16.mxu0 %v3580_v2  ;;  %v3151_v36 = vcombine.low %v2335_v20, %v2339_v62 }
  0xa0   : > { %3202 = vmatpush1.bf16.msra.mxu1 %v3562_v10  ;;  %2479 = vmatprep.subr.bf16.mxu0 %v3564_v7 }
  0xa1   : > { %3195 = vmatprep.subr.bf16.mxu1 %v3568_v15 }
  0xa3   : > { %1137 = vmatmul.mubr.bf16.gmra.mrb[12].mxu1 %v3565_v34  ;;  %2480 = vmatpush1.bf16.msra.mxu0 %v3562_v10 }
  0xa4   : > { %3203 = vmatpush1.bf16.msra.mxu1 %v3566_v22  ;;  %2521 = vmatprep.mubr.bf16.mxu1 %v3580_v2 }
  0xa5   : > { %3196 = vmatprep.subr.bf16.mxu1 %v3571_v50  ;;  %2481 = vmatprep.subr.bf16.mxu0 %v3568_v15 }
  0xa6   : > { %2274 = vmatmul.mubr.bf16.gmra.mrb[12].mxu0 %v3101_v39 }
  0xa7   : > { %2482 = vmatpush1.bf16.msra.mxu0 %v3566_v22  ;;  %2501 = vmatprep.mubr.bf16.mxu0 %v3580_v2 }
  0xa8   : > { %3204 = vmatpush1.bf16.msra.mxu1 %v3569_v17  ;;  %2483 = vmatprep.subr.bf16.mxu0 %v3571_v50 }
  0xab   : > { %2522 = vmatmul.mubr.bf16.vlgmr.msra.gmra.mrb[16].mxu1 %v3152_v45  ;;  %2484 = vmatpush1.bf16.msra.mxu0 %v3569_v17 }
  0xac   : > { %2531 = vmatprep.mubr.bf16.mxu1 %v3580_v2 }
  0xae   : > { %2502 = vmatmul.mubr.bf16.vlgmr.msra.gmra.mrb[0].mxu0 %v3150_v56 }
  0xaf   : > { %2511 = vmatprep.mubr.bf16.mxu0 %v3580_v2 }
  0xb3   : > { %2532 = vmatmul.mubr.bf16.gmra.mrb[20].mxu1 %v3153_v31 }
  0xb6   : > { %2512 = vmatmul.mubr.bf16.gmra.mrb[4].mxu0 %v3151_v36 }
 0x15e   : > { %v1108_v38 = vpop.f32.mrb[0].mxu1 }
 0x15f   : > { %v1110_v63 = vpop.f32.mrb[1].mxu1 }
 0x160   : > { %v1112_v0 = vpop.f32.mrb[2].mxu1 }
 0x161   : > { %v1114_v54 = vpop.f32.mrb[3].mxu1 }
 0x166   : > { %v1118_v1 = vpop.f32.mrb[4].mxu1 }
 0x167   : > { %v1120_v51 = vpop.f32.mrb[5].mxu1 }
 0x168   : > { %v1122_v60 = vpop.f32.mrb[6].mxu1 }
 0x169   : > { %v4423_v4 = vpop.f32.mrb[7].mxu1 }
 0x16e   : > { %v1128_v55 = vpop.f32.mrb[8].mxu1 }
 0x16f   : > { %v1130_v2 = vpop.f32.mrb[9].mxu1 }
 0x170   : > { %v1132_v7 = vpop.f32.mrb[10].mxu1 }
 0x171   : > { %v1134_v8 = vpop.f32.mrb[11].mxu1  ;;  %v2265_v9 = vpop.f32.mrb[8].mxu0 }
 0x172   : > { %v3213_v3 = vadd.f32 %v2265_v9, %v1128_v55  ;;  %v2267_v5 = vpop.f32.mrb[9].mxu0 }
 0x173   : > { %v3215_v10 = vadd.f32 %v2267_v5, %v1130_v2  ;;  %v2269_v11 = vpop.f32.mrb[10].mxu0 }
 0x174   : > { %v3217_v27 = vadd.f32 %v2269_v11, %v1132_v7  ;;  %v2271_v28 = vpop.f32.mrb[11].mxu0  ;;  %v3170_v7 = vld [vmem:[%s4520_s2] ss:$0 sm:$0xff] }
 0x175   : > { %v3219_v13 = vadd.f32 %v2271_v28, %v1134_v8 }
 0x176   : > { %v1138_v12 = vpop.f32.mrb[12].mxu1 }
 0x177   : > { %v1140_v14 = vpop.f32.mrb[13].mxu1 }
 0x178   : > { %v1142_v15 = vpop.f32.mrb[14].mxu1 }
 0x179   : > { %v1144_v6 = vpop.f32.mrb[15].mxu1  ;;  %v2275_v18 = vpop.f32.mrb[12].mxu0 }
 0x17a   : > { %v3221_v34 = vadd.f32 %v2275_v18, %v1138_v12  ;;  %v2277_v22 = vpop.f32.mrb[13].mxu0 }
 0x17b   : > { %v3223_v35 = vadd.f32 %v2277_v22, %v1140_v14  ;;  %v2279_v26 = vpop.f32.mrb[14].mxu0 }
 0x17c   : > { %v3225_v47 = vadd.f32 %v2279_v26, %v1142_v15  ;;  %v2281_v29 = vpop.f32.mrb[15].mxu0 }
 0x17d   : > { %v3227_v50 = vadd.f32 %v2281_v29, %v1144_v6 }
 0x17e   : > { %v2523_v25 = vpop.f32.mrb[16].mxu1 }
 0x17f   : > { %v4425_v33 = vadd.f32 %v3213_v3, %v2523_v25  ;;  %v2525_v37 = vpop.f32.mrb[17].mxu1 }
 0x180   : > { %v4427_v39 = vadd.f32 %v3215_v10, %v2525_v37  ;;  %v2527_v17 = vpop.f32.mrb[18].mxu1 }
 0x181   : > { %v3218_v53 = vadd.f32 %v3217_v27, %v2527_v17  ;;  %v2529_v21 = vpop.f32.mrb[19].mxu1  ;;  %v2503_v41 = vpop.f32.mrb[0].mxu0 }
 0x182   : > { %v3220_v40 = vadd.f32 %v3219_v13, %v2529_v21  ;;  %v3205_v42 = vadd.f32 %v2503_v41, %v1108_v38  ;;  %v2505_v43 = vpop.f32.mrb[1].mxu0 }
 0x183   : > { %2576 = vrot.lane.b32.xlu1 %v3218_v53, %s3581_s10  ;;  %v3206_v44 = vadd.f32 %v2505_v43, %v1110_v63  ;;  %v2507_v45 = vpop.f32.mrb[2].mxu0 }
 0x184   : > { %v4430_v19 = vadd.f32 %v2507_v45, %v1112_v0  ;;  %v2509_v46 = vpop.f32.mrb[3].mxu0  ;;  %2566 = vrot.lane.b32.xlu0 %v3205_v42, %s3581_s10 }
 0x185   : > { %v4433_v23 = vadd.f32 %v2509_v46, %v1114_v54 }
 0x186   : > { %v2533_v48 = vpop.f32.mrb[20].mxu1 }
 0x187   : > { %v4435_v24 = vadd.f32 %v3221_v34, %v2533_v48  ;;  %v2535_v49 = vpop.f32.mrb[21].mxu1  ;;  %2608 = vrot.lane.b32.xlu1 %v4433_v23, %s3581_s10 }
 0x188   : > { %v4437_v32 = vadd.f32 %v3223_v35, %v2535_v49  ;;  %v2537_v52 = vpop.f32.mrb[22].mxu1  ;;  %2574 = vrot.lane.b32.xlu0 %v4425_v33, %s3581_s10 }
 0x189   : > { %v4441_v56 = vadd.f32 %v3225_v47, %v2537_v52  ;;  %v2539_v57 = vpop.f32.mrb[23].mxu1  ;;  %v2513_v59 = vpop.f32.mrb[4].mxu0 }
 0x18a   : > { %v4445_v58 = vadd.f32 %v3227_v50, %v2539_v57  ;;  %v4447_v61 = vadd.f32 %v2513_v59, %v1118_v1  ;;  %v2515_v16 = vpop.f32.mrb[5].mxu0 }
 0x18b   : > { %v4449_v30 = vadd.f32 %v2515_v16, %v1120_v51  ;;  %v2517_v31 = vpop.f32.mrb[6].mxu0  ;;  %2616 = vrot.lane.b32.xlu1 %v3220_v40, %s3581_s10 }
 0x18c   : > { %v4452_v20 = vadd.f32 %v2517_v31, %v1122_v60  ;;  %v2519_v62 = vpop.f32.mrb[7].mxu0  ;;  %2606 = vrot.lane.b32.xlu0 %v3206_v44, %s3581_s10 }
 0x18d   : > { %v4456_v36 = vadd.f32 %v2519_v62, %v4423_v4 }
 0x18f   : > { %2570 = vrot.lane.b32.xlu1 %v4447_v61, %s3581_s10 }
 0x190   : > { %2614 = vrot.lane.b32.xlu0 %v4427_v39, %s3581_s10 }
 0x193   : > { %2572 = vrot.lane.b32.xlu1 %v4452_v20, %s3581_s10 }
 0x194   : > { %2568 = vrot.lane.b32.xlu0 %v4430_v19, %s3581_s10 }
 0x197   : > { %2580 = vrot.lane.b32.xlu1 %v4441_v56, %s3581_s10 }
 0x198   : > { %2578 = vrot.lane.b32.xlu0 %v4435_v24, %s3581_s10 }
 0x19b   : > { %2612 = vrot.lane.b32.xlu1 %v4456_v36, %s3581_s10 }
 0x19c   : > { %2610 = vrot.lane.b32.xlu0 %v4449_v30, %s3581_s10 }
 0x19f   : > { %2620 = vrot.lane.b32.xlu1 %v4445_v58, %s3581_s10 }
 0x1a0   : > { %2618 = vrot.lane.b32.xlu0 %v4437_v32, %s3581_s10 }
 0x1f5   : > { %v2577_v38 = vpop.permute.xlu1 %2576 }
 0x1f6   : > { %v2567_v63 = vpop.permute.xlu0 %2566  ;;  %v2595_v51 = vmax.f32 %v3218_v53, %v2577_v38 }
 0x1f7   : > { %v2590_v55 = vmax.f32 %v3205_v42, %v2567_v63 }
 0x1f9   : > { %v2609_v0 = vpop.permute.xlu1 %2608 }
 0x1fa   : > { %v2575_v54 = vpop.permute.xlu0 %2574  ;;  %v2631_v34 = vmax.f32 %v4433_v23, %v2609_v0 }
 0x1fb   : > { %v2594_v11 = vmax.f32 %v4425_v33, %v2575_v54 }
 0x1fd   : > { %v2617_v1 = vpop.permute.xlu1 %2616 }
 0x1fe   : > { %v2607_v60 = vpop.permute.xlu0 %2606  ;;  %v2635_v4 = vmax.f32 %v3220_v40, %v2617_v1 }
 0x1ff   : > { %v2630_v2 = vmax.f32 %v3206_v44, %v2607_v60 }
 0x200   : > { %v2643_v8 = vmax.f32 %v2595_v51, %v2635_v4 }
 0x201   : > { %v2638_v9 = vmax.f32 %v2590_v55, %v2630_v2  ;;  %v2571_v3 = vpop.permute.xlu1 %2570 }
 0x202   : > { %v2658_v5 = vadd.f32 %v3170_v7, %v2643_v8  ;;  %v2615_v10 = vpop.permute.xlu0 %2614  ;;  %v2592_v41 = vmax.f32 %v4447_v61, %v2571_v3 }
 0x203   : > { %v2653_v27 = vadd.f32 %v3170_v7, %v2638_v9  ;;  %v2634_v28 = vmax.f32 %v4427_v39, %v2615_v10 }
 0x204   : > { %v2666_v12 = vmax.f32 %v2658_v5, 0.0 }
 0x205   : > { %v2661_v13 = vmax.f32 %v2653_v27, 0.0  ;;  %v2642_v14 = vmax.f32 %v2594_v11, %v2634_v28  ;;  %v2573_v15 = vpop.permute.xlu1 %2572 }
 0x206   : > { %v3186_v6 = vpack.c.bf16 %v2666_v12, %v2666_v12  ;;  %v2569_v18 = vpop.permute.xlu0 %2568  ;;  %v2593_v53 = vmax.f32 %v4452_v20, %v2573_v15 }
 0x207   : > { %v3181_v22 = vpack.c.bf16 %v2661_v13, %v2661_v13  ;;  %v2657_v35 = vadd.f32 %v3170_v7, %v2642_v14  ;;  %v2591_v26 = vmax.f32 %v4430_v19, %v2569_v18 }
 0x208   : > { %2707 = vst.msk [vmem:[%s4487_s22 + $0x14] sm:$0xf] %vm2701_vm6, %v3186_v6 }
 0x209   : > { %2702 = vst.msk [vmem:[%s4487_s22] sm:$0xf] %vm2701_vm6, %v3181_v22  ;;  %v2665_v47 = vmax.f32 %v2657_v35, 0.0  ;;  %v2639_v29 = vmax.f32 %v2591_v26, %v2631_v34  ;;  %v2581_v25 = vpop.permute.xlu1 %2580 }
 0x20a   : > { %v2579_v50 = vpop.permute.xlu0 %2578  ;;  %v2597_v46 = vmax.f32 %v4441_v56, %v2581_v25 }
 0x20b   : > { %v3185_v33 = vpack.c.bf16 %v2665_v47, %v2665_v47  ;;  %v2654_v37 = vadd.f32 %v3170_v7, %v2639_v29  ;;  %v2596_v52 = vmax.f32 %v4435_v24, %v2579_v50 }
 0x20d   : > { %2706 = vst.msk [vmem:[%s4487_s22 + $0x10] sm:$0xf] %vm2701_vm6, %v3185_v33  ;;  %v2662_v39 = vmax.f32 %v2654_v37, 0.0  ;;  %v2613_v17 = vpop.permute.xlu1 %2612 }
 0x20e   : > { %v2611_v21 = vpop.permute.xlu0 %2610  ;;  %v2633_v40 = vmax.f32 %v4456_v36, %v2613_v17 }
 0x20f   : > { %v3182_v42 = vpack.c.bf16 %v2662_v39, %v2662_v39  ;;  %v2632_v43 = vmax.f32 %v4449_v30, %v2611_v21 }
 0x210   : > { %v2641_v44 = vmax.f32 %v2593_v53, %v2633_v40 }
 0x211   : > { %2703 = vst.msk [vmem:[%s4487_s22 + $0x4] sm:$0xf] %vm2701_vm6, %v3182_v42  ;;  %v2640_v45 = vmax.f32 %v2592_v41, %v2632_v43  ;;  %v2621_v19 = vpop.permute.xlu1 %2620 }
 0x212   : > { %v2656_v48 = vadd.f32 %v3170_v7, %v2641_v44  ;;  %v2619_v23 = vpop.permute.xlu0 %2618  ;;  %v2637_v49 = vmax.f32 %v4445_v58, %v2621_v19 }
 0x213   : > { %v2655_v57 = vadd.f32 %v3170_v7, %v2640_v45  ;;  %v2636_v59 = vmax.f32 %v4437_v32, %v2619_v23 }
 0x214   : > { %v2664_v61 = vmax.f32 %v2656_v48, 0.0  ;;  %v2645_v16 = vmax.f32 %v2597_v46, %v2637_v49 }
 0x215   : > { %v2663_v30 = vmax.f32 %v2655_v57, 0.0  ;;  %v2644_v31 = vmax.f32 %v2596_v52, %v2636_v59 }
 0x216   : > { %v3184_v20 = vpack.c.bf16 %v2664_v61, %v2664_v61  ;;  %v2660_v62 = vadd.f32 %v3170_v7, %v2645_v16 }
 0x217   : > { %v3183_v36 = vpack.c.bf16 %v2663_v30, %v2663_v30  ;;  %v2659_v56 = vadd.f32 %v3170_v7, %v2644_v31 }
 0x218   : > { %2705 = vst.msk [vmem:[%s4487_s22 + $0xc] sm:$0xf] %vm2701_vm6, %v3184_v20  ;;  %v2668_v38 = vmax.f32 %v2660_v62, 0.0 }
 0x219   : > { %2704 = vst.msk [vmem:[%s4487_s22 + $0x8] sm:$0xf] %vm2701_vm6, %v3183_v36  ;;  %v2667_v58 = vmax.f32 %v2659_v56, 0.0 }
 0x21a   : > { %v3188_v24 = vpack.c.bf16 %v2668_v38, %v2668_v38 }
 0x21b   : > { %v3187_v63 = vpack.c.bf16 %v2667_v58, %v2667_v58 }
 0x21c   : > { %2709 = vst.msk [vmem:[%s4487_s22 + $0x1c] sm:$0xf] %vm2701_vm6, %v3188_v24 }
 0x21d   : > { %2708 = vst.msk [vmem:[%s4487_s22 + $0x18] sm:$0xf] %vm2701_vm6, %v3187_v63 }
 0x21e PF: > { %s13_s12 = sadd.s32 1, %s3578_s12  }
 0x21f   : > { %p10_p5 = scmp.ge.s32.totalorder %s13_s12, 4  }
 0x221   :  { %12 = sbr.rel (!%p10_p5) target bundleno = 1 (0x1), region = 72 }

// kernel: fashion_simple_net.3
= control target key start
LH: loop header
LB: loop body
LE: loop exit
PB: predicated region body
PF: predicated region fallthrough
CT: control target
= control target key end

     0   :  { %s6824_s12 = smov 0   ;;  %s8966_s0 = inlined_call_operand.vmem [shape: bf16[2,18,18,8], index: 0, kind: input, shape index: {}]   ;;  %s8967_s1 = inlined_call_operand.vmem [shape: bf16[9,8,128], index: 1, kind: input, shape index: {}]   ;;  %s8968_s2 = inlined_call_operand.vmem [shape: f32[1,32], index: 2, kind: input, shape index: {}]   ;;  %s8969_s3 = inlined_call_operand.vmem [shape: bf16[512,32], index: 3, kind: output, shape index: {}]  }
   0x1 LB: > { %s6830_s13 = sadd.s32 4294967295, %s6800_s12   ;;  %p5344_p0 = scmp.ge.s32.totalorder %s6800_s12, 1  ;;  %s6800_s12 = sphi %s6824_s12, %s13_s12  }
   0x2   : > { %p137_p1 = scmp.lt.s32.totalorder %s6800_s12, 3 }
   0x4   : > { %p138_p2 = pnand %p5344_p0, %p137_p1 }
   0x6   : > { %141 = sbr.rel (%p138_p2) target bundleno = 831 (0x33f), region = 32 }
   0xd   : > { %v5348_v0 = vld [vmem:[%s8967_s1 + $0x4] sm:$0xf]  ;;  %vm708_vm0 = vcmask 1043456   ;;  %v5575_v1 = vld [vmem:[%s8967_s1 + $0x10] sm:$0xf]  ;;  %p161_p3 = scmp.lt.s32.totalorder %s6830_s13, 1 }
   0xe   : > { %6668 = vmatprep.subr.msk.bf16.mxu1 %vm708_vm0, %v5348_v0  ;;  %6672 = vmatprep.subr.msk.bf16.mxu0 %vm708_vm0, %v5575_v1  ;;  %v710_v2 = vsel %vm708_vm0, %v5348_v0, 0  ;;  %v6845_v3 = vsel %vm708_vm0, %v5575_v1, 0  ;;  %v205_v4 = vld [vmem:[%s8967_s1] sm:$0xf]  ;;  %v5640_v5 = vld [vmem:[%s8967_s1 + $0x14] sm:$0xf] }
   0xf   : > { %8983 = vst [vmem:[#allocation2_spill] sm:$0xff] %v6845_v3  ;;  %6105 = vmatpush3.bf16.msra.mxu1 %v710_v2  ;;  %6241 = vmatpush3.bf16.msra.mxu0 %v6845_v3  ;;  %s162_s18 = scalar_select %p161_p3, %s6830_s13, 1  ;;  %vm222_vm1 = vsmask.f32 3328  ;;  %vm223_vm2 = vsmask.f32 7440 }
  0x10   : > { %6669 = vmatprep.subr.msk.bf16.mxu1 %vm708_vm0, %v205_v4  ;;  %6674 = vmatprep.subr.msk.bf16.mxu0 %vm708_vm0, %v5640_v5  ;;  %vm659_vm3 = vcmask 64512   ;;  %v6873_v17 = vsel %vm708_vm0, %v205_v4, 0  ;;  %v6879_v26 = vld [vmem:[%s8967_s1 + $0x18] sm:$0xf]  ;;  %vm6886_vm4 = vmor %vm222_vm1, %vm223_vm2  ;;  %v6892_v37 = vsel %vm708_vm0, %v5640_v5, 0  ;;  %vm1213_vm5 = vcmask 1042432  }
  0x11   : > { %s6678_s23 = smul.u32 216, %s162_s18  ;;  %v6896_v41 = vsel %vm708_vm0, %v6879_v26, 0  ;;  %vm1214_vm6 = vcmask 1046532   ;;  %s6802_s16 = smov 96   ;;  %vm5251_vm8 = vcmask 257024  }
  0x12   : > { %vm7112_vm7 = vmor %vm1213_vm5, %vm1214_vm6  ;;  %s6803_s17 = smov 64   ;;  %s5346_s18 = sshll.u32 %s6830_s13, 5 }
  0x13   : > { %s6860_s26 = scalar_lea.vmem %s8966_s0, %s6678_s23  ;;  %p167_p4 = scmp.lt.s32.totalorder %s5346_s18, 63 }
  0x14   : > { %v173_v6 = vld [vmem:[%s6860_s26] sm:$0xf]  ;;  %v174_v7 = vld [vmem:[%s6860_s26 + $0x4] sm:$0xf]  ;;  %v206_v8 = vld [vmem:[%s6860_s26 + $0x8] sm:$0x1] }
  0x15   : > { %v226_v9 = vshrl.u32 %v173_v6, 16  ;;  %v229_v10 = vshll.u32 %v173_v6, 16  ;;  %v235_v11 = vshll.u32 %v174_v7, 16  ;;  %v239_v12 = vshrl.u32 %v174_v7, 16  ;;  %v5527_v13 = vld [vmem:[%s6860_s26 + $0xc] sm:$0xf] }
  0x16   : > { %v245_v14 = vshll.u32 %v206_v8, 16  ;;  %v6867_v15 = vld [vmem:[%s6860_s26 + $0x10] sm:$0xf]  ;;  %v6870_v16 = vld [vmem:[%s6860_s26 + $0x14] sm:$0x1]  ;;  %v2030_v23 = vshrl.u32 %v5527_v13, 16 }
  0x17   : > { %v228_v18 = vrot.slane %v226_v9, 4  ;;  %v231_v19 = vrot.slane %v229_v10, 5  ;;  %v237_v20 = vrot.slane %v235_v11, 5  ;;  %v241_v21 = vrot.slane %v239_v12, 4  ;;  %v175_v31 = vld [vmem:[%s6860_s26 + $0xc] sm:$0xf] }
  0x18   : > { %v247_v22 = vrot.slane %v245_v14, 5  ;;  %v2033_v24 = vshll.u32 %v5527_v13, 16  ;;  %v2039_v25 = vshll.u32 %v6867_v15, 16  ;;  %v2043_v29 = vshrl.u32 %v6867_v15, 16  ;;  %v176_v36 = vld [vmem:[%s6860_s26 + $0x10] sm:$0xf] }
  0x19   : > { %v232_v27 = vor.u32 %v231_v19, %v228_v18  ;;  %v242_v28 = vor.u32 %v241_v21, %v237_v20  ;;  %v2049_v30 = vshll.u32 %v6870_v16, 16  ;;  %v2032_v33 = vrot.slane %v2030_v23, 4  ;;  %v207_v44 = vld [vmem:[%s6860_s26 + $0x14] sm:$0x1]  ;;  %v5530_v55 = vld [vmem:[%s6860_s26 + $0x18] sm:$0xf] }
  0x1a   : > { %v2035_v34 = vrot.slane %v2033_v24, 5  ;;  %v2041_v35 = vrot.slane %v2039_v25, 5  ;;  %v2045_v40 = vrot.slane %v2043_v29, 4  ;;  %v250_v45 = vshrl.u32 %v175_v31, 16  ;;  %v6905_v60 = vld [vmem:[%s6860_s26 + $0x1c] sm:$0xf] }
  0x1b   : > { %v233_v38 = vrot.slane %v232_v27, 4  ;;  %v243_v39 = vrot.slane %v242_v28, 4  ;;  %v2051_v43 = vrot.slane %v2049_v30, 5  ;;  %v253_v46 = vshll.u32 %v175_v31, 16  ;;  %v6913_v1 = vld [vmem:[%s6860_s26 + $0x20] sm:$0x1] }
  0x1c   : > { %v2036_v42 = vor.u32 %v2035_v34, %v2032_v33  ;;  %v2046_v49 = vor.u32 %v2045_v40, %v2041_v35  ;;  %v259_v50 = vshll.u32 %v176_v36, 16  ;;  %v252_v53 = vrot.slane %v250_v45, 4  ;;  %v177_v18 = vld [vmem:[%s6860_s26 + $0x18] sm:$0xf]  ;;  %v178_v23 = vld [vmem:[%s6860_s26 + $0x1c] sm:$0xf] }
  0x1d   : > { %v238_v47 = vsel %vm6886_vm4, %v233_v38, %v237_v20  ;;  %v248_v48 = vsel %vm6886_vm4, %v243_v39, %v247_v22  ;;  %v255_v54 = vrot.slane %v253_v46, 5  ;;  %v263_v58 = vshrl.u32 %v176_v36, 16  ;;  %v208_v31 = vld [vmem:[%s6860_s26 + $0x20] sm:$0x1]  ;;  %v5533_v40 = vld [vmem:[%s6860_s26 + $0x24] sm:$0xf] }
  0x1e   : > { %v5349_v51 = vcombine.low %v238_v47, %v248_v48  ;;  %v2037_v52 = vrot.slane %v2036_v42, 4  ;;  %v2047_v56 = vrot.slane %v2046_v49, 4  ;;  %v261_v57 = vrot.slane %v259_v50, 5  ;;  %v6936_v46 = vld [vmem:[%s6860_s26 + $0x28] sm:$0xf]  ;;  %s9038_s18 = smov (!%p167_p4, %s5346_s18), 63 }
  0x1f   : > { %v269_v59 = vshll.u32 %v207_v44, 16  ;;  %v2773_v62 = vrot.slane %v6867_v15, 5  ;;  %v2776_v63 = vrot.slane %v6870_v16, 5  ;;  %v256_v0 = vor.u32 %v255_v54, %v252_v53  ;;  %v6945_v54 = vld [vmem:[%s6860_s26 + $0x2c] sm:$0x1]  ;;  %s5347_s21 = sshll.u32 %s9038_s18, 2 }
  0x20   : > { %6106 = vmatprep.mubr.msk.bf16.mxu1 %vm659_vm3, %v5349_v51  ;;  %v2042_v61 = vsel %vm6886_vm4, %v2037_v52, %v2041_v35  ;;  %v2052_v2 = vsel %vm6886_vm4, %v2047_v56, %v2051_v43  ;;  %v265_v4 = vrot.slane %v263_v58, 4  ;;  %v2054_v6 = vshrl.u32 %v5530_v55, 16  ;;  %v5429_v51 = vld [vmem:[%s8967_s1 + $0x8] sm:$0xf]  ;;  %v7145_v16 = vld [vmem:[%s6860_s26 + $0x7c] sm:$0xf]  ;;  %s8837_s23 = scalar_lea.vmem %s8969_s3, %s5347_s21 }
  0x21   : > { %v271_v5 = vrot.slane %v269_v59, 5  ;;  %v5576_v7 = vcombine.low %v2042_v61, %v2052_v2  ;;  %v257_v8 = vrot.slane %v256_v0, 4  ;;  %v2057_v9 = vshll.u32 %v5530_v55, 16  ;;  %v179_v0 = vld [vmem:[%s6860_s26 + $0x24] sm:$0xf] }
  0x22   : > { %v2063_v10 = vshll.u32 %v6905_v60, 16  ;;  %v266_v11 = vor.u32 %v265_v4, %v261_v57  ;;  %v2056_v12 = vrot.slane %v2054_v6, 4  ;;  %v2067_v13 = vshrl.u32 %v6905_v60, 16 }
  0x23   : > { %v2073_v14 = vshll.u32 %v6913_v1, 16  ;;  %6242 = vmatprep.mubr.msk.bf16.mxu0 %vm659_vm3, %v5576_v7  ;;  %v262_v19 = vsel %vm6886_vm4, %v257_v8, %v261_v57  ;;  %v2059_v20 = vrot.slane %v2057_v9, 5  ;;  %v2780_v22 = vrot.slane %v6905_v60, 5  ;;  %v180_v7 = vld [vmem:[%s6860_s26 + $0x28] sm:$0xf] }
  0x24   : > { %v2065_v21 = vrot.slane %v2063_v10, 5  ;;  %v267_v24 = vrot.slane %v266_v11, 4  ;;  %v2069_v25 = vrot.slane %v2067_v13, 4  ;;  %v2783_v28 = vrot.slane %v6913_v1, 5  ;;  %v209_v13 = vld [vmem:[%s6860_s26 + $0x2c] sm:$0x1] }
  0x25   : > { %v2075_v27 = vrot.slane %v2073_v14, 5  ;;  %v2060_v29 = vor.u32 %v2059_v20, %v2056_v12  ;;  %v6929_v30 = vrot.slane %v2780_v22, 4  ;;  %v274_v33 = vshrl.u32 %v177_v18, 16 }
  0x26   : > { %v277_v34 = vshll.u32 %v177_v18, 16  ;;  %v272_v35 = vsel %vm6886_vm4, %v267_v24, %v271_v5  ;;  %v2070_v36 = vor.u32 %v2069_v25, %v2065_v21  ;;  %v283_v38 = vshll.u32 %v178_v23, 16  ;;  %v5536_v24 = vld [vmem:[%s6860_s26 + $0x30] sm:$0xf] }
  0x27   : > { %v287_v39 = vshrl.u32 %v178_v23, 16  ;;  %v5350_v42 = vcombine.low %v262_v19, %v272_v35  ;;  %v2061_v43 = vrot.slane %v2060_v29, 4  ;;  %v276_v44 = vrot.slane %v274_v33, 4  ;;  %v6965_v33 = vld [vmem:[%s6860_s26 + $0x34] sm:$0xf] }
  0x28   : > { %v279_v45 = vrot.slane %v277_v34, 5  ;;  %v2071_v47 = vrot.slane %v2070_v36, 4  ;;  %v285_v48 = vrot.slane %v283_v38, 5  ;;  %v293_v50 = vshll.u32 %v208_v31, 16 }
  0x29   : > { %v289_v49 = vrot.slane %v287_v39, 4  ;;  %6107 = vmatmul.mubr.msk.bf16.vlgmr.msra.gmra.mrb[0].mxu1 %vm659_vm3, %v5350_v42  ;;  %v2066_v52 = vsel %vm6886_vm4, %v2061_v43, %v2065_v21  ;;  %v2078_v55 = vshrl.u32 %v5533_v40, 16  ;;  %v2081_v56 = vshll.u32 %v5533_v40, 16  ;;  %v6973_v40 = vld [vmem:[%s6860_s26 + $0x38] sm:$0x1] }
  0x2a   : > { %v280_v53 = vor.u32 %v279_v45, %v276_v44  ;;  %6139 = vmatpush3.bf16.msra.mxu1 %v6873_v17  ;;  %v2076_v57 = vsel %vm6886_vm4, %v2071_v47, %v2075_v27  ;;  %v295_v59 = vrot.slane %v293_v50, 5  ;;  %v2087_v61 = vshll.u32 %v6936_v46, 16 }
  0x2b   : > { %v290_v58 = vor.u32 %v289_v49, %v285_v48  ;;  %v5577_v2 = vcombine.low %v2066_v52, %v2076_v57  ;;  %v2080_v5 = vrot.slane %v2078_v55, 4  ;;  %v2083_v6 = vrot.slane %v2081_v56, 5  ;;  %6670 = vmatprep.subr.msk.bf16.mxu1 %vm708_vm0, %v5429_v51  ;;  %v181_v52 = vld [vmem:[%s6860_s26 + $0x30] sm:$0xf] }
  0x2c   : > { %v281_v4 = vrot.slane %v280_v53, 4  ;;  %v2089_v9 = vrot.slane %v2087_v61, 5  ;;  %v2091_v17 = vshrl.u32 %v6936_v46, 16  ;;  %v2097_v10 = vshll.u32 %v6945_v54, 16 }
  0x2d   : > { %v291_v8 = vrot.slane %v290_v58, 4  ;;  %6243 = vmatmul.mubr.msk.bf16.vlgmr.msra.gmra.mrb[0].mxu0 %vm659_vm3, %v5577_v2  ;;  %v2084_v12 = vor.u32 %v2083_v6, %v2080_v5  ;;  %v298_v14 = vshrl.u32 %v179_v0, 16  ;;  %v301_v18 = vshll.u32 %v179_v0, 16  ;;  %v182_v58 = vld [vmem:[%s6860_s26 + $0x34] sm:$0xf] }
  0x2e   : > { %v286_v11 = vsel %vm6886_vm4, %v281_v4, %v285_v48  ;;  %6275 = vmatpush3.bf16.msra.mxu0 %v6892_v37  ;;  %v2093_v20 = vrot.slane %v2091_v17, 4  ;;  %v2099_v21 = vrot.slane %v2097_v10, 5  ;;  %v307_v23 = vshll.u32 %v180_v7, 16  ;;  %v210_v4 = vld [vmem:[%s6860_s26 + $0x38] sm:$0x1] }
  0x2f   : > { %v296_v19 = vsel %vm6886_vm4, %v291_v8, %v295_v59  ;;  %v2085_v27 = vrot.slane %v2084_v12, 4  ;;  %v300_v29 = vrot.slane %v298_v14, 4  ;;  %v303_v31 = vrot.slane %v301_v18, 5  ;;  %6675 = vmatprep.subr.msk.bf16.mxu0 %vm708_vm0, %v6879_v26  ;;  %v5539_v12 = vld [vmem:[%s6860_s26 + $0x3c] sm:$0xf] }
  0x30   : > { %v5351_v25 = vcombine.low %v286_v11, %v296_v19  ;;  %v2094_v34 = vor.u32 %v2093_v20, %v2089_v9  ;;  %v309_v35 = vrot.slane %v307_v23, 5  ;;  %v311_v37 = vshrl.u32 %v180_v7, 16  ;;  %v6990_v20 = vld [vmem:[%s6860_s26 + $0x40] sm:$0xf] }
  0x31   : > { %v317_v36 = vshll.u32 %v209_v13, 16  ;;  %v2090_v38 = vsel %vm6886_vm4, %v2085_v27, %v2089_v9  ;;  %v304_v39 = vor.u32 %v303_v31, %v300_v29  ;;  %v2102_v42 = vshrl.u32 %v5536_v24, 16 }
  0x32   : > { %6110 = vmatprep.mubr.msk.bf16.mxu1 %vm659_vm3, %v5351_v25  ;;  %v2105_v43 = vshll.u32 %v5536_v24, 16  ;;  %v2095_v44 = vrot.slane %v2094_v34, 4  ;;  %v313_v45 = vrot.slane %v311_v37, 4  ;;  %v2111_v26 = vshll.u32 %v6965_v33, 16  ;;  %v6995_v34 = vld [vmem:[%s6860_s26 + $0x44] sm:$0x1] }
  0x33   : > { %v319_v47 = vrot.slane %v317_v36, 5  ;;  %v305_v48 = vrot.slane %v304_v39, 4  ;;  %v2104_v49 = vrot.slane %v2102_v42, 4  ;;  %v2115_v51 = vshrl.u32 %v6965_v33, 16  ;;  %v183_v42 = vld [vmem:[%s6860_s26 + $0x3c] sm:$0xf] }
  0x34   : > { %v2107_v50 = vrot.slane %v2105_v43, 5  ;;  %v2100_v53 = vsel %vm6886_vm4, %v2095_v44, %v2099_v21  ;;  %v314_v55 = vor.u32 %v313_v45, %v309_v35  ;;  %v2113_v56 = vrot.slane %v2111_v26, 5  ;;  %v184_v26 = vld [vmem:[%s6860_s26 + $0x40] sm:$0xf] }
  0x35   : > { %v2121_v57 = vshll.u32 %v6973_v40, 16  ;;  %v5578_v59 = vcombine.low %v2090_v38, %v2100_v53  ;;  %v310_v61 = vsel %vm6886_vm4, %v305_v48, %v309_v35  ;;  %v2117_v2 = vrot.slane %v2115_v51, 4 }
  0x36   : > { %v2108_v0 = vor.u32 %v2107_v50, %v2104_v49  ;;  %v315_v5 = vrot.slane %v314_v55, 4  ;;  %v322_v7 = vshrl.u32 %v181_v52, 16  ;;  %v325_v8 = vshll.u32 %v181_v52, 16 }
  0x37   : > { %v2123_v6 = vrot.slane %v2121_v57, 5  ;;  %6246 = vmatprep.mubr.msk.bf16.mxu0 %vm659_vm3, %v5578_v59  ;;  %v2118_v17 = vor.u32 %v2117_v2, %v2113_v56  ;;  %v331_v10 = vshll.u32 %v182_v58, 16  ;;  %v335_v11 = vshrl.u32 %v182_v58, 16  ;;  %v5542_v2 = vld [vmem:[%s6860_s26 + $0x48] sm:$0xf] }
  0x38   : > { %v2109_v9 = vrot.slane %v2108_v0, 4  ;;  %v320_v13 = vsel %vm6886_vm4, %v315_v5, %v319_v47  ;;  %v324_v14 = vrot.slane %v322_v7, 4  ;;  %v327_v18 = vrot.slane %v325_v8, 5  ;;  %v7013_v8 = vld [vmem:[%s6860_s26 + $0x4c] sm:$0xf] }
  0x39   : > { %v341_v19 = vshll.u32 %v210_v4, 16  ;;  %v5352_v21 = vcombine.low %v310_v61, %v320_v13  ;;  %v2119_v24 = vrot.slane %v2118_v17, 4  ;;  %v333_v25 = vrot.slane %v331_v10, 5  ;;  %v211_v61 = vld [vmem:[%s6860_s26 + $0x44] sm:$0x1] }
  0x3a   : > { %v2114_v23 = vsel %vm6886_vm4, %v2109_v9, %v2113_v56  ;;  %v328_v27 = vor.u32 %v327_v18, %v324_v14  ;;  %v337_v29 = vrot.slane %v335_v11, 4  ;;  %v2126_v35 = vshrl.u32 %v5539_v12, 16 }
  0x3b   : > { %v343_v31 = vrot.slane %v341_v19, 5  ;;  %6111 = vmatmul.mubr.msk.bf16.gmra.mrb[4].mxu1 %vm659_vm3, %v5352_v21  ;;  %v2124_v37 = vsel %vm6886_vm4, %v2119_v24, %v2123_v6  ;;  %v2129_v36 = vshll.u32 %v5539_v12, 16  ;;  %v2135_v38 = vshll.u32 %v6990_v20, 16 }
  0x3c   : > { %v2139_v39 = vshrl.u32 %v6990_v20, 16  ;;  %v5579_v43 = vcombine.low %v2114_v23, %v2124_v37  ;;  %v329_v44 = vrot.slane %v328_v27, 4  ;;  %v338_v45 = vor.u32 %v337_v29, %v333_v25  ;;  %v7021_v23 = vld [vmem:[%s6860_s26 + $0x50] sm:$0x1]  ;;  %v7025_v27 = vld [vmem:[%s6860_s26 + $0x48] sm:$0xf] }
  0x3d   : > { %v2128_v47 = vrot.slane %v2126_v35, 4  ;;  %v2131_v48 = vrot.slane %v2129_v36, 5  ;;  %v2137_v49 = vrot.slane %v2135_v38, 5  ;;  %v2145_v51 = vshll.u32 %v6995_v34, 16  ;;  %v7028_v36 = vld [vmem:[%s6860_s26 + $0x4c] sm:$0xf] }
  0x3e   : > { %v2141_v50 = vrot.slane %v2139_v39, 4  ;;  %6247 = vmatmul.mubr.msk.bf16.gmra.mrb[4].mxu0 %vm659_vm3, %v5579_v43  ;;  %v334_v52 = vsel %vm6886_vm4, %v329_v44, %v333_v25  ;;  %v339_v53 = vrot.slane %v338_v45, 4  ;;  %v346_v55 = vshrl.u32 %v183_v42, 16 }
  0x3f   : > { %v349_v56 = vshll.u32 %v183_v42, 16  ;;  %v2132_v57 = vor.u32 %v2131_v48, %v2128_v47  ;;  %v2147_v59 = vrot.slane %v2145_v51, 5  ;;  %v355_v0 = vshll.u32 %v184_v26, 16 }
  0x40   : > { %v2142_v58 = vor.u32 %v2141_v50, %v2137_v49  ;;  %v344_v4 = vsel %vm6886_vm4, %v339_v53, %v343_v31  ;;  %v348_v5 = vrot.slane %v346_v55, 4  ;;  %v359_v7 = vshrl.u32 %v184_v26, 16  ;;  %v212_v26 = vld [vmem:[%s6860_s26 + $0x50] sm:$0x1]  ;;  %v5545_v53 = vld [vmem:[%s6860_s26 + $0x54] sm:$0xf] }
  0x41   : > { %v351_v6 = vrot.slane %v349_v56, 5  ;;  %v5353_v9 = vcombine.low %v334_v52, %v344_v4  ;;  %v2133_v17 = vrot.slane %v2132_v57, 4  ;;  %v357_v11 = vrot.slane %v355_v0, 5  ;;  %v7044_v4 = vld [vmem:[%s6860_s26 + $0x58] sm:$0xf] }
  0x42   : > { %v2143_v10 = vrot.slane %v2142_v58, 4  ;;  %v361_v13 = vrot.slane %v359_v7, 4  ;;  %v365_v14 = vshll.u32 %v211_v61, 16  ;;  %v2150_v18 = vshrl.u32 %v5542_v2, 16 }
  0x43   : > { %v352_v12 = vor.u32 %v351_v6, %v348_v5  ;;  %6114 = vmatprep.mubr.msk.bf16.mxu1 %vm659_vm3, %v5353_v9  ;;  %v2138_v19 = vsel %vm6886_vm4, %v2133_v17, %v2137_v49  ;;  %v2153_v24 = vshll.u32 %v5542_v2, 16  ;;  %v2159_v25 = vshll.u32 %v7013_v8, 16 }
  0x44   : > { %v2148_v21 = vsel %vm6886_vm4, %v2143_v10, %v2147_v59  ;;  %v362_v35 = vor.u32 %v361_v13, %v357_v11  ;;  %v367_v37 = vrot.slane %v365_v14, 5  ;;  %v2152_v38 = vrot.slane %v2150_v18, 4 }
  0x45   : > { %v5580_v29 = vcombine.low %v2138_v19, %v2148_v21  ;;  %v353_v31 = vrot.slane %v352_v12, 4  ;;  %v2155_v39 = vrot.slane %v2153_v24, 5  ;;  %v2161_v42 = vrot.slane %v2159_v25, 5  ;;  %v7050_v12 = vld [vmem:[%s6860_s26 + $0x5c] sm:$0x1] }
  0x46   : > { %v2163_v43 = vshrl.u32 %v7013_v8, 16  ;;  %v363_v45 = vrot.slane %v362_v35, 4  ;;  %v2169_v47 = vshll.u32 %v7021_v23, 16  ;;  %v370_v48 = vshrl.u32 %v7025_v27, 16  ;;  %v7054_v24 = vld [vmem:[%s6860_s26 + $0x54] sm:$0xf] }
  0x47   : > { %6250 = vmatprep.mubr.msk.bf16.mxu0 %vm659_vm3, %v5580_v29  ;;  %v358_v44 = vsel %vm6886_vm4, %v353_v31, %v357_v11  ;;  %v2156_v49 = vor.u32 %v2155_v39, %v2152_v38  ;;  %v373_v51 = vshll.u32 %v7025_v27, 16  ;;  %v379_v52 = vshll.u32 %v7028_v36, 16 }
  0x48   : > { %v2165_v50 = vrot.slane %v2163_v43, 4  ;;  %v368_v55 = vsel %vm6886_vm4, %v363_v45, %v367_v37  ;;  %v2171_v56 = vrot.slane %v2169_v47, 5  ;;  %v372_v57 = vrot.slane %v370_v48, 4  ;;  %v7060_v37 = vld [vmem:[%s6860_s26 + $0x58] sm:$0xf] }
  0x49   : > { %v383_v58 = vshrl.u32 %v7028_v36, 16  ;;  %v5354_v59 = vcombine.low %v358_v44, %v368_v55  ;;  %v2157_v61 = vrot.slane %v2156_v49, 4  ;;  %v375_v2 = vrot.slane %v373_v51, 5 }
  0x4a   : > { %v2166_v0 = vor.u32 %v2165_v50, %v2161_v42  ;;  %v381_v5 = vrot.slane %v379_v52, 5  ;;  %v389_v7 = vshll.u32 %v212_v26, 16  ;;  %v2174_v9 = vshrl.u32 %v5545_v53, 16  ;;  %v213_v26 = vld [vmem:[%s6860_s26 + $0x5c] sm:$0x1] }
  0x4b   : > { %v385_v6 = vrot.slane %v383_v58, 4  ;;  %6115 = vmatmul.mubr.msk.bf16.gmra.mrb[8].mxu1 %vm659_vm3, %v5354_v59  ;;  %v2162_v17 = vsel %vm6886_vm4, %v2157_v61, %v2161_v42  ;;  %v376_v11 = vor.u32 %v375_v2, %v372_v57  ;;  %v2177_v13 = vshll.u32 %v5545_v53, 16  ;;  %v5548_v53 = vld [vmem:[%s6860_s26 + $0x60] sm:$0xf]  ;;  %v7074_v59 = vld [vmem:[%s6860_s26 + $0x64] sm:$0xf] }
  0x4c   : > { %v2167_v10 = vrot.slane %v2166_v0, 4  ;;  %v391_v18 = vrot.slane %v389_v7, 5  ;;  %v2176_v19 = vrot.slane %v2174_v9, 4  ;;  %v2183_v21 = vshll.u32 %v7044_v4, 16  ;;  %v7081_v9 = vld [vmem:[%s6860_s26 + $0x68] sm:$0x1] }
  0x4d   : > { %v386_v14 = vor.u32 %v385_v6, %v381_v5  ;;  %v377_v29 = vrot.slane %v376_v11, 4  ;;  %v2179_v31 = vrot.slane %v2177_v13, 5  ;;  %v2187_v35 = vshrl.u32 %v7044_v4, 16 }
  0x4e   : > { %v2172_v25 = vsel %vm6886_vm4, %v2167_v10, %v2171_v56  ;;  %v2185_v42 = vrot.slane %v2183_v21, 5  ;;  %v2193_v43 = vshll.u32 %v7050_v12, 16  ;;  %v394_v48 = vshrl.u32 %v7054_v24, 16 }
  0x4f   : > { %v5581_v38 = vcombine.low %v2162_v17, %v2172_v25  ;;  %v387_v39 = vrot.slane %v386_v14, 4  ;;  %v382_v44 = vsel %vm6886_vm4, %v377_v29, %v381_v5  ;;  %v2180_v45 = vor.u32 %v2179_v31, %v2176_v19  ;;  %v7085_v19 = vld [vmem:[%s6860_s26 + $0x60] sm:$0xf] }
  0x50   : > { %v2189_v47 = vrot.slane %v2187_v35, 4  ;;  %v2195_v50 = vrot.slane %v2193_v43, 5  ;;  %v397_v51 = vshll.u32 %v7054_v24, 16  ;;  %v403_v52 = vshll.u32 %v7060_v37, 16  ;;  %v7091_v35 = vld [vmem:[%s6860_s26 + $0x64] sm:$0xf] }
  0x51   : > { %6251 = vmatmul.mubr.msk.bf16.gmra.mrb[8].mxu0 %vm659_vm3, %v5581_v38  ;;  %v392_v49 = vsel %vm6886_vm4, %v387_v39, %v391_v18  ;;  %v2181_v56 = vrot.slane %v2180_v45, 4  ;;  %v396_v58 = vrot.slane %v394_v48, 4  ;;  %v407_v2 = vshrl.u32 %v7060_v37, 16 }
  0x52   : > { %v5355_v55 = vcombine.low %v382_v44, %v392_v49  ;;  %v2190_v57 = vor.u32 %v2189_v47, %v2185_v42  ;;  %v399_v61 = vrot.slane %v397_v51, 5  ;;  %v405_v0 = vrot.slane %v403_v52, 5 }
  0x53   : > { %v413_v5 = vshll.u32 %v213_v26, 16  ;;  %v2186_v6 = vsel %vm6886_vm4, %v2181_v56, %v2185_v42  ;;  %v2198_v17 = vshrl.u32 %v5548_v53, 16  ;;  %v2201_v10 = vshll.u32 %v5548_v53, 16 }
  0x54   : > { %6118 = vmatprep.mubr.msk.bf16.mxu1 %vm659_vm3, %v5355_v55  ;;  %v2191_v7 = vrot.slane %v2190_v57, 4  ;;  %v400_v11 = vor.u32 %v399_v61, %v396_v58  ;;  %v409_v13 = vrot.slane %v407_v2, 4  ;;  %v2207_v18 = vshll.u32 %v7074_v59, 16  ;;  %v5608_v58 = vld [vmem:[%s6860_s26 + $0xc] sm:$0xe] }
  0x55   : > { %v415_v14 = vrot.slane %v413_v5, 5  ;;  %v2200_v25 = vrot.slane %v2198_v17, 4  ;;  %v2203_v29 = vrot.slane %v2201_v10, 5  ;;  %v2211_v31 = vshrl.u32 %v7074_v59, 16 }
  0x56   : > { %v2196_v21 = vsel %vm6886_vm4, %v2191_v7, %v2195_v50  ;;  %v401_v39 = vrot.slane %v400_v11, 4  ;;  %v410_v42 = vor.u32 %v409_v13, %v405_v0  ;;  %v2209_v43 = vrot.slane %v2207_v18, 5  ;;  %v214_v50 = vld [vmem:[%s6860_s26 + $0x68] sm:$0x1] }
  0x57   : > { %v5582_v38 = vcombine.low %v2186_v6, %v2196_v21  ;;  %v2204_v44 = vor.u32 %v2203_v29, %v2200_v25  ;;  %v2213_v45 = vrot.slane %v2211_v31, 4  ;;  %v2217_v47 = vshll.u32 %v7081_v9, 16  ;;  %v7119_v29 = vld [vmem:[%s6860_s26 + $0x70] sm:$0xf] }
  0x58   : > { %v418_v26 = vshrl.u32 %v7085_v19, 16  ;;  %v406_v48 = vsel %vm6886_vm4, %v401_v39, %v405_v0  ;;  %v411_v49 = vrot.slane %v410_v42, 4  ;;  %v421_v51 = vshll.u32 %v7085_v19, 16  ;;  %v7106_v0 = vld [vmem:[%s6860_s26 + $0x6c] sm:$0xf] }
  0x59   : > { %6254 = vmatprep.mubr.msk.bf16.mxu0 %vm659_vm3, %v5582_v38  ;;  %v427_v52 = vshll.u32 %v7091_v35, 16  ;;  %v2205_v53 = vrot.slane %v2204_v44, 4  ;;  %v2214_v55 = vor.u32 %v2213_v45, %v2209_v43  ;;  %v2219_v56 = vrot.slane %v2217_v47, 5 }
  0x5a   : > { %v420_v57 = vrot.slane %v418_v26, 4  ;;  %v416_v61 = vsel %vm6886_vm4, %v411_v49, %v415_v14  ;;  %v423_v2 = vrot.slane %v421_v51, 5  ;;  %v431_v6 = vshrl.u32 %v7091_v35, 16  ;;  %v215_v26 = vld [vmem:[%s6860_s26 + $0x74] sm:$0x1] }
  0x5b   : > { %v429_v5 = vrot.slane %v427_v52, 5  ;;  %v5356_v7 = vcombine.low %v406_v48, %v416_v61  ;;  %v2210_v17 = vsel %vm6886_vm4, %v2205_v53, %v2209_v43  ;;  %v2215_v10 = vrot.slane %v2214_v55, 4  ;;  %v5609_v48 = vld [vmem:[%s6860_s26 + $0x18] sm:$0xe] }
  0x5c   : > { %v437_v11 = vshll.u32 %v214_v50, 16  ;;  %v424_v14 = vor.u32 %v423_v2, %v420_v57  ;;  %v433_v18 = vrot.slane %v431_v6, 4  ;;  %v5624_v21 = vrot.slane %v5608_v58, 9  ;;  %v7138_v53 = vld [vmem:[%s6860_s26 + $0x78] sm:$0xf] }
  0x5d   : > { %v2775_v25 = vrot.slane %v2773_v62, 4  ;;  %6119 = vmatmul.mubr.msk.bf16.gmra.mrb[12].mxu1 %vm659_vm3, %v5356_v7  ;;  %v2220_v31 = vsel %vm6886_vm4, %v2215_v10, %v2219_v56  ;;  %v442_v39 = vshrl.u32 %v7106_v0, 16  ;;  %v445_v42 = vshll.u32 %v7106_v0, 16  ;;  %v216_v57 = vld [vmem:[%s6860_s26 + $0x80] sm:$0x1] }
  0x5e   : > { %v439_v38 = vrot.slane %v437_v11, 5  ;;  %v5583_v43 = vcombine.low %v2210_v17, %v2220_v31  ;;  %v425_v44 = vrot.slane %v424_v14, 4  ;;  %v434_v45 = vor.u32 %v433_v18, %v429_v5  ;;  %v5610_v10 = vld [vmem:[%s6860_s26 + $0x24] sm:$0xe] }
  0x5f   : > { %v2774_v47 = vsel %vm7112_vm7, %v5624_v21, %v2773_v62  ;;  %v2777_v49 = vsel %vm7112_vm7, %v2775_v25, %v2776_v63  ;;  %v444_v50 = vrot.slane %v442_v39, 4  ;;  %v447_v51 = vrot.slane %v445_v42, 5  ;;  %v7164_v39 = vld [vmem:[%s6860_s26 + $0x84] sm:$0xf] }
  0x60   : > { %v451_v52 = vshll.u32 %v7119_v29, 16  ;;  %6255 = vmatmul.mubr.msk.bf16.gmra.mrb[12].mxu0 %vm659_vm3, %v5583_v43  ;;  %v430_v15 = vsel %vm6886_vm4, %v425_v44, %v429_v5  ;;  %v435_v62 = vrot.slane %v434_v45, 4  ;;  %v5641_v55 = vcombine.low %v2774_v47, %v2777_v49  ;;  %v7172_v43 = vld [vmem:[%s6860_s26 + $0x88] sm:$0xf] }
  0x61   : > { %v455_v56 = vshrl.u32 %v7119_v29, 16  ;;  %v448_v63 = vor.u32 %v447_v51, %v444_v50  ;;  %v461_v61 = vshll.u32 %v215_v26, 16  ;;  %v5625_v2 = vrot.slane %v5609_v48, 9 }
  0x62   : > { %v453_v58 = vrot.slane %v451_v52, 5  ;;  %v440_v6 = vsel %vm6886_vm4, %v435_v62, %v439_v38  ;;  %6276 = vmatprep.mubr.msk.bf16.mxu0 %vm659_vm3, %v5641_v55  ;;  %v2784_v5 = vsel %vm7112_vm7, %v6929_v30, %v2783_v28  ;;  %v466_v17 = vshrl.u32 %v7138_v53, 16  ;;  %v217_v52 = vld [vmem:[%s6860_s26 + $0x8c] sm:$0x1] }
  0x63   : > { %v457_v7 = vrot.slane %v455_v56, 4  ;;  %v5357_v11 = vcombine.low %v430_v15, %v440_v6  ;;  %v449_v14 = vrot.slane %v448_v63, 4  ;;  %v463_v18 = vrot.slane %v461_v61, 5 }
  0x64   : > { %v2781_v21 = vsel %vm7112_vm7, %v5625_v2, %v2780_v22  ;;  %v468_v38 = vrot.slane %v466_v17, 4  ;;  %v469_v1 = vshll.u32 %v7138_v53, 16  ;;  %v475_v30 = vshll.u32 %v7145_v16, 16  ;;  %v7177_v22 = vld [vmem:[%s8967_s1 + $0x1c] sm:$0xf] }
  0x65   : > { %v458_v25 = vor.u32 %v457_v7, %v453_v58  ;;  %v5642_v31 = vcombine.low %v2781_v21, %v2784_v5  ;;  %6122 = vmatprep.mubr.msk.bf16.mxu1 %vm659_vm3, %v5357_v11  ;;  %v454_v28 = vsel %vm6886_vm4, %v449_v14, %v453_v58  ;;  %v479_v60 = vshrl.u32 %v7145_v16, 16  ;;  %v7196_v5 = vld [vmem:[%s6860_s26 + $0x90] sm:$0xf] }
  0x66   : > { %v485_v42 = vshll.u32 %v216_v57, 16  ;;  %v471_v45 = vrot.slane %v469_v1, 5  ;;  %v5626_v47 = vrot.slane %v5610_v10, 9  ;;  %v2787_v26 = vrot.slane %v6936_v46, 5  ;;  %v5611_v57 = vld [vmem:[%s6860_s26 + $0x30] sm:$0xe] }
  0x67   : > { %v459_v44 = vrot.slane %v458_v25, 4  ;;  %v477_v48 = vrot.slane %v475_v30, 5  ;;  %v481_v49 = vrot.slane %v479_v60, 4  ;;  %v2790_v51 = vrot.slane %v6945_v54, 5  ;;  %v7208_v30 = vld [vmem:[%s6860_s26 + $0x94] sm:$0xf] }
  0x68   : > { %v487_v50 = vrot.slane %v485_v42, 5  ;;  %6277 = vmatmul.mubr.msk.bf16.vlgmr.msra.gmra.mrb[0].mxu0 %vm659_vm3, %v5642_v31  ;;  %v472_v62 = vor.u32 %v471_v45, %v468_v38  ;;  %v2788_v55 = vsel %vm7112_vm7, %v5626_v47, %v2787_v26  ;;  %v2789_v56 = vrot.slane %v2787_v26, 4  ;;  %v218_v60 = vld [vmem:[%s6860_s26 + $0x98] sm:$0x1]  ;;  %v5612_v26 = vld [vmem:[%s6860_s26 + $0x3c] sm:$0xe] }
  0x69   : > { %v464_v15 = vsel %vm6886_vm4, %v459_v44, %v463_v18  ;;  %6309 = vmatpush3.bf16.msra.mxu0 %v6896_v41  ;;  %v482_v46 = vor.u32 %v481_v49, %v477_v48  ;;  %v490_v58 = vshrl.u32 %v7164_v39, 16  ;;  %v493_v54 = vshll.u32 %v7164_v39, 16 }
  0x6a   : > { %v5358_v63 = vcombine.low %v454_v28, %v464_v15  ;;  %v473_v61 = vrot.slane %v472_v62, 4  ;;  %v2791_v2 = vsel %vm7112_vm7, %v2789_v56, %v2790_v51  ;;  %v499_v6 = vshll.u32 %v7172_v43, 16  ;;  %6676 = vmatprep.subr.msk.bf16.mxu0 %vm708_vm0, %v7177_v22 }
  0x6b   : > { %v503_v7 = vshrl.u32 %v7172_v43, 16  ;;  %v483_v41 = vrot.slane %v482_v46, 4  ;;  %v5643_v17 = vcombine.low %v2788_v55, %v2791_v2  ;;  %v492_v10 = vrot.slane %v490_v58, 4  ;;  %v7228_v46 = vld [vmem:[%s6860_s26 + $0xa0] sm:$0xf] }
  0x6c   : > { %6123 = vmatmul.mubr.msk.bf16.gmra.mrb[16].mxu1 %vm659_vm3, %v5358_v63  ;;  %v495_v11 = vrot.slane %v493_v54, 5  ;;  %v478_v14 = vsel %vm6886_vm4, %v473_v61, %v477_v48  ;;  %v501_v18 = vrot.slane %v499_v6, 5  ;;  %v509_v25 = vshll.u32 %v217_v52, 16  ;;  %v7217_v52 = vld [vmem:[%s6860_s26 + $0x9c] sm:$0xf] }
  0x6d   : > { %v505_v21 = vrot.slane %v503_v7, 4  ;;  %v488_v31 = vsel %vm6886_vm4, %v483_v41, %v487_v50  ;;  %6280 = vmatprep.mubr.msk.bf16.mxu0 %vm659_vm3, %v5643_v17  ;;  %v5627_v1 = vrot.slane %v5611_v57, 9  ;;  %v2794_v28 = vrot.slane %v6965_v33, 5 }
  0x6e   : > { %v496_v38 = vor.u32 %v495_v11, %v492_v10  ;;  %v5359_v42 = vcombine.low %v478_v14, %v488_v31  ;;  %v511_v45 = vrot.slane %v509_v25, 5  ;;  %v2797_v47 = vrot.slane %v6973_v40, 5  ;;  %v219_v10 = vld [vmem:[%s6860_s26 + $0xa4] sm:$0x1]  ;;  %v5613_v11 = vld [vmem:[%s6860_s26 + $0x48] sm:$0xe] }
  0x6f   : > { %v506_v44 = vor.u32 %v505_v21, %v501_v18  ;;  %v2795_v49 = vsel %vm7112_vm7, %v5627_v1, %v2794_v28  ;;  %v2796_v50 = vrot.slane %v2794_v28, 4  ;;  %v514_v51 = vshrl.u32 %v7196_v5, 16 }
  0x70   : > { %v497_v48 = vrot.slane %v496_v38, 4  ;;  %6126 = vmatprep.mubr.msk.bf16.mxu1 %vm659_vm3, %v5359_v42  ;;  %v517_v15 = vshll.u32 %v7196_v5, 16  ;;  %v523_v62 = vshll.u32 %v7208_v30, 16  ;;  %v527_v40 = vshrl.u32 %v7208_v30, 16 }
  0x71   : > { %v507_v33 = vrot.slane %v506_v44, 4  ;;  %v2798_v56 = vsel %vm7112_vm7, %v2796_v50, %v2797_v47  ;;  %v516_v57 = vrot.slane %v514_v51, 4  ;;  %v533_v63 = vshll.u32 %v218_v60, 16 }
  0x72   : > { %v502_v55 = vsel %vm6886_vm4, %v497_v48, %v501_v18  ;;  %v5644_v54 = vcombine.low %v2795_v49, %v2798_v56  ;;  %v519_v61 = vrot.slane %v517_v15, 5  ;;  %v525_v2 = vrot.slane %v523_v62, 5  ;;  %v7254_v56 = vld [vmem:[%s6860_s26 + $0xac] sm:$0xf] }
  0x73   : > { %v512_v58 = vsel %vm6886_vm4, %v507_v33, %v511_v45  ;;  %v529_v7 = vrot.slane %v527_v40, 4  ;;  %v535_v41 = vrot.slane %v533_v63, 5  ;;  %v5628_v17 = vrot.slane %v5612_v26, 9  ;;  %v7249_v33 = vld [vmem:[%s6860_s26 + $0xa8] sm:$0xf] }
  0x74   : > { %v5360_v6 = vcombine.low %v502_v55, %v512_v58  ;;  %6281 = vmatmul.mubr.msk.bf16.gmra.mrb[4].mxu0 %vm659_vm3, %v5644_v54  ;;  %v520_v14 = vor.u32 %v519_v61, %v516_v57  ;;  %v2801_v18 = vrot.slane %v6990_v20, 5  ;;  %v2804_v21 = vrot.slane %v6995_v34, 5  ;;  %v220_v61 = vld [vmem:[%s6860_s26 + $0xb0] sm:$0x1] }
  0x75   : > { %v538_v25 = vshrl.u32 %v7217_v52, 16  ;;  %v530_v31 = vor.u32 %v529_v7, %v525_v2  ;;  %v541_v38 = vshll.u32 %v7217_v52, 16  ;;  %v547_v1 = vshll.u32 %v7228_v46, 16 }
  0x76   : > { %6127 = vmatmul.mubr.msk.bf16.gmra.mrb[20].mxu1 %vm659_vm3, %v5360_v6  ;;  %v551_v28 = vshrl.u32 %v7228_v46, 16  ;;  %v521_v60 = vrot.slane %v520_v14, 4  ;;  %v2802_v42 = vsel %vm7112_vm7, %v5628_v17, %v2801_v18  ;;  %v2803_v20 = vrot.slane %v2801_v18, 4  ;;  %v7269_v14 = vld [vmem:[%s6860_s26 + $0xb4] sm:$0xf] }
  0x77   : > { %v540_v44 = vrot.slane %v538_v25, 4  ;;  %v531_v34 = vrot.slane %v530_v31, 4  ;;  %v543_v45 = vrot.slane %v541_v38, 5  ;;  %v549_v47 = vrot.slane %v547_v1, 5 }
  0x78   : > { %v553_v26 = vrot.slane %v551_v28, 4  ;;  %v526_v48 = vsel %vm6886_vm4, %v521_v60, %v525_v2  ;;  %v2805_v49 = vsel %vm7112_vm7, %v2803_v20, %v2804_v21  ;;  %v557_v50 = vshll.u32 %v219_v10, 16  ;;  %v5614_v2 = vld [vmem:[%s6860_s26 + $0x54] sm:$0xe] }
  0x79   : > { %v5629_v51 = vrot.slane %v5613_v11, 9  ;;  %v536_v15 = vsel %vm6886_vm4, %v531_v34, %v535_v41  ;;  %v5645_v62 = vcombine.low %v2802_v42, %v2805_v49  ;;  %v544_v40 = vor.u32 %v543_v45, %v540_v44  ;;  %v7278_v42 = vld [vmem:[%s6860_s26 + $0xb8] sm:$0xf]  ;;  %v221_v49 = vld [vmem:[%s6860_s26 + $0xbc] sm:$0x1] }
  0x7a   : > { %v554_v55 = vor.u32 %v553_v26, %v549_v47  ;;  %v5361_v57 = vcombine.low %v526_v48, %v536_v15  ;;  %v559_v63 = vrot.slane %v557_v50, 5  ;;  %v2808_v58 = vrot.slane %v7013_v8, 5 }
  0x7b   : > { %v2811_v54 = vrot.slane %v7021_v23, 5  ;;  %6284 = vmatprep.mubr.msk.bf16.mxu0 %vm659_vm3, %v5645_v62  ;;  %v545_v6 = vrot.slane %v544_v40, 4  ;;  %v562_v41 = vshrl.u32 %v7249_v33, 16  ;;  %v565_v17 = vshll.u32 %v7249_v33, 16 }
  0x7c   : > { %v555_v7 = vrot.slane %v554_v55, 4  ;;  %6130 = vmatprep.mubr.msk.bf16.mxu1 %vm659_vm3, %v5361_v57  ;;  %v2809_v10 = vsel %vm7112_vm7, %v5629_v51, %v2808_v58  ;;  %v2810_v11 = vrot.slane %v2808_v58, 4  ;;  %v571_v8 = vshll.u32 %v7254_v56, 16  ;;  %v5615_v55 = vld [vmem:[%s6860_s26 + $0x60] sm:$0xe] }
  0x7d   : > { %v575_v23 = vshrl.u32 %v7254_v56, 16  ;;  %v550_v18 = vsel %vm6886_vm4, %v545_v6, %v549_v47  ;;  %v564_v25 = vrot.slane %v562_v41, 4  ;;  %v567_v31 = vrot.slane %v565_v17, 5  ;;  %v5616_v6 = vld [vmem:[%s6860_s26 + $0x6c] sm:$0xe] }
  0x7e   : > { %v560_v21 = vsel %vm6886_vm4, %v555_v7, %v559_v63  ;;  %v2812_v1 = vsel %vm7112_vm7, %v2810_v11, %v2811_v54  ;;  %v573_v28 = vrot.slane %v571_v8, 5  ;;  %v581_v34 = vshll.u32 %v220_v61, 16  ;;  %v5552_v11 = vld [vmem:[%s6860_s26 + $0x70] sm:$0xf]  ;;  %v5553_v8 = vld [vmem:[%s6860_s26 + $0x74] sm:$0x1] }
  0x7f   : > { %v5362_v38 = vcombine.low %v550_v18, %v560_v21  ;;  %v577_v60 = vrot.slane %v575_v23, 4  ;;  %v5646_v20 = vcombine.low %v2809_v10, %v2812_v1  ;;  %v568_v44 = vor.u32 %v567_v31, %v564_v25 }
  0x80   : > { %v5630_v45 = vrot.slane %v5614_v2, 9  ;;  %v2815_v26 = vrot.slane %v7044_v4, 5  ;;  %v2818_v48 = vrot.slane %v7050_v12, 5  ;;  %v586_v50 = vshrl.u32 %v7269_v14, 16 }
  0x81   : > { %6131 = vmatmul.mubr.msk.bf16.gmra.mrb[24].mxu1 %vm659_vm3, %v5362_v38  ;;  %v578_v47 = vor.u32 %v577_v60, %v573_v28  ;;  %6285 = vmatmul.mubr.msk.bf16.gmra.mrb[8].mxu0 %vm659_vm3, %v5646_v20  ;;  %v569_v51 = vrot.slane %v568_v44, 4  ;;  %v583_v15 = vrot.slane %v581_v34, 5  ;;  %v589_v62 = vshll.u32 %v7269_v14, 16 }
  0x82   : > { %v595_v40 = vshll.u32 %v7278_v42, 16  ;;  %v2816_v4 = vsel %vm7112_vm7, %v5630_v45, %v2815_v26  ;;  %v2817_v12 = vrot.slane %v2815_v26, 4  ;;  %v588_v63 = vrot.slane %v586_v50, 4 }
  0x83   : > { %v579_v57 = vrot.slane %v578_v47, 4  ;;  %v574_v58 = vsel %vm6886_vm4, %v569_v51, %v573_v28  ;;  %v591_v54 = vrot.slane %v589_v62, 5  ;;  %v599_v2 = vshrl.u32 %v7278_v42, 16  ;;  %v5617_v47 = vld [vmem:[%s6860_s26 + $0x78] sm:$0xe] }
  0x84   : > { %v597_v61 = vrot.slane %v595_v40, 5  ;;  %v2819_v41 = vsel %vm7112_vm7, %v2817_v12, %v2818_v48  ;;  %v605_v17 = vshll.u32 %v221_v49, 16  ;;  %v5631_v10 = vrot.slane %v5615_v55, 9  ;;  %v6737_v51 = vld [vmem:[%s6860_s26] sm:$0xf] }
  0x85   : > { %v584_v7 = vsel %vm6886_vm4, %v579_v57, %v583_v15  ;;  %v5647_v18 = vcombine.low %v2816_v4, %v2819_v41  ;;  %v592_v21 = vor.u32 %v591_v54, %v588_v63  ;;  %v601_v25 = vrot.slane %v599_v2, 4  ;;  %v7316_v15 = vld [vmem:[%s6860_s26 + $0x4] sm:$0xf]  ;;  %v7320_v40 = vld [vmem:[%s6860_s26 + $0x7c] sm:$0xf] }
  0x86   : > { %v5363_v23 = vcombine.low %v574_v58, %v584_v7  ;;  %v607_v31 = vrot.slane %v605_v17, 5  ;;  %v2822_v38 = vrot.slane %v7074_v59, 5  ;;  %v2825_v1 = vrot.slane %v7081_v9, 5  ;;  %v7323_v55 = vld [vmem:[%s6860_s26 + $0x80] sm:$0x1] }
  0x87   : > { %v5632_v28 = vrot.slane %v5616_v6, 9  ;;  %6288 = vmatprep.mubr.msk.bf16.mxu0 %vm659_vm3, %v5647_v18  ;;  %v593_v60 = vrot.slane %v592_v21, 4  ;;  %v602_v20 = vor.u32 %v601_v25, %v597_v61  ;;  %v2829_v44 = vrot.slane %v5552_v11, 5  ;;  %v5558_v57 = vld [vmem:[%s6860_s26 + $0x88] sm:$0xf] }
  0x88   : > { %6134 = vmatprep.mubr.msk.bf16.mxu1 %vm659_vm3, %v5363_v23  ;;  %v2832_v34 = vrot.slane %v5553_v8, 5  ;;  %v2823_v45 = vsel %vm7112_vm7, %v5631_v10, %v2822_v38  ;;  %v2824_v59 = vrot.slane %v2822_v38, 4  ;;  %v5381_v62 = vcombine.low %v6737_v51, %v7316_v15  ;;  %v5559_v54 = vld [vmem:[%s6860_s26 + $0x8c] sm:$0x1]  ;;  %v5561_v17 = vld [vmem:[%s6860_s26 + $0x94] sm:$0xf] }
  0x89   : > { %v598_v9 = vsel %vm6886_vm4, %v593_v60, %v597_v61  ;;  %v603_v26 = vrot.slane %v602_v20, 4  ;;  %v2830_v48 = vsel %vm7112_vm7, %v5632_v28, %v2829_v44  ;;  %v2831_v49 = vrot.slane %v2829_v44, 4  ;;  %v5618_v61 = vld [vmem:[%s6860_s26 + $0x84] sm:$0xe]  ;;  %v5619_v23 = vld [vmem:[%s6860_s26 + $0x90] sm:$0xe] }
  0x8a   : > { %v2826_v50 = vsel %vm7112_vm7, %v2824_v59, %v2825_v1  ;;  %v5633_v58 = vrot.slane %v5617_v47, 9  ;;  %v2836_v7 = vrot.slane %v7320_v40, 5  ;;  %v2839_v41 = vrot.slane %v7323_v55, 5  ;;  %v5562_v25 = vld [vmem:[%s6860_s26 + $0x98] sm:$0x1] }
  0x8b   : > { %v608_v4 = vsel %vm6886_vm4, %v603_v26, %v607_v31  ;;  %v5648_v12 = vcombine.low %v2823_v45, %v2826_v50  ;;  %v2833_v63 = vsel %vm7112_vm7, %v2831_v49, %v2832_v34  ;;  %v5634_v10 = vrot.slane %v5618_v61, 9  ;;  %v5564_v31 = vld [vmem:[%s6860_s26 + $0xa0] sm:$0xf]  ;;  %v5565_v60 = vld [vmem:[%s6860_s26 + $0xa4] sm:$0x1] }
  0x8c   : > { %v5364_v2 = vcombine.low %v598_v9, %v608_v4  ;;  %v5649_v6 = vcombine.low %v2830_v48, %v2833_v63  ;;  %v2843_v11 = vrot.slane %v5558_v57, 5  ;;  %v2846_v8 = vrot.slane %v5559_v54, 5  ;;  %v5620_v20 = vld [vmem:[%s6860_s26 + $0x9c] sm:$0xe]  ;;  %v6739_v44 = vld [vmem:[%s6860_s26 + $0xc] sm:$0xf] }
  0x8d   : > { %6289 = vmatmul.mubr.msk.bf16.gmra.mrb[12].mxu0 %vm659_vm3, %v5648_v12  ;;  %v2837_v18 = vsel %vm7112_vm7, %v5633_v58, %v2836_v7  ;;  %v2838_v21 = vrot.slane %v2836_v7, 4  ;;  %v2850_v28 = vrot.slane %v5561_v17, 5  ;;  %v7350_v34 = vld [vmem:[%s6860_s26 + $0x10] sm:$0xf]  ;;  %v6741_v47 = vld [vmem:[%s6860_s26 + $0x18] sm:$0xf] }
  0x8e   : > { %6135 = vmatmul.mubr.msk.bf16.gmra.mrb[28].mxu1 %vm659_vm3, %v5364_v2  ;;  %6292 = vmatprep.mubr.msk.bf16.mxu0 %vm659_vm3, %v5649_v6  ;;  %v2844_v38 = vsel %vm7112_vm7, %v5634_v10, %v2843_v11  ;;  %v2845_v1 = vrot.slane %v2843_v11, 4  ;;  %v5382_v45 = vcombine.low %v6739_v44, %v7350_v34  ;;  %v7357_v9 = vld [vmem:[%s6860_s26 + $0x1c] sm:$0xf]  ;;  %v5635_v48 = vrot.slane %v5619_v23, 9  ;;  %v5567_v57 = vld [vmem:[%s6860_s26 + $0xac] sm:$0xf] }
  0x8f   : > { %6140 = vmatprep.mubr.msk.bf16.mxu1 %vm659_vm3, %v5381_v62  ;;  %v2840_v59 = vsel %vm7112_vm7, %v2838_v21, %v2839_v41  ;;  %v5383_v26 = vcombine.low %v6741_v47, %v7357_v9  ;;  %v2852_v51 = vrot.slane %v2850_v28, 4  ;;  %v2853_v62 = vrot.slane %v5562_v25, 5  ;;  %v6743_v54 = vld [vmem:[%s8967_s1 + $0x8] sm:$0xf]  ;;  %v5570_v2 = vld [vmem:[%s6860_s26 + $0xb8] sm:$0xf] }
  0x90   : > { %v5650_v49 = vcombine.low %v2837_v18, %v2840_v59  ;;  %v2847_v50 = vsel %vm7112_vm7, %v2845_v1, %v2846_v8  ;;  %v5636_v12 = vrot.slane %v5620_v20, 9  ;;  %v2857_v63 = vrot.slane %v5564_v31, 5  ;;  %v7372_v7 = vld [vmem:[%s8967_s1 + $0xc] sm:$0xf]  ;;  %v5568_v10 = vld [vmem:[%s6860_s26 + $0xb0] sm:$0x1] }
  0x91   : > { %v5651_v4 = vcombine.low %v2844_v38, %v2847_v50  ;;  %v2860_v58 = vrot.slane %v5565_v60, 5  ;;  %v1427_v61 = vsel %vm708_vm0, %v6743_v54, 0  ;;  %v2851_v41 = vsel %vm7112_vm7, %v5635_v48, %v2850_v28  ;;  %v5621_v11 = vld [vmem:[%s6860_s26 + $0xa8] sm:$0xe]  ;;  %v5571_v25 = vld [vmem:[%s6860_s26 + $0xbc] sm:$0x1] }
  0x92   : > { %v2859_v6 = vrot.slane %v2857_v63, 4  ;;  %v2854_v17 = vsel %vm7112_vm7, %v2852_v51, %v2853_v62  ;;  %v2864_v8 = vrot.slane %v5567_v57, 5  ;;  %v2858_v23 = vsel %vm7112_vm7, %v5636_v12, %v2857_v63  ;;  %v5622_v31 = vld [vmem:[%s6860_s26 + $0xb4] sm:$0xe]  ;;  %v6744_v38 = vld [vmem:[%s6860_s26 + $0x24] sm:$0xf] }
  0x93   : > { %v2871_v21 = vrot.slane %v5570_v2, 5  ;;  %v7393_v1 = vld [vmem:[%s6860_s26 + $0x28] sm:$0xf]  ;;  %v5652_v60 = vcombine.low %v2851_v41, %v2854_v17  ;;  %v5637_v44 = vrot.slane %v5621_v11, 9  ;;  %v2867_v59 = vrot.slane %v5568_v10, 5 }
  0x94   : > { %v2861_v18 = vsel %vm7112_vm7, %v2859_v6, %v2860_v58  ;;  %v5384_v28 = vcombine.low %v6744_v38, %v7393_v1  ;;  %v6746_v47 = vld [vmem:[%s6860_s26 + $0x30] sm:$0xf]  ;;  %v2874_v51 = vrot.slane %v5571_v25, 5  ;;  %v5573_v62 = vld [vmem:[%s6860_s26 + $0xc4] sm:$0xf]  ;;  %v2259_v25 = vshrl.u32 %v7320_v40, 16 }
  0x95   : > { %6293 = vmatmul.mubr.msk.bf16.gmra.mrb[16].mxu0 %vm659_vm3, %v5650_v49  ;;  %v5653_v20 = vcombine.low %v2858_v23, %v2861_v18  ;;  %v5638_v49 = vrot.slane %v5622_v31, 9  ;;  %v2873_v50 = vrot.slane %v2871_v21, 4  ;;  %v2865_v57 = vsel %vm7112_vm7, %v5637_v44, %v2864_v8  ;;  %v5623_v12 = vld [vmem:[%s6860_s26 + $0xc0] sm:$0xe]  ;;  %v6748_v41 = vld [vmem:[%s6860_s26 + $0x3c] sm:$0xf] }
  0x96   : > { %6141 = vmatmul.mubr.msk.bf16.vlgmr.msra.gmra.mrb[0].mxu1 %vm659_vm3, %v5382_v45  ;;  %6296 = vmatprep.mubr.msk.bf16.mxu0 %vm659_vm3, %v5651_v4  ;;  %v2866_v45 = vrot.slane %v2864_v8, 4  ;;  %v2878_v63 = vrot.slane %v5573_v62, 5  ;;  %v5639_v6 = vrot.slane %v5623_v12, 9  ;;  %v7418_v17 = vld [vmem:[%s6860_s26 + $0x40] sm:$0xf]  ;;  %v5387_v18 = vcombine.low %v7025_v27, %v7028_v36  ;;  %v6700_v62 = vld [vmem:[%s6860_s26 + $0x24] sm:$0xff]  }
  0x97   : > { %6173 = vmatpush3.bf16.msra.mxu1 %v1427_v61  ;;  %6144 = vmatprep.mubr.msk.bf16.mxu1 %vm659_vm3, %v5383_v26  ;;  %v7398_v26 = vld [vmem:[%s6860_s26 + $0x34] sm:$0xf]  ;;  %v2872_v58 = vsel %vm7112_vm7, %v5638_v49, %v2871_v21  ;;  %v2875_v54 = vsel %vm7112_vm7, %v2873_v50, %v2874_v51  ;;  %v5574_v61 = vld [vmem:[%s6860_s26 + $0xc8] sm:$0x1]  ;;  %v5386_v10 = vcombine.low %v6748_v41, %v7418_v17  ;;  %v2255_v21 = vshll.u32 %v7320_v40, 16 }
  0x98   : > { %6671 = vmatprep.subr.msk.bf16.mxu1 %vm708_vm0, %v7372_v7  ;;  %v5385_v48 = vcombine.low %v6746_v47, %v7398_v26  ;;  %v2868_v4 = vsel %vm7112_vm7, %v2866_v45, %v2867_v59  ;;  %v5655_v11 = vcombine.low %v2872_v58, %v2875_v54  ;;  %v2880_v8 = vrot.slane %v2878_v63, 4  ;;  %v1165_v45 = vld [vmem:[%s6860_s26] sm:$0xe]  ;;  %v1166_v59 = vld [vmem:[%s6860_s26 + $0xc] sm:$0xe] }
  0x99   : > { %v5654_v2 = vcombine.low %v2865_v57, %v2868_v4  ;;  %v2881_v23 = vrot.slane %v5574_v61, 5  ;;  %v2879_v31 = vsel %vm7112_vm7, %v5639_v6, %v2878_v63  ;;  %v7433_v27 = vrot.slane %v2255_v21, 5  ;;  %v1169_v41 = vld [vmem:[%s6860_s26 + $0x30] sm:$0xe] }
  0x9a   : > { %v2261_v36 = vrot.slane %v2259_v25, 4  ;;  %v5389_v44 = vcombine.low %v7085_v19, %v7091_v35  ;;  %v2265_v47 = vshll.u32 %v7323_v55, 16  ;;  %v5413_v19 = vrot.slane %v1165_v45, 9 }
  0x9b   : > { %v2882_v38 = vsel %vm7112_vm7, %v2880_v8, %v2881_v23  ;;  %8988 = vst [vmem:[#allocation3_spill] sm:$0xff] %v7433_v27  ;;  %v5414_v35 = vrot.slane %v1166_v59, 9  ;;  %v1232_v4 = vrot.slane %v7357_v9, 5  ;;  %v1239_v12 = vrot.slane %v7393_v1, 5  ;;  %v1170_v8 = vld [vmem:[%s6860_s26 + $0x3c] sm:$0xe] }
  0x9c   : > { %v5656_v40 = vcombine.low %v2879_v31, %v2882_v38  ;;  %v2262_v49 = vor.u32 %v2261_v36, %v7433_v27  ;;  %v7453_v51 = vrot.slane %v2265_v47, 5  ;;  %v5390_v58 = vcombine.low %v7106_v0, %v7119_v29  ;;  %v1171_v31 = vld [vmem:[%s6860_s26 + $0x48] sm:$0xe]  ;;  %v6754_v59 = vld [vmem:[%s6860_s26 + $0x38] sm:$0x1] }
  0x9d   : > { %6297 = vmatmul.mubr.msk.bf16.gmra.mrb[20].mxu0 %vm659_vm3, %v5652_v60  ;;  %v5388_v60 = vcombine.low %v7054_v24, %v7060_v37  ;;  %v6751_v24 = vld [vmem:[%s6860_s26 + $0x14] sm:$0x1]  ;;  %v4067_v54 = vsel %vm708_vm0, %v7177_v22, 0  ;;  %v5391_v61 = vcombine.low %v7138_v53, %v7145_v16  ;;  %v5392_v6 = vcombine.low %v7164_v39, %v7172_v43  ;;  %v6752_v16 = vld [vmem:[%s6860_s26 + $0x20] sm:$0x1] }
  0x9e   : > { %6145 = vmatmul.mubr.msk.bf16.gmra.mrb[4].mxu1 %vm659_vm3, %v5384_v28  ;;  %6300 = vmatprep.mubr.msk.bf16.mxu0 %vm659_vm3, %v5653_v20  ;;  %v1225_v28 = vrot.slane %v7350_v34, 5  ;;  %v6698_v20 = vld [vmem:[%s6860_s26 + $0x18] sm:$0xff]   ;;  %v6750_v34 = vld [vmem:[%s6860_s26 + $0x8] sm:$0x1]  ;;  %v1228_v37 = vrot.slane %v6751_v24, 5  ;;  %8989 = vst [vmem:[#allocation4_spill] sm:$0xff] %v7453_v51  ;;  %v5393_v9 = vcombine.low %v7196_v5, %v7208_v30 }
  0x9f   : > { %6148 = vmatprep.mubr.msk.bf16.mxu1 %vm659_vm3, %v5385_v48  ;;  %v1218_v48 = vrot.slane %v7316_v15, 5  ;;  %v1221_v50 = vrot.slane %v6750_v34, 5  ;;  %v1167_v15 = vld [vmem:[%s6860_s26 + $0x18] sm:$0xe]  ;;  %v7458_v63 = vrot.slane %v2262_v49, 4  ;;  %v1235_v22 = vrot.slane %v6752_v16, 5 }
  0xa0   : > { %v1227_v55 = vrot.slane %v1225_v28, 4  ;;  %v5415_v1 = vrot.slane %v1167_v15, 9  ;;  %v7480_v29 = vsel %vm7112_vm7, %v5414_v35, %v1225_v28  ;;  %v1241_v25 = vrot.slane %v1239_v12, 4  ;;  %v5738_v24 = vld [vmem:[%s6860_s26 + $0x18] sm:$0xf] }
  0xa1   : > { %v1220_v57 = vrot.slane %v1218_v48, 4  ;;  %8990 = vst [vmem:[#allocation5_spill] sm:$0xff] %v7458_v63  ;;  %v7476_v0 = vsel %vm7112_vm7, %v5413_v19, %v1218_v48  ;;  %v1249_v47 = vrot.slane %v6754_v59, 5  ;;  %v7517_v49 = vsel %vm708_vm0, %v7372_v7, 0  ;;  %v5739_v7 = vld [vmem:[%s6860_s26 + $0x1c] sm:$0xf] }
  0xa2   : > { %v7484_v53 = vsel %vm7112_vm7, %v1227_v55, %v1228_v37  ;;  %v7521_v34 = vsel %vm7112_vm7, %v5415_v1, %v1232_v4  ;;  %v6704_v37 = vld [vmem:[%s6860_s26 + $0x3c] sm:$0xff]   ;;  %v5418_v35 = vrot.slane %v1170_v8, 9  ;;  %v6755_v55 = vld [vmem:[%s6860_s26 + $0x44] sm:$0x1]  ;;  %v3588_v8 = vshll.u32 %v5738_v24, 16 }
  0xa3   : > { %v7495_v23 = vsel %vm7112_vm7, %v1220_v57, %v1221_v50  ;;  %v1172_v50 = vld [vmem:[%s6860_s26 + $0x54] sm:$0xe]  ;;  %v1256_v15 = vrot.slane %v6755_v55, 5  ;;  %v5742_v39 = vld [vmem:[%s6860_s26 + $0x28] sm:$0xf] }
  0xa4   : > { %v6762_v5 = vld [vmem:[%s6860_s26 + $0x70] sm:$0xf] }
  0xa5   : > { %6301 = vmatmul.mubr.msk.bf16.gmra.mrb[24].mxu0 %vm659_vm3, %v5654_v2  ;;  %v1168_v2 = vld [vmem:[%s6860_s26 + $0x24] sm:$0xe]  ;;  %v1281_v30 = vrot.slane %v6762_v5, 5 }
  0xa6   : > { %6149 = vmatmul.mubr.msk.bf16.gmra.mrb[8].mxu1 %vm659_vm3, %v5386_v10  ;;  %6304 = vmatprep.mubr.msk.bf16.mxu0 %vm659_vm3, %v5655_v11  ;;  %v1246_v10 = vrot.slane %v7398_v26, 5  ;;  %v6702_v11 = vld [vmem:[%s6860_s26 + $0x30] sm:$0xff]   ;;  %v7491_v26 = vld [vmem:[%s8967_s1 + $0x20] sm:$0xf]  ;;  %v5416_v21 = vrot.slane %v1168_v2, 9 }
  0xa7   : > { %6152 = vmatprep.mubr.msk.bf16.mxu1 %vm659_vm3, %v5387_v18  ;;  %v1234_v18 = vrot.slane %v1232_v4, 4  ;;  %v1283_v48 = vrot.slane %v1281_v30, 4 }
  0xa8   : > { %v1248_v45 = vrot.slane %v1246_v10, 4  ;;  %v7528_v19 = vsel %vm7112_vm7, %v5416_v21, %v1239_v12  ;;  %v3598_v21 = vshrl.u32 %v5739_v7, 16 }
  0xa9   : > { %v7537_v4 = vsel %vm7112_vm7, %v1234_v18, %v1235_v22  ;;  %v3585_v22 = vshrl.u32 %v5738_v24, 16  ;;  %v3594_v18 = vshll.u32 %v5739_v7, 16  ;;  %v5741_v24 = vld [vmem:[%s6860_s26 + $0x24] sm:$0xf] }
  0xaa   : > { %v7550_v1 = vsel %vm7112_vm7, %v1248_v45, %v1249_v47 }
  0xab   : > { %v3587_v43 = vrot.slane %v3585_v22, 4  ;;  %v7592_v7 = vrot.slane %v3594_v18, 5  ;;  %v3612_v22 = vshll.u32 %v5741_v24, 16  ;;  %v3622_v18 = vshrl.u32 %v5742_v39, 16 }
  0xad   : > { %6305 = vmatmul.mubr.msk.bf16.gmra.mrb[28].mxu0 %vm659_vm3, %v5656_v40  ;;  %v6753_v40 = vld [vmem:[%s6860_s26 + $0x2c] sm:$0x1]  ;;  %v3614_v27 = vrot.slane %v3612_v22, 5 }
  0xae   : > { %6153 = vmatmul.mubr.msk.bf16.gmra.mrb[12].mxu1 %vm659_vm3, %v5388_v60  ;;  %6310 = vmatprep.mubr.msk.bf16.mxu0 %vm659_vm3, %v6698_v20  ;;  %v1242_v28 = vrot.slane %v6753_v40, 5  ;;  %v1253_v60 = vrot.slane %v7418_v17, 5  ;;  %v6758_v40 = vld [vmem:[%s6860_s26 + $0x50] sm:$0x1]  ;;  %v6763_v17 = vld [vmem:[%s6860_s26 + $0x74] sm:$0x1] }
  0xaf   : > { %6156 = vmatprep.mubr.msk.bf16.mxu1 %vm659_vm3, %v5389_v44  ;;  %v5417_v44 = vrot.slane %v1169_v41, 9  ;;  %v5420_v41 = vrot.slane %v1172_v50, 9  ;;  %v1173_v50 = vld [vmem:[%s6860_s26 + $0x60] sm:$0xe]  ;;  %v5743_v20 = vld [vmem:[%s6860_s26 + $0x2c] sm:$0x1] }
  0xb0   : > { %v1255_v12 = vrot.slane %v1253_v60, 4  ;;  %v7563_v45 = vsel %vm7112_vm7, %v5418_v35, %v1253_v60  ;;  %v6759_v35 = vld [vmem:[%s6860_s26 + $0x5c] sm:$0x1] }
  0xb1   : > { %v7546_v2 = vsel %vm7112_vm7, %v5417_v44, %v1246_v10  ;;  %v1270_v55 = vrot.slane %v6759_v35, 5  ;;  %v1174_v35 = vld [vmem:[%s6860_s26 + $0x6c] sm:$0xe] }
  0xb2   : > { %v7567_v59 = vsel %vm7112_vm7, %v1255_v12, %v1256_v15  ;;  %v6760_v15 = vld [vmem:[%s6860_s26 + $0x64] sm:$0xf]  ;;  %v3600_v12 = vrot.slane %v3598_v21, 4  ;;  %v5422_v5 = vrot.slane %v1174_v35, 9 }
  0xb3   : > { %v6710_v21 = vld [vmem:[%s6860_s26 + $0x60] sm:$0xff]  }
  0xb5   : > { %6311 = vmatmul.mubr.msk.bf16.vlgmr.msra.gmra.mrb[0].mxu0 %vm659_vm3, %v6700_v62  ;;  %v6756_v62 = vld [vmem:[%s6860_s26 + $0x4c] sm:$0xf] }
  0xb6   : > { %6157 = vmatmul.mubr.msk.bf16.gmra.mrb[16].mxu1 %vm659_vm3, %v5390_v58  ;;  %6343 = vmatpush3.bf16.msra.mxu0 %v4067_v54  ;;  %v1260_v57 = vrot.slane %v6756_v62, 5  ;;  %v7541_v58 = vsel %vm7112_vm7, %v1241_v25, %v1242_v28  ;;  %v5419_v54 = vrot.slane %v1171_v31, 9  ;;  %v1263_v28 = vrot.slane %v6758_v40, 5 }
  0xb7   : > { %6160 = vmatprep.mubr.msk.bf16.mxu1 %vm659_vm3, %v5391_v61  ;;  %6314 = vmatprep.mubr.msk.bf16.mxu0 %vm659_vm3, %v6702_v11  ;;  %v6706_v61 = vld [vmem:[%s6860_s26 + $0x48] sm:$0xff]   ;;  %v6757_v11 = vld [vmem:[%s6860_s26 + $0x58] sm:$0xf]  ;;  %v1274_v62 = vrot.slane %v6760_v15, 5  ;;  %v5745_v15 = vld [vmem:[%s6860_s26 + $0x34] sm:$0xf] }
  0xb8   : > { %6677 = vmatprep.subr.msk.bf16.mxu0 %vm708_vm0, %v7491_v26  ;;  %v1267_v16 = vrot.slane %v6757_v11, 5  ;;  %v1262_v31 = vrot.slane %v1260_v57, 4  ;;  %v7571_v47 = vsel %vm7112_vm7, %v5419_v54, %v1260_v57  ;;  %v5740_v57 = vld [vmem:[%s6860_s26 + $0x20] sm:$0x1]  ;;  %v5744_v54 = vld [vmem:[%s6860_s26 + $0x30] sm:$0xf] }
  0xb9   : > { %v5421_v11 = vrot.slane %v1173_v50, 9  ;;  %v3636_v50 = vshll.u32 %v5744_v54, 16  ;;  %v3604_v25 = vshll.u32 %v5740_v57, 16  ;;  %v3642_v36 = vshll.u32 %v5745_v15, 16 }
  0xba   : > { %v7582_v60 = vsel %vm7112_vm7, %v5420_v41, %v1267_v16  ;;  %v7598_v41 = vsel %vm7112_vm7, %v1262_v31, %v1263_v28  ;;  %v1276_v31 = vrot.slane %v1274_v62, 4  ;;  %v3633_v28 = vshrl.u32 %v5744_v54, 16 }
  0xbb   : > { %v7640_v35 = vrot.slane %v3642_v36, 5 }
  0xbd   : > { %6315 = vmatmul.mubr.msk.bf16.gmra.mrb[4].mxu0 %vm659_vm3, %v6704_v37  ;;  %v1269_v37 = vrot.slane %v1267_v16, 4  ;;  %v6761_v16 = vld [vmem:[%s6860_s26 + $0x68] sm:$0x1] }
  0xbe   : > { %6161 = vmatmul.mubr.msk.bf16.gmra.mrb[20].mxu1 %vm659_vm3, %v5392_v6  ;;  %6318 = vmatprep.mubr.msk.bf16.mxu0 %vm659_vm3, %v6706_v61  ;;  %v3590_v6 = vrot.slane %v3588_v8, 5  ;;  %v6708_v61 = vld [vmem:[%s6860_s26 + $0x54] sm:$0xff]   ;;  %v1277_v40 = vrot.slane %v6761_v16, 5  ;;  %v3618_v8 = vshll.u32 %v5742_v39, 16  ;;  %v3601_v16 = vor.u32 %v3600_v12, %v7592_v7 }
  0xbf   : > { %6164 = vmatprep.mubr.msk.bf16.mxu1 %vm659_vm3, %v5393_v9  ;;  %v3609_v9 = vshrl.u32 %v5741_v24, 16  ;;  %v7607_v44 = vsel %vm7112_vm7, %v1269_v37, %v1270_v55  ;;  %v1284_v24 = vrot.slane %v6763_v17, 5  ;;  %v3646_v39 = vshrl.u32 %v5745_v15, 16 }
  0xc0   : > { %v3591_v10 = vor.u32 %v3590_v6, %v3587_v43  ;;  %v7613_v37 = vrot.slane %v3618_v8, 5  ;;  %v3624_v55 = vrot.slane %v3622_v18, 4  ;;  %v8991_v43 = vcombine.low %v7217_v52, %v7228_v46  ;;  %v6764_v8 = vld [vmem:[%s6860_s26 + $0x7c] sm:$0xf]  ;;  %v7649_v18 = vld [vmem:[%s6860_s26 + $0x38] sm:$0x1] }
  0xc1   : > { %v3611_v38 = vrot.slane %v3609_v9, 4  ;;  %v7622_v17 = vsel %vm7112_vm7, %v5421_v11, %v1274_v62  ;;  %v7626_v57 = vsel %vm7112_vm7, %v1276_v31, %v1277_v40  ;;  %v3635_v6 = vrot.slane %v3633_v28, 4  ;;  %8993 = vst [vmem:[#allocation6_spill] sm:$0xff] %v7649_v18 }
  0xc2   : > { %v3638_v12 = vrot.slane %v3636_v50, 5  ;;  %v8992_v52 = vcombine.low %v7249_v33, %v7254_v56  ;;  %v3592_v46 = vrot.slane %v3591_v10, 4  ;;  %v3602_v54 = vrot.slane %v3601_v16, 4  ;;  %v6712_v33 = vld [vmem:[%s6860_s26 + $0x6c] sm:$0xff]   ;;  %v1176_v16 = vld [vmem:[%s6860_s26 + $0x84] sm:$0xe] }
  0xc3   : > { %v3628_v62 = vshll.u32 %v5743_v20, 16  ;;  %v7634_v11 = vsel %vm7112_vm7, %v5422_v5, %v1281_v30  ;;  %v7638_v40 = vsel %vm7112_vm7, %v1283_v48, %v1284_v24  ;;  %v3648_v9 = vrot.slane %v3646_v39, 4  ;;  %v6713_v48 = vld [vmem:[%s6860_s26 + $0x78] sm:$0xff]  }
  0xc4   : > { %v3615_v10 = vor.u32 %v3614_v27, %v3611_v38  ;;  %v3625_v20 = vor.u32 %v3624_v55, %v7613_v37  ;;  %v1288_v30 = vrot.slane %v6764_v8, 5  ;;  %v3639_v38 = vor.u32 %v3638_v12, %v3635_v6  ;;  %v5747_v5 = vld [vmem:[%s6860_s26 + $0x3c] sm:$0xf] }
  0xc5   : > { %6319 = vmatmul.mubr.msk.bf16.gmra.mrb[8].mxu0 %vm659_vm3, %v6708_v61  ;;  %v3606_v61 = vrot.slane %v3604_v25, 5  ;;  %v1175_v25 = vld [vmem:[%s6860_s26 + $0x78] sm:$0xe]  ;;  %v7665_v50 = vrot.slane %v3628_v62, 5  ;;  %v3649_v39 = vor.u32 %v3648_v9, %v7640_v35  ;;  %v3652_v55 = vshll.u32 %v7649_v18, 16 }
  0xc6   : > { %6165 = vmatmul.mubr.msk.bf16.gmra.mrb[24].mxu1 %vm659_vm3, %v8991_v43  ;;  %6322 = vmatprep.mubr.msk.bf16.mxu0 %vm659_vm3, %v6710_v21  ;;  %v3597_v21 = vsel %vm6886_vm4, %v3592_v46, %v7592_v7  ;;  %v5423_v24 = vrot.slane %v1175_v25, 9  ;;  %v6765_v43 = vld [vmem:[%s6860_s26 + $0x88] sm:$0xf]  ;;  %v7673_v7 = vld [vmem:[%s6860_s26 + $0x40] sm:$0xf]  ;;  %v3616_v12 = vrot.slane %v3615_v10, 4  ;;  %v8995_v62 = vcombine.low %v7269_v14, %v7278_v42 }
  0xc7   : > { %6168 = vmatprep.mubr.msk.bf16.mxu1 %vm659_vm3, %v8992_v52  ;;  %v3607_v31 = vsel %vm6886_vm4, %v3602_v54, %v3606_v61  ;;  %v1295_v6 = vrot.slane %v6765_v43, 5  ;;  %8994 = vst [vmem:[#allocation7_spill] sm:$0xff] %v7673_v7  ;;  %v3626_v52 = vrot.slane %v3625_v20, 4  ;;  %v1290_v46 = vrot.slane %v1288_v30, 4  ;;  %v6766_v54 = vld [vmem:[%s6860_s26 + $0x80] sm:$0x1] }
  0xc8   : > { %v1291_v61 = vrot.slane %v6766_v54, 5  ;;  %v3640_v9 = vrot.slane %v3639_v38, 4  ;;  %v5424_v25 = vrot.slane %v1176_v16, 9  ;;  %v3657_v8 = vshrl.u32 %v5747_v5, 16  ;;  %v6714_v10 = vld [vmem:[%s6860_s26 + $0x84] sm:$0xff]  }
  0xc9   : > { %v3660_v43 = vshll.u32 %v5747_v5, 16  ;;  %v7687_v20 = vcombine.low %v3597_v21, %v3607_v31  ;;  %v7691_v14 = vsel %vm708_vm0, %v7491_v26, 0  ;;  %v3670_v38 = vshrl.u32 %v7673_v7, 16  ;;  %v6715_v21 = vld [vmem:[%s6860_s26 + $0x90] sm:$0xff]   ;;  %v6771_v18 = vld [vmem:[%s6860_s26 + $0xa0] sm:$0xf] }
  0xca   : > { %v3650_v16 = vrot.slane %v3649_v39, 4  ;;  %v3654_v5 = vrot.slane %v3652_v55, 5  ;;  %v1297_v54 = vrot.slane %v1295_v6, 4  ;;  %v3621_v31 = vsel %vm6886_vm4, %v3616_v12, %v7613_v37 }
  0xcb   : > { %v3631_v26 = vsel %vm6886_vm4, %v3626_v52, %v7665_v50  ;;  %v7706_v39 = vsel %vm7112_vm7, %v5423_v24, %v1288_v30  ;;  %v7710_v55 = vsel %vm7112_vm7, %v1290_v46, %v1291_v61  ;;  %v3645_v37 = vsel %vm6886_vm4, %v3640_v9, %v7640_v35  ;;  %v5753_v30 = vld [vmem:[%s6860_s26 + $0x54] sm:$0xf]  ;;  %v7727_v24 = vld [vmem:[%s6860_s26 + $0x58] sm:$0xf]  ;;  %v7732_v61 = vld [vmem:[%s6860_s26 + $0x90] sm:$0xe] }
  0xcc   : > { %v7723_v12 = vsel %vm7112_vm7, %v5424_v25, %v1295_v6  ;;  %v3659_v50 = vrot.slane %v3657_v8, 4  ;;  %v3662_v52 = vrot.slane %v3660_v43, 5  ;;  %v3672_v46 = vrot.slane %v3670_v38, 4 }
  0xcd   : > { %6323 = vmatmul.mubr.msk.bf16.gmra.mrb[12].mxu0 %vm659_vm3, %v6712_v33  ;;  %v8996_v33 = vcombine.low %v7476_v0, %v7495_v23  ;;  %v6767_v0 = vld [vmem:[%s6860_s26 + $0x8c] sm:$0x1]  ;;  %v3655_v36 = vsel %vm6886_vm4, %v3650_v16, %v3654_v5  ;;  %v3705_v25 = vshrl.u32 %v5753_v30, 16  ;;  %v3708_v8 = vshll.u32 %v5753_v30, 16 }
  0xce   : > { %6169 = vmatmul.mubr.msk.bf16.gmra.mrb[28].mxu1 %vm659_vm3, %v8995_v62  ;;  %6326 = vmatprep.mubr.msk.bf16.mxu0 %vm659_vm3, %v6713_v48  ;;  %v3666_v48 = vshll.u32 %v7673_v7, 16  ;;  %v1298_v23 = vrot.slane %v6767_v0, 5  ;;  %v5750_v62 = vld [vmem:[%s6860_s26 + $0x48] sm:$0xf]  ;;  %v7716_v0 = vld [vmem:[%s6860_s26 + $0x4c] sm:$0xf]  ;;  %v8998_v38 = vcombine.low %v7480_v29, %v7484_v53  ;;  %v7750_v16 = vcombine.low %v3621_v31, %v3631_v26 }
  0xcf   : > { %6174 = vmatprep.mubr.msk.bf16.mxu1 %vm659_vm3, %v8996_v33  ;;  %v7713_v33 = vld [vmem:[%s6860_s26 + $0x44] sm:$0x1]  ;;  %v3681_v27 = vshrl.u32 %v5750_v62, 16  ;;  %v3684_v15 = vshll.u32 %v5750_v62, 16  ;;  %v3690_v6 = vshll.u32 %v7716_v0, 16  ;;  %v3694_v9 = vshrl.u32 %v7716_v0, 16 }
  0xd0   : > { %8997 = vst [vmem:[#allocation8_spill] sm:$0xff] %v7713_v33  ;;  %v7729_v28 = vrot.slane %v3666_v48, 5  ;;  %v7738_v35 = vsel %vm7112_vm7, %v1297_v54, %v1298_v23  ;;  %v3714_v43 = vshll.u32 %v7727_v24, 16  ;;  %v3718_v48 = vshrl.u32 %v7727_v24, 16  ;;  %v5756_v31 = vld [vmem:[%s6860_s26 + $0x60] sm:$0xf] }
  0xd1   : > { %v3676_v5 = vshll.u32 %v7713_v33, 16  ;;  %v5425_v54 = vrot.slane %v7732_v61, 9  ;;  %v8999_v23 = vcombine.low %v7521_v34, %v7537_v4  ;;  %v7761_v29 = vcombine.low %v3645_v37, %v3655_v36  ;;  %v6716_v26 = vld [vmem:[%s6860_s26 + $0x9c] sm:$0xff]   ;;  %v6717_v30 = vld [vmem:[%s6860_s26 + $0xa8] sm:$0xff]   ;;  %v6768_v36 = vld [vmem:[%s8967_s1 + $0x10] sm:$0xf] }
  0xd2   : > { %v3663_v53 = vor.u32 %v3662_v52, %v3659_v50  ;;  %v3683_v62 = vrot.slane %v3681_v27, 4  ;;  %v7772_v34 = vrot.slane %v3690_v6, 5  ;;  %v3696_v4 = vrot.slane %v3694_v9, 4  ;;  %v6769_v6 = vld [vmem:[%s6860_s26 + $0x94] sm:$0xf] }
  0xd3   : > { %v3707_v27 = vrot.slane %v3705_v25, 4  ;;  %v3710_v37 = vrot.slane %v3708_v8, 5  ;;  %v7781_v50 = vrot.slane %v3714_v43, 5  ;;  %v3720_v52 = vrot.slane %v3718_v48, 4  ;;  %v7787_v9 = vld [vmem:[%s6860_s26 + $0x64] sm:$0xf] }
  0xd4   : > { %9000 = vst [vmem:[#allocation9_spill] sm:$0xff] %v7787_v9  ;;  %v3729_v61 = vshrl.u32 %v5756_v31, 16  ;;  %v7789_v22 = vrot.slane %v3663_v53, 4  ;;  %v1309_v25 = vrot.slane %v6771_v18, 5  ;;  %v3697_v43 = vor.u32 %v3696_v4, %v7772_v34 }
  0xd5   : > { %6327 = vmatmul.mubr.msk.bf16.gmra.mrb[16].mxu0 %vm659_vm3, %v6714_v10  ;;  %v3732_v10 = vshll.u32 %v5756_v31, 16  ;;  %v3711_v31 = vor.u32 %v3710_v37, %v3707_v27  ;;  %v3721_v53 = vor.u32 %v3720_v52, %v7781_v50  ;;  %v9001_v18 = vcombine.low %v7528_v19, %v7541_v58  ;;  %v6718_v37 = vld [vmem:[%s6860_s26 + $0xb4] sm:$0xff]  }
  0xd6   : > { %6175 = vmatmul.mubr.msk.bf16.vlgmr.msra.gmra.mrb[0].mxu1 %vm659_vm3, %v8998_v38  ;;  %6330 = vmatprep.mubr.msk.bf16.mxu0 %vm659_vm3, %v6715_v21  ;;  %v3686_v21 = vrot.slane %v3684_v15, 5  ;;  %v7770_v38 = vld [vmem:[%s6860_s26 + $0x50] sm:$0x1]  ;;  %v7779_v15 = vld [vmem:[%s6860_s26 + $0x5c] sm:$0x1]  ;;  %v9002_v27 = vcombine.low %v7546_v2, %v7550_v1  ;;  %v1311_v52 = vrot.slane %v1309_v25, 4 }
  0xd7   : > { %6207 = vmatpush3.bf16.msra.mxu1 %v7517_v49  ;;  %6178 = vmatprep.mubr.msk.bf16.mxu1 %vm659_vm3, %v8999_v23  ;;  %v3673_v49 = vor.u32 %v3672_v46, %v7729_v28  ;;  %v7783_v46 = vrot.slane %v3676_v5, 5  ;;  %v1302_v23 = vrot.slane %v6769_v6, 5  ;;  %v3700_v48 = vshll.u32 %v7770_v38, 16  ;;  %v1178_v5 = vld [vmem:[%s6860_s26 + $0x9c] sm:$0xe] }
  0xd8   : > { %6673 = vmatprep.subr.msk.bf16.mxu1 %vm708_vm0, %v6768_v36  ;;  %v6770_v36 = vld [vmem:[%s6860_s26 + $0x98] sm:$0x1]  ;;  %v3687_v7 = vor.u32 %v3686_v21, %v3683_v62  ;;  %v3724_v6 = vshll.u32 %v7779_v15, 16  ;;  %v3742_v62 = vshrl.u32 %v7787_v9, 16  ;;  %v3734_v4 = vrot.slane %v3732_v10, 5 }
  0xd9   : > { %v1305_v33 = vrot.slane %v6770_v36, 5  ;;  %v3674_v8 = vrot.slane %v3673_v49, 4  ;;  %v3738_v36 = vshll.u32 %v7787_v9, 16  ;;  %v7808_v21 = vsel %vm7112_vm7, %v5425_v54, %v1302_v23  ;;  %v7819_v2 = vld [vmem:[%s6860_s26 + $0x68] sm:$0x1] }
  0xda   : > { %v3731_v49 = vrot.slane %v3729_v61, 4  ;;  %v3688_v19 = vrot.slane %v3687_v7, 4  ;;  %v5426_v58 = vrot.slane %v1178_v5, 9  ;;  %v3698_v3 = vrot.slane %v3697_v43, 4  ;;  %9003 = vst [vmem:[#allocation10_spill] sm:$0xff] %v7819_v2  ;;  %v6719_v5 = vld [vmem:[%s6860_s26 + $0xc0] sm:$0xff]  }
  0xdb   : > { %v3702_v54 = vrot.slane %v3700_v48, 5  ;;  %v3726_v63 = vrot.slane %v3724_v6, 5  ;;  %v1316_v61 = vrot.slane %v7254_v56, 5  ;;  %v3712_v10 = vrot.slane %v3711_v31, 4  ;;  %v1180_v31 = vld [vmem:[%s6860_s26 + $0xb4] sm:$0xe] }
  0xdc   : > { %v3722_v51 = vrot.slane %v3721_v53, 4  ;;  %v7821_v1 = vrot.slane %v3738_v36, 5  ;;  %v3744_v7 = vrot.slane %v3742_v62, 4  ;;  %v3669_v43 = vsel %vm6886_vm4, %v7789_v22, %v7729_v28  ;;  %v6773_v62 = vld [vmem:[%s6860_s26 + $0xb0] sm:$0x1] }
  0xdd   : > { %6331 = vmatmul.mubr.msk.bf16.gmra.mrb[20].mxu0 %vm659_vm3, %v6716_v26  ;;  %v1304_v26 = vrot.slane %v1302_v23, 4  ;;  %v1179_v23 = vld [vmem:[%s6860_s26 + $0xa8] sm:$0xe]  ;;  %v3679_v48 = vsel %vm6886_vm4, %v3674_v8, %v7783_v46  ;;  %v3735_v6 = vor.u32 %v3734_v4, %v3731_v49  ;;  %v3693_v53 = vsel %vm6886_vm4, %v3688_v19, %v7772_v34  ;;  %v5759_v46 = vld [vmem:[%s6860_s26 + $0x6c] sm:$0xf] }
  0xde   : > { %6179 = vmatmul.mubr.msk.bf16.gmra.mrb[4].mxu1 %vm659_vm3, %v9001_v18  ;;  %6334 = vmatprep.mubr.msk.bf16.mxu0 %vm659_vm3, %v6717_v30  ;;  %v6772_v18 = vld [vmem:[%s6860_s26 + $0xa4] sm:$0x1]  ;;  %v7841_v36 = vsel %vm7112_vm7, %v5426_v58, %v1309_v25  ;;  %v5427_v28 = vrot.slane %v1179_v23, 9  ;;  %v1318_v8 = vrot.slane %v1316_v61, 4  ;;  %v3748_v49 = vshll.u32 %v7819_v2, 16 }
  0xdf   : > { %6182 = vmatprep.mubr.msk.bf16.mxu1 %vm659_vm3, %v9002_v27  ;;  %v1312_v30 = vrot.slane %v6772_v18, 5  ;;  %v7833_v56 = vsel %vm7112_vm7, %v1304_v26, %v1305_v33  ;;  %v3703_v33 = vsel %vm6886_vm4, %v3698_v3, %v3702_v54  ;;  %v1319_v26 = vrot.slane %v6773_v62, 5  ;;  %v5762_v18 = vld [vmem:[%s6860_s26 + $0x78] sm:$0xf]  ;;  %v7896_v54 = vld [vmem:[%s6860_s26 + $0xbc] sm:$0x1] }
  0xe0   : > { %v3717_v34 = vsel %vm6886_vm4, %v3712_v10, %v7781_v50  ;;  %v3727_v25 = vsel %vm6886_vm4, %v3722_v51, %v3726_v63  ;;  %v3745_v4 = vor.u32 %v3744_v7, %v7821_v1  ;;  %v5428_v27 = vrot.slane %v1180_v31, 9  ;;  %v7870_v51 = vld [vmem:[%s6860_s26 + $0x70] sm:$0xf]  ;;  %v7900_v10 = vld [vmem:[%s6860_s26 + $0x7c] sm:$0xf] }
  0xe1   : > { %v7845_v22 = vsel %vm7112_vm7, %v1311_v52, %v1312_v30  ;;  %v9005_v3 = vcombine.low %v7563_v45, %v7567_v59  ;;  %v7866_v19 = vrot.slane %v3735_v6, 4  ;;  %v1323_v50 = vrot.slane %v7278_v42, 5  ;;  %9006 = vst [vmem:[#allocation12_spill] sm:$0xff] %v7870_v51  ;;  %9008 = vst [vmem:[#allocation13_spill] sm:$0xff] %v7900_v10  ;;  %v5765_v7 = vld [vmem:[%s6860_s26 + $0x84] sm:$0xf] }
  0xe2   : > { %9004 = vst [vmem:[#allocation11_spill] sm:$0xff] %v7845_v22  ;;  %v3753_v63 = vshrl.u32 %v5759_v46, 16  ;;  %v9007_v45 = vcombine.low %v7571_v47, %v7598_v41  ;;  %v7878_v58 = vcombine.low %v3693_v53, %v3703_v33  ;;  %v7884_v42 = vsel %vm7112_vm7, %v5427_v28, %v1316_v61  ;;  %v6720_v61 = vld [vmem:[%s6860_s26 + $0xcc] sm:$0xff]   ;;  %v7912_v31 = vld [vmem:[%s6860_s26 + $0x88] sm:$0xf] }
  0xe3   : > { %v7887_v30 = vcombine.low %v3717_v34, %v3727_v25  ;;  %v7891_v47 = vsel %vm7112_vm7, %v1318_v8, %v1319_v26  ;;  %v7893_v41 = vrot.slane %v3748_v49, 5  ;;  %v3762_v6 = vshll.u32 %v7870_v51, 16  ;;  %9009 = vst [vmem:[#allocation14_spill] sm:$0xff] %v7912_v31  ;;  %v5768_v62 = vld [vmem:[%s6860_s26 + $0x90] sm:$0xf] }
  0xe4   : > { %v7918_v28 = vrot.slane %v1323_v50, 4  ;;  %v7920_v33 = vrot.slane %v3753_v63, 4  ;;  %v3766_v8 = vshrl.u32 %v7870_v51, 16  ;;  %v3777_v26 = vshrl.u32 %v5762_v18, 16  ;;  %v7927_v25 = vld [vmem:[%s6860_s26 + $0x94] sm:$0xf] }
  0xe5   : > { %6335 = vmatmul.mubr.msk.bf16.gmra.mrb[24].mxu0 %vm659_vm3, %v6718_v37  ;;  %v7864_v37 = vcombine.low %v3669_v43, %v3679_v48  ;;  %v7908_v43 = vsel %vm7112_vm7, %v5428_v27, %v1323_v50  ;;  %v3756_v48 = vshll.u32 %v5759_v46, 16  ;;  %v3780_v49 = vshll.u32 %v5762_v18, 16  ;;  %9010 = vst [vmem:[#allocation15_spill] sm:$0xff] %v7927_v25  ;;  %v7965_v2 = vld [vmem:[%s6860_s26 + $0x8c] sm:$0x1] }
  0xe6   : > { %6183 = vmatmul.mubr.msk.bf16.gmra.mrb[8].mxu1 %vm659_vm3, %v9005_v3  ;;  %6338 = vmatprep.mubr.msk.bf16.mxu0 %vm659_vm3, %v6719_v5  ;;  %v7904_v5 = vrot.slane %v3745_v4, 4  ;;  %v3786_v46 = vshll.u32 %v7900_v10, 16  ;;  %v3790_v34 = vshrl.u32 %v7900_v10, 16  ;;  %v3801_v4 = vshrl.u32 %v5765_v7, 16 }
  0xe7   : > { %6186 = vmatprep.mubr.msk.bf16.mxu1 %vm659_vm3, %v9007_v45  ;;  %v3804_v27 = vshll.u32 %v5765_v7, 16  ;;  %v3810_v3 = vshll.u32 %v7912_v31, 16  ;;  %v3814_v50 = vshrl.u32 %v7912_v31, 16  ;;  %v7937_v45 = vld [vmem:[%s6860_s26 + $0x74] sm:$0x1]  ;;  %v3758_v18 = vrot.slane %v3756_v48, 5 }
  0xe8   : > { %v3825_v52 = vshrl.u32 %v5768_v62, 16  ;;  %v3828_v53 = vshll.u32 %v5768_v62, 16  ;;  %v9011_v7 = vcombine.low %v7582_v60, %v7607_v44  ;;  %v3768_v59 = vrot.slane %v3766_v8, 4  ;;  %v5771_v48 = vld [vmem:[%s6860_s26 + $0x9c] sm:$0xf] }
  0xe9   : > { %v3834_v63 = vshll.u32 %v7927_v25, 16  ;;  %v3838_v23 = vshrl.u32 %v7927_v25, 16  ;;  %v9012_v62 = vcombine.low %v7622_v17, %v7626_v57  ;;  %v7955_v44 = vld [vmem:[%s6860_s26 + $0x80] sm:$0x1]  ;;  %v3779_v60 = vrot.slane %v3777_v26, 4 }
  0xea   : > { %9013 = vst [vmem:[#allocation16_spill] sm:$0xff] %v7955_v44  ;;  %v3803_v31 = vrot.slane %v3801_v4, 4  ;;  %v3806_v8 = vrot.slane %v3804_v27, 5  ;;  %v7959_v10 = vrot.slane %v3810_v3, 5  ;;  %v3816_v51 = vrot.slane %v3814_v50, 4 }
  0xeb   : > { %v7962_v25 = vld [vmem:[%s6860_s26 + $0xa0] sm:$0xf]  ;;  %v3827_v17 = vrot.slane %v3825_v52, 4  ;;  %v3830_v57 = vrot.slane %v3828_v53, 5  ;;  %v3852_v9 = vshll.u32 %v5771_v48, 16  ;;  %v3759_v26 = vor.u32 %v3758_v18, %v7920_v33 }
  0xec   : > { %v3796_v27 = vshll.u32 %v7955_v44, 16  ;;  %v7974_v3 = vld [vmem:[%s6860_s26 + $0x98] sm:$0x1]  ;;  %v3858_v50 = vshll.u32 %v7962_v25, 16  ;;  %v3862_v52 = vshrl.u32 %v7962_v25, 16  ;;  %v3807_v22 = vor.u32 %v3806_v8, %v3803_v31 }
  0xed   : > { %6339 = vmatmul.mubr.msk.bf16.gmra.mrb[28].mxu0 %vm659_vm3, %v6720_v61  ;;  %v7945_v61 = vrot.slane %v3762_v6, 5  ;;  %v3792_v6 = vrot.slane %v3790_v34, 4  ;;  %v3840_v34 = vrot.slane %v3838_v23, 4  ;;  %v3820_v33 = vshll.u32 %v7965_v2, 16 }
  0xee   : > { %6187 = vmatmul.mubr.msk.bf16.gmra.mrb[12].mxu1 %vm659_vm3, %v9011_v7  ;;  %6344 = vmatprep.mubr.msk.bf16.mxu0 %vm659_vm3, %v7687_v20  ;;  %v3782_v7 = vrot.slane %v3780_v49, 5  ;;  %v7957_v20 = vrot.slane %v3786_v46, 5  ;;  %v3772_v49 = vshll.u32 %v7937_v45, 16  ;;  %v7969_v46 = vrot.slane %v3834_v63, 5 }
  0xef   : > { %6190 = vmatprep.mubr.msk.bf16.mxu1 %vm659_vm3, %v9012_v62  ;;  %v3849_v62 = vshrl.u32 %v5771_v48, 16  ;;  %v3769_v4 = vor.u32 %v3768_v59, %v7945_v61  ;;  %v3817_v23 = vor.u32 %v3816_v51, %v7959_v10  ;;  %v3831_v59 = vor.u32 %v3830_v57, %v3827_v17  ;;  %v8007_v57 = vld [vmem:[%s6860_s26 + $0xa4] sm:$0x1] }
  0xf0   : > { %v3783_v53 = vor.u32 %v3782_v7, %v3779_v60  ;;  %v3793_v48 = vor.u32 %v3792_v6, %v7957_v20  ;;  %v3854_v18 = vrot.slane %v3852_v9, 5  ;;  %v9014_v44 = vcombine.low %v7634_v11, %v7638_v40 }
  0xf1   : > { %v3851_v63 = vrot.slane %v3849_v62, 4  ;;  %v9015_v31 = vrot.slane %v7896_v54, 5  ;;  %v3774_v51 = vrot.slane %v3772_v49, 5  ;;  %v3841_v60 = vor.u32 %v3840_v34, %v7969_v46  ;;  %v8010_v34 = vld [vmem:[%s6860_s26 + $0xac] sm:$0xf] }
  0xf2   : > { %v3844_v9 = vshll.u32 %v7974_v3, 16  ;;  %v9016_v11 = vcombine.low %v7706_v39, %v7710_v55  ;;  %v3760_v40 = vrot.slane %v3759_v26, 4  ;;  %v8003_v54 = vrot.slane %v3858_v50, 5 }
  0xf3   : > { %v3784_v7 = vrot.slane %v3783_v53, 4  ;;  %v3794_v6 = vrot.slane %v3793_v48, 4  ;;  %v3798_v8 = vrot.slane %v3796_v27, 5  ;;  %v3822_v17 = vrot.slane %v3820_v33, 5  ;;  %v8020_v48 = vld [vmem:[%s6860_s26 + $0xb0] sm:$0x1] }
  0xf4   : > { %v3808_v39 = vrot.slane %v3807_v22, 4  ;;  %v3818_v55 = vrot.slane %v3817_v23, 4  ;;  %v3832_v62 = vrot.slane %v3831_v59, 4  ;;  %v3855_v49 = vor.u32 %v3854_v18, %v3851_v63 }
  0xf5   : > { %6345 = vmatmul.mubr.msk.bf16.vlgmr.msra.gmra.mrb[0].mxu0 %vm659_vm3, %v7750_v16  ;;  %v7993_v16 = vsel %vm7112_vm7, %v7918_v28, %v9015_v31  ;;  %v3864_v28 = vrot.slane %v3862_v52, 4  ;;  %v3846_v26 = vrot.slane %v3844_v9, 5  ;;  %v3765_v52 = vsel %vm6886_vm4, %v3760_v40, %v7945_v61 }
  0xf6   : > { %6191 = vmatmul.mubr.msk.bf16.gmra.mrb[16].mxu1 %vm659_vm3, %v9014_v44  ;;  %6377 = vmatpush3.bf16.msra.mxu0 %v7691_v14  ;;  %v3770_v14 = vrot.slane %v3769_v4, 4  ;;  %v5774_v44 = vld [vmem:[%s6860_s26 + $0xa8] sm:$0xf]  ;;  %v3868_v22 = vshll.u32 %v8007_v57, 16  ;;  %v3789_v33 = vsel %vm6886_vm4, %v3784_v7, %v7957_v20  ;;  %v3799_v23 = vsel %vm6886_vm4, %v3794_v6, %v3798_v8 }
  0xf7   : > { %6194 = vmatprep.mubr.msk.bf16.mxu1 %vm659_vm3, %v9016_v11  ;;  %6348 = vmatprep.mubr.msk.bf16.mxu0 %vm659_vm3, %v7761_v29  ;;  %v3842_v29 = vrot.slane %v3841_v60, 4  ;;  %v3873_v4 = vshrl.u32 %v5774_v44, 16  ;;  %v3876_v50 = vshll.u32 %v5774_v44, 16  ;;  %v3865_v53 = vor.u32 %v3864_v28, %v8003_v54  ;;  %v5823_v11 = vld [vmem:[%s6860_s26 + $0x48] sm:$0xe] }
  0xf8   : > { %v3775_v27 = vsel %vm6886_vm4, %v3770_v14, %v3774_v51  ;;  %v3882_v59 = vshll.u32 %v8010_v34, 16  ;;  %v3886_v61 = vshrl.u32 %v8010_v34, 16  ;;  %v3813_v63 = vsel %vm6886_vm4, %v3808_v39, %v7959_v10  ;;  %v8085_v39 = vld [vmem:[%s6860_s26 + $0xb8] sm:$0xf] }
  0xf9   : > { %v3823_v18 = vsel %vm6886_vm4, %v3818_v55, %v3822_v17  ;;  %v3837_v20 = vsel %vm6886_vm4, %v3832_v62, %v7969_v46  ;;  %v3856_v31 = vrot.slane %v3855_v49, 4  ;;  %v9017_v51 = vcombine.low %v7723_v12, %v7738_v35 }
  0xfa   : > { %v3875_v10 = vrot.slane %v3873_v4, 4  ;;  %v3878_v60 = vrot.slane %v3876_v50, 5  ;;  %v3892_v9 = vshll.u32 %v8020_v48, 16  ;;  %v9018_v46 = vcombine.low %v7808_v21, %v7833_v56  ;;  %v5777_v21 = vld [vmem:[%s6860_s26 + $0xb4] sm:$0xf] }
  0xfb   : > { %v5444_v12 = vcombine.low %v7884_v42, %v7891_v47  ;;  %v9019_v35 = vsel %vm6886_vm4, %v7904_v5, %v7893_v41  ;;  %v3866_v14 = vrot.slane %v3865_v53, 4  ;;  %v3870_v28 = vrot.slane %v3868_v22, 5  ;;  %v5825_v4 = vld [vmem:[%s6860_s26 + $0x60] sm:$0xe]  ;;  %v5826_v53 = vld [vmem:[%s6860_s26 + $0x6c] sm:$0xe] }
  0xfc   : > { %v5445_v56 = vcombine.low %v7908_v43, %v7993_v16  ;;  %v8068_v44 = vcombine.low %v3765_v52, %v3775_v27  ;;  %v8070_v42 = vrot.slane %v3882_v59, 5  ;;  %v3888_v47 = vrot.slane %v3886_v61, 4  ;;  %v9028_v16 = vld [vmem:[#allocation4_spill] sm:$0xff] }
  0xfd   : > { %6349 = vmatmul.mubr.msk.bf16.gmra.mrb[4].mxu0 %vm659_vm3, %v7864_v37  ;;  %v3847_v37 = vsel %vm6886_vm4, %v3842_v29, %v3846_v26  ;;  %v8072_v41 = vcombine.low %v3789_v33, %v3799_v23  ;;  %v8074_v5 = vcombine.low %v3813_v63, %v3823_v18  ;;  %v3861_v6 = vsel %vm6886_vm4, %v3856_v31, %v8003_v54  ;;  %v9021_v23 = vld [vmem:[#allocation11_spill] sm:$0xff]  ;;  %v5780_v63 = vld [vmem:[%s6860_s26 + $0xc0] sm:$0xf]  ;;  %v9023_v18 = vld [vmem:[#allocation9_spill] sm:$0xff] }
  0xfe   : > { %6195 = vmatmul.mubr.msk.bf16.gmra.mrb[20].mxu1 %vm659_vm3, %v9017_v51  ;;  %6352 = vmatprep.mubr.msk.bf16.mxu0 %vm659_vm3, %v7878_v58  ;;  %v9020_v58 = vsel %vm6886_vm4, %v7866_v19, %v7821_v1  ;;  %v8076_v7 = vcombine.low %v3837_v20, %v3847_v37  ;;  %v5839_v1 = vrot.slane %v5823_v11, 9  ;;  %v5824_v19 = vld [vmem:[%s6860_s26 + $0x54] sm:$0xe]  ;;  %v3879_v8 = vor.u32 %v3878_v60, %v3875_v10  ;;  %v9024_v31 = vld [vmem:[#allocation10_spill] sm:$0xff] }
  0xff   : > { %6198 = vmatprep.mubr.msk.bf16.mxu1 %vm659_vm3, %v9018_v46  ;;  %v5793_v40 = vcombine.low %v9020_v58, %v9019_v35  ;;  %v8082_v17 = vrot.slane %v3892_v9, 5  ;;  %v3897_v55 = vshrl.u32 %v5777_v21, 16  ;;  %v3871_v62 = vsel %vm6886_vm4, %v3866_v14, %v3870_v28  ;;  %v9025_v9 = vld [vmem:[#allocation12_spill] sm:$0xff]  ;;  %v8134_v35 = vld [vmem:[%s6860_s26 + $0xbc] sm:$0x1] }
 0x100   : > { %v3900_v49 = vshll.u32 %v5777_v21, 16  ;;  %v4356_v29 = vrot.slane %v7716_v0, 5  ;;  %v4359_v26 = vrot.slane %v7770_v38, 5  ;;  %v3889_v50 = vor.u32 %v3888_v47, %v8070_v42  ;;  %v8137_v58 = vld [vmem:[%s6860_s26 + $0xc4] sm:$0xf] }
 0x101   : > { %v5840_v52 = vrot.slane %v5824_v19, 9  ;;  %v4363_v54 = vrot.slane %v7727_v24, 5  ;;  %v4366_v27 = vrot.slane %v7779_v15, 5  ;;  %v3906_v22 = vshll.u32 %v8085_v39, 16  ;;  %v5827_v19 = vld [vmem:[%s6860_s26 + $0x78] sm:$0xe] }
 0x102   : > { %v3910_v33 = vshrl.u32 %v8085_v39, 16  ;;  %v8102_v0 = vsel %vm7112_vm7, %v5839_v1, %v4356_v29  ;;  %v4358_v38 = vrot.slane %v4356_v29, 4  ;;  %v9022_v59 = vcombine.low %v7841_v36, %v9021_v23  ;;  %v9026_v23 = vld [vmem:[#allocation13_spill] sm:$0xff] }
 0x103   : > { %v8109_v24 = vcombine.low %v3861_v6, %v3871_v62  ;;  %v8113_v15 = vsel %vm7112_vm7, %v5840_v52, %v4363_v54  ;;  %v5841_v61 = vrot.slane %v5825_v4, 9  ;;  %v4370_v20 = vrot.slane %v9023_v18, 5  ;;  %v6721_v6 = vld [vmem:[%s6860_s26 + $0xc] sm:$0xff]  }
 0x104   : > { %v8119_v36 = vsel %vm7112_vm7, %v4358_v38, %v4359_v26  ;;  %v4373_v51 = vrot.slane %v9024_v31, 5  ;;  %v5842_v37 = vrot.slane %v5826_v53, 9  ;;  %v4377_v11 = vrot.slane %v9025_v9, 5 }
 0x105   : > { %6353 = vmatmul.mubr.msk.bf16.gmra.mrb[8].mxu0 %vm659_vm3, %v7887_v30  ;;  %v4365_v30 = vrot.slane %v4363_v54, 4  ;;  %v5856_v10 = vcombine.low %v8102_v0, %v8119_v36  ;;  %v4380_v46 = vrot.slane %v7937_v45, 5  ;;  %v8143_v14 = vsel %vm7112_vm7, %v5841_v61, %v4370_v20 }
 0x106   : > { %6199 = vmatmul.mubr.msk.bf16.gmra.mrb[24].mxu1 %vm659_vm3, %v9022_v59  ;;  %6356 = vmatprep.mubr.msk.bf16.mxu0 %vm659_vm3, %v5793_v40  ;;  %v4372_v28 = vrot.slane %v4370_v20, 4  ;;  %v8145_v21 = vrot.slane %v3897_v55, 4  ;;  %v3921_v47 = vshrl.u32 %v5780_v63, 16  ;;  %v8149_v45 = vsel %vm7112_vm7, %v5842_v37, %v4377_v11  ;;  %v5554_v55 = vld [vmem:[%s6860_s26 + $0x78] sm:$0xf]  ;;  %v9027_v59 = vld [vmem:[#allocation16_spill] sm:$0xff] }
 0x107   : > { %6202 = vmatprep.mubr.msk.bf16.mxu1 %vm659_vm3, %v5444_v12  ;;  %v8127_v60 = vsel %vm7112_vm7, %v4365_v30, %v4366_v27  ;;  %v8131_v12 = vrot.slane %v3879_v8, 4  ;;  %v4379_v1 = vrot.slane %v4377_v11, 4  ;;  %v8153_v8 = vrot.slane %v3889_v50, 4 }
 0x108   : > { %v5857_v40 = vcombine.low %v8113_v15, %v8127_v60  ;;  %v8155_v62 = vrot.slane %v3900_v49, 5  ;;  %v3924_v29 = vshll.u32 %v5780_v63, 16  ;;  %v8159_v26 = vsel %vm7112_vm7, %v4372_v28, %v4373_v51  ;;  %v9030_v28 = vld [vmem:[#allocation14_spill] sm:$0xff] }
 0x109   : > { %v8162_v4 = vrot.slane %v3906_v22, 5  ;;  %v8164_v52 = vrot.slane %v3910_v33, 4  ;;  %v5858_v54 = vcombine.low %v8143_v14, %v8159_v26  ;;  %v8170_v27 = vsel %vm7112_vm7, %v4379_v1, %v4380_v46  ;;  %v5828_v33 = vld [vmem:[%s6860_s26 + $0x84] sm:$0xe]  ;;  %v6722_v1 = vld [vmem:[%s6860_s26 + $0x18] sm:$0xff]  }
 0x10a   : > { %v3916_v49 = vshll.u32 %v8134_v35, 16  ;;  %v3930_v50 = vshll.u32 %v8137_v58, 16  ;;  %v5859_v53 = vcombine.low %v8149_v45, %v8170_v27  ;;  %v5843_v22 = vrot.slane %v5827_v19, 9  ;;  %v6784_v60 = vld [vmem:[%s6860_s26 + $0xa0] sm:$0xf] }
 0x10b   : > { %v3923_v38 = vrot.slane %v3921_v47, 4  ;;  %v4387_v30 = vrot.slane %v9027_v59, 5  ;;  %v2246_v61 = vshrl.u32 %v5554_v55, 16  ;;  %v3926_v63 = vrot.slane %v3924_v29, 5  ;;  %v5783_v29 = vld [vmem:[%s6860_s26 + $0xcc] sm:$0xf] }
 0x10c   : > { %v3934_v18 = vshrl.u32 %v8137_v58, 16  ;;  %v2249_v43 = vshll.u32 %v5554_v55, 16  ;;  %v5844_v37 = vrot.slane %v5828_v33, 9  ;;  %v3885_v9 = vsel %vm6886_vm4, %v8131_v12, %v8070_v42  ;;  %v8213_v55 = vld [vmem:[%s6860_s26 + $0xd0] sm:$0xf] }
 0x10d   : > { %6357 = vmatmul.mubr.msk.bf16.gmra.mrb[12].mxu0 %vm659_vm3, %v8068_v44  ;;  %v4384_v44 = vrot.slane %v9026_v23, 5  ;;  %v2248_v51 = vrot.slane %v2246_v61, 4  ;;  %v3903_v11 = vor.u32 %v8155_v62, %v8145_v21  ;;  %v4391_v47 = vrot.slane %v9030_v28, 5  ;;  %v6723_v21 = vld [vmem:[%s6860_s26 + $0x24] sm:$0xff]   ;;  %v6788_v27 = vld [vmem:[%s6860_s26 + $0xac] sm:$0xf] }
 0x10e   : > { %6203 = vmatmul.mubr.msk.bf16.gmra.mrb[28].mxu1 %vm659_vm3, %v5445_v56  ;;  %6360 = vmatprep.mubr.msk.bf16.mxu0 %vm659_vm3, %v8072_v41  ;;  %v9029_v56 = vld [vmem:[#allocation5_spill] sm:$0xff]  ;;  %v2251_v46 = vrot.slane %v2249_v43, 5  ;;  %v3895_v19 = vsel %vm6886_vm4, %v8153_v8, %v8082_v17  ;;  %v4394_v12 = vrot.slane %v7965_v2, 5  ;;  %v8221_v62 = vrot.slane %v3930_v50, 5  ;;  %v5829_v8 = vld [vmem:[%s6860_s26 + $0x90] sm:$0xe] }
 0x10f   : > { %6208 = vmatprep.mubr.msk.bf16.mxu1 %vm659_vm3, %v6721_v6  ;;  %v2268_v41 = vsel %vm6886_vm4, %v9029_v56, %v9028_v16  ;;  %v8195_v20 = vsel %vm7112_vm7, %v5843_v22, %v4384_v44  ;;  %v4386_v31 = vrot.slane %v4384_v44, 4  ;;  %v3913_v6 = vor.u32 %v8164_v52, %v8162_v4  ;;  %v8227_v52 = vld [vmem:[%s6860_s26 + $0xc8] sm:$0x1]  ;;  %v9032_v16 = vld [vmem:[#allocation2_spill] sm:$0xff] }
 0x110   : > { %v3936_v22 = vrot.slane %v3934_v18, 4  ;;  %v2252_v17 = vor.u32 %v2251_v46, %v2248_v51  ;;  %v3918_v23 = vrot.slane %v3916_v49, 5  ;;  %v3927_v44 = vor.u32 %v3926_v63, %v3923_v38  ;;  %v9033_v51 = vld [vmem:[#allocation3_spill] sm:$0xff] }
 0x111   : > { %v8217_v42 = vsel %vm7112_vm7, %v4386_v31, %v4387_v30  ;;  %v8231_v59 = vsel %vm7112_vm7, %v5844_v37, %v4391_v47  ;;  %v4393_v30 = vrot.slane %v4391_v47, 4  ;;  %v3945_v2 = vshrl.u32 %v5783_v29, 16 }
 0x112   : > { %v5860_v33 = vcombine.low %v8195_v20, %v8217_v42  ;;  %v3948_v50 = vshll.u32 %v5783_v29, 16  ;;  %v3954_v61 = vshll.u32 %v8213_v55, 16  ;;  %v2253_v18 = vrot.slane %v2252_v17, 4  ;;  %v6724_v29 = vld [vmem:[%s6860_s26 + $0x30] sm:$0xff]  }
 0x113   : > { %v3958_v49 = vshrl.u32 %v8213_v55, 16  ;;  %v8242_v38 = vsel %vm7112_vm7, %v4393_v30, %v4394_v12  ;;  %v5845_v63 = vrot.slane %v5829_v8, 9  ;;  %v3937_v56 = vor.u32 %v3936_v22, %v8221_v62 }
 0x114   : > { %v3940_v31 = vshll.u32 %v8227_v52, 16  ;;  %v5861_v37 = vcombine.low %v8231_v59, %v8242_v38  ;;  %v5799_v46 = vcombine.low %v3885_v9, %v3895_v19  ;;  %v3904_v28 = vrot.slane %v3903_v11, 4  ;;  %v5830_v11 = vld [vmem:[%s6860_s26 + $0x9c] sm:$0xe] }
 0x115   : > { %6361 = vmatmul.mubr.msk.bf16.gmra.mrb[16].mxu0 %vm659_vm3, %v8074_v5  ;;  %v9031_v5 = vld [vmem:[#allocation15_spill] sm:$0xff]  ;;  %v3914_v47 = vrot.slane %v3913_v6, 4  ;;  %v3928_v12 = vrot.slane %v3927_v44, 4  ;;  %v4401_v8 = vrot.slane %v7974_v3, 5  ;;  %v3947_v30 = vrot.slane %v3945_v2, 4  ;;  %v6725_v19 = vld [vmem:[%s6860_s26 + $0x3c] sm:$0xff]  }
 0x116   : > { %6209 = vmatmul.mubr.msk.bf16.vlgmr.msra.gmra.mrb[0].mxu1 %vm659_vm3, %v6722_v1  ;;  %6364 = vmatprep.mubr.msk.bf16.mxu0 %vm659_vm3, %v8076_v7  ;;  %v4398_v43 = vrot.slane %v9031_v5, 5  ;;  %v2258_v7 = vsel %vm6886_vm4, %v2253_v18, %v9033_v51  ;;  %v3950_v18 = vrot.slane %v3948_v50, 5  ;;  %v8265_v5 = vrot.slane %v3954_v61, 5 }
 0x117   : > { %6411 = vmatpush3.bf16.msra.mxu1 %v9032_v16  ;;  %6212 = vmatprep.mubr.msk.bf16.mxu1 %vm659_vm3, %v6723_v21  ;;  %v8254_v1 = vcombine.low %v2258_v7, %v2268_v41  ;;  %v8258_v21 = vld [vmem:[%s6860_s26 + $0xd4] sm:$0x1]  ;;  %v3960_v9 = vrot.slane %v3958_v49, 4  ;;  %v3938_v41 = vrot.slane %v3937_v56, 4  ;;  %v3942_v6 = vrot.slane %v3940_v31, 5 }
 0x118   : > { %v8262_v22 = vsel %vm7112_vm7, %v5845_v63, %v4398_v43  ;;  %v4400_v17 = vrot.slane %v4398_v43, 4  ;;  %v3909_v63 = vsel %vm6886_vm4, %v3904_v28, %v8162_v4  ;;  %v3919_v2 = vsel %vm6886_vm4, %v3914_v47, %v3918_v23  ;;  %v6775_v16 = vld [vmem:[%s6860_s26 + $0x1c] sm:$0xf]  ;;  %v5831_v28 = vld [vmem:[%s6860_s26 + $0xa8] sm:$0xe] }
 0x119   : > { %v3964_v50 = vshll.u32 %v8258_v21, 16  ;;  %v5846_v61 = vrot.slane %v5830_v11, 9  ;;  %v4405_v49 = vrot.slane %v7962_v25, 5  ;;  %v3933_v4 = vsel %vm6886_vm4, %v3928_v12, %v8221_v62  ;;  %v5819_v62 = vld [vmem:[%s6860_s26 + $0x18] sm:$0xe]  ;;  %v6726_v47 = vld [vmem:[%s6860_s26 + $0x48] sm:$0xff]  }
 0x11a   : > { %v8271_v44 = vsel %vm7112_vm7, %v4400_v17, %v4401_v8  ;;  %v3961_v43 = vor.u32 %v3960_v9, %v8265_v5  ;;  %v4408_v23 = vrot.slane %v8007_v57, 5  ;;  %v3943_v25 = vsel %vm6886_vm4, %v3938_v41, %v3942_v6  ;;  %v6776_v11 = vld [vmem:[%s6860_s26 + $0x20] sm:$0x1] }
 0x11b   : > { %v5862_v3 = vcombine.low %v8262_v22, %v8271_v44  ;;  %v4328_v56 = vrot.slane %v6775_v16, 5  ;;  %v8297_v31 = vsel %vm7112_vm7, %v5846_v61, %v4405_v49  ;;  %v4407_v51 = vrot.slane %v4405_v49, 4  ;;  %v5832_v49 = vld [vmem:[%s6860_s26 + $0xb4] sm:$0xe] }
 0x11c   : > { %v5800_v7 = vcombine.low %v3909_v63, %v3919_v2  ;;  %v3962_v17 = vrot.slane %v3961_v43, 4  ;;  %v5847_v41 = vrot.slane %v5831_v28, 9  ;;  %v4412_v6 = vrot.slane %v8010_v34, 5  ;;  %v5820_v2 = vld [vmem:[%s6860_s26 + $0x24] sm:$0xe] }
 0x11d   : > { %6365 = vmatmul.mubr.msk.bf16.gmra.mrb[20].mxu0 %vm659_vm3, %v8109_v24  ;;  %v3951_v24 = vor.u32 %v3950_v18, %v3947_v30  ;;  %v8302_v57 = vsel %vm7112_vm7, %v4407_v51, %v4408_v23  ;;  %v6727_v30 = vld [vmem:[%s6860_s26 + $0x54] sm:$0xff]   ;;  %v5835_v18 = vrot.slane %v5819_v62, 9  ;;  %v4330_v9 = vrot.slane %v4328_v56, 4  ;;  %v6779_v28 = vld [vmem:[%s6860_s26 + $0x2c] sm:$0x1] }
 0x11e   : > { %6213 = vmatmul.mubr.msk.bf16.gmra.mrb[4].mxu1 %vm659_vm3, %v6724_v29  ;;  %6368 = vmatprep.mubr.msk.bf16.mxu0 %vm659_vm3, %v5799_v46  ;;  %v3966_v46 = vrot.slane %v3964_v50, 5  ;;  %v5801_v29 = vcombine.low %v3933_v4, %v3943_v25  ;;  %v5863_v8 = vcombine.low %v8297_v31, %v8302_v57  ;;  %v4415_v63 = vrot.slane %v8020_v48, 5  ;;  %v6777_v50 = vld [vmem:[%s6860_s26 + $0x28] sm:$0xf]  ;;  %v5821_v25 = vld [vmem:[%s6860_s26 + $0x30] sm:$0xe] }
 0x11f   : > { %6216 = vmatprep.mubr.msk.bf16.mxu1 %vm659_vm3, %v6725_v19  ;;  %v3952_v12 = vrot.slane %v3951_v24, 4  ;;  %v4331_v19 = vrot.slane %v6776_v11, 5  ;;  %v4335_v61 = vrot.slane %v6777_v50, 5  ;;  %v8325_v48 = vsel %vm7112_vm7, %v5847_v41, %v4412_v6  ;;  %v6729_v11 = vld [vmem:[%s6860_s26 + $0x6c] sm:$0xff]   ;;  %v9034_v41 = vld [vmem:[#allocation6_spill] sm:$0xff] }
 0x120   : > { %v3967_v34 = vsel %vm6886_vm4, %v3962_v17, %v3966_v46  ;;  %v4414_v24 = vrot.slane %v4412_v6, 4  ;;  %v4329_v43 = vsel %vm7112_vm7, %v5835_v18, %v4328_v56  ;;  %v5836_v51 = vrot.slane %v5820_v2, 9  ;;  %v5833_v50 = vld [vmem:[%s6860_s26 + $0xc0] sm:$0xe]  ;;  %v6793_v31 = vld [vmem:[%s6860_s26 + $0xc8] sm:$0x1] }
 0x121   : > { %v3957_v4 = vsel %vm6886_vm4, %v3952_v12, %v8265_v5  ;;  %v4332_v23 = vsel %vm7112_vm7, %v4330_v9, %v4331_v19  ;;  %v6778_v5 = vld [vmem:[%s6860_s26 + $0x34] sm:$0xf]  ;;  %v6728_v12 = vld [vmem:[%s6860_s26 + $0x60] sm:$0xff]   ;;  %v5837_v18 = vrot.slane %v5821_v25, 9  ;;  %v4422_v9 = vrot.slane %v8134_v35, 5 }
 0x122   : > { %v4342_v16 = vrot.slane %v6778_v5, 5  ;;  %v8336_v62 = vsel %vm7112_vm7, %v4414_v24, %v4415_v63  ;;  %v5802_v46 = vcombine.low %v3957_v4, %v3967_v34  ;;  %v5852_v17 = vcombine.low %v4329_v43, %v4332_v23  ;;  %v5822_v24 = vld [vmem:[%s6860_s26 + $0x3c] sm:$0xe] }
 0x123   : > { %v5864_v56 = vcombine.low %v8325_v48, %v8336_v62  ;;  %v4345_v6 = vrot.slane %v9034_v41, 5  ;;  %v4336_v35 = vsel %vm7112_vm7, %v5836_v51, %v4335_v61  ;;  %v5849_v5 = vrot.slane %v5833_v50, 9 }
 0x124   : > { %v4344_v19 = vrot.slane %v4342_v16, 4  ;;  %v4343_v23 = vsel %vm7112_vm7, %v5837_v18, %v4342_v16  ;;  %v4429_v51 = vrot.slane %v8227_v52, 5  ;;  %v2409_v57 = vshll.u32 %v6793_v31, 16 }
 0x125   : > { %6369 = vmatmul.mubr.msk.bf16.gmra.mrb[24].mxu0 %vm659_vm3, %v5800_v7  ;;  %v5848_v7 = vrot.slane %v5832_v49, 9 }
 0x126   : > { %6217 = vmatmul.mubr.msk.bf16.gmra.mrb[8].mxu1 %vm659_vm3, %v6726_v47  ;;  %6372 = vmatprep.mubr.msk.bf16.mxu0 %vm659_vm3, %v5801_v29  ;;  %v4338_v47 = vrot.slane %v6779_v28, 5  ;;  %v4419_v29 = vrot.slane %v8085_v39, 5  ;;  %v9035_v39 = vld [vmem:[#allocation7_spill] sm:$0xff]  ;;  %v4346_v25 = vsel %vm7112_vm7, %v4344_v19, %v4345_v6  ;;  %v5838_v28 = vrot.slane %v5822_v24, 9 }
 0x127   : > { %6220 = vmatprep.mubr.msk.bf16.mxu1 %vm659_vm3, %v6727_v30  ;;  %v4337_v30 = vrot.slane %v4335_v61, 4  ;;  %v4349_v49 = vrot.slane %v9035_v39, 5  ;;  %v4426_v61 = vrot.slane %v8137_v58, 5  ;;  %v6780_v39 = vld [vmem:[%s6860_s26 + $0x70] sm:$0xf]  ;;  %v4433_v24 = vrot.slane %v8213_v55, 5 }
 0x128   : > { %v8348_v63 = vsel %vm7112_vm7, %v5848_v7, %v4419_v29  ;;  %v4421_v2 = vrot.slane %v4419_v29, 4  ;;  %v5551_v7 = vld [vmem:[%s6860_s26 + $0x6c] sm:$0xf]  ;;  %v9036_v29 = vld [vmem:[#allocation8_spill] sm:$0xff] }
 0x129   : > { %v4339_v34 = vsel %vm7112_vm7, %v4337_v30, %v4338_v47  ;;  %v4351_v47 = vrot.slane %v4349_v49, 4  ;;  %v6730_v30 = vld [vmem:[%s6860_s26 + $0x78] sm:$0xff]   ;;  %v8379_v16 = vsel %vm7112_vm7, %v5849_v5, %v4426_v61  ;;  %v4428_v18 = vrot.slane %v4426_v61, 4 }
 0x12a   : > { %v8355_v4 = vsel %vm7112_vm7, %v4421_v2, %v4422_v9  ;;  %v5854_v9 = vcombine.low %v4343_v23, %v4346_v25  ;;  %v2222_v19 = vshrl.u32 %v5551_v7, 16  ;;  %v2225_v41 = vshll.u32 %v5551_v7, 16 }
 0x12b   : > { %v5865_v43 = vcombine.low %v8348_v63, %v8355_v4  ;;  %v8384_v58 = vsel %vm7112_vm7, %v4428_v18, %v4429_v51  ;;  %v4350_v6 = vsel %vm7112_vm7, %v5838_v28, %v4349_v49  ;;  %v4436_v49 = vrot.slane %v8258_v21, 5  ;;  %v6732_v51 = vld [vmem:[%s6860_s26 + $0x90] sm:$0xff]   ;;  %v6733_v21 = vld [vmem:[%s6860_s26 + $0x9c] sm:$0xff]  }
 0x12c   : > { %v5866_v50 = vcombine.low %v8379_v16, %v8384_v58  ;;  %v2224_v23 = vrot.slane %v2222_v19, 4  ;;  %v2227_v25 = vrot.slane %v2225_v41, 5  ;;  %v4435_v7 = vrot.slane %v4433_v24, 4 }
 0x12d   : > { %6373 = vmatmul.mubr.msk.bf16.gmra.mrb[28].mxu0 %vm659_vm3, %v5802_v46  ;;  %v5853_v46 = vcombine.low %v4336_v35, %v4339_v34  ;;  %v2231_v35 = vshll.u32 %v6780_v39, 16  ;;  %v2235_v34 = vshrl.u32 %v6780_v39, 16 }
 0x12e   : > { %6221 = vmatmul.mubr.msk.bf16.gmra.mrb[12].mxu1 %vm659_vm3, %v6728_v12  ;;  %6378 = vmatprep.mubr.msk.bf16.mxu0 %vm659_vm3, %v5852_v17  ;;  %v4352_v12 = vrot.slane %v9036_v29, 5  ;;  %v5834_v17 = vld [vmem:[%s6860_s26 + $0xcc] sm:$0xe]  ;;  %v8406_v55 = vsel %vm7112_vm7, %v4435_v7, %v4436_v49 }
 0x12f   : > { %6224 = vmatprep.mubr.msk.bf16.mxu1 %vm659_vm3, %v6729_v11  ;;  %v6731_v11 = vld [vmem:[%s6860_s26 + $0x84] sm:$0xff]   ;;  %v5850_v52 = vrot.slane %v5834_v17, 9  ;;  %v2237_v28 = vrot.slane %v2235_v34, 4  ;;  %v6781_v17 = vld [vmem:[%s6860_s26 + $0x74] sm:$0x1] }
 0x130   : > { %v4353_v2 = vsel %vm7112_vm7, %v4351_v47, %v4352_v12  ;;  %v5557_v47 = vld [vmem:[%s6860_s26 + $0x84] sm:$0xf]  ;;  %v2228_v12 = vor.u32 %v2227_v25, %v2224_v23  ;;  %v6735_v34 = vld [vmem:[%s6860_s26 + $0xb4] sm:$0xff]  }
 0x131   : > { %v8401_v5 = vsel %vm7112_vm7, %v5850_v52, %v4433_v24  ;;  %v5855_v61 = vcombine.low %v4350_v6, %v4353_v2  ;;  %v2273_v18 = vshll.u32 %v5557_v47, 16  ;;  %v5560_v6 = vld [vmem:[%s6860_s26 + $0x90] sm:$0xf]  ;;  %v6734_v2 = vld [vmem:[%s6860_s26 + $0xa8] sm:$0xff]  }
 0x132   : > { %v5867_v29 = vcombine.low %v8401_v5, %v8406_v55  ;;  %v2229_v52 = vrot.slane %v2228_v12, 4  ;;  %v2294_v23 = vshrl.u32 %v5560_v6, 16  ;;  %v2297_v25 = vshll.u32 %v5560_v6, 16 }
 0x133   : > { %v2327_v12 = vshll.u32 %v6784_v60, 16 }
 0x134   : > { %v2299_v14 = vrot.slane %v2297_v25, 5  ;;  %v6787_v25 = vld [vmem:[%s6860_s26 + $0xa4] sm:$0x1] }
 0x135   : > { %6379 = vmatmul.mubr.msk.bf16.vlgmr.msra.gmra.mrb[0].mxu0 %vm659_vm3, %v5853_v46  ;;  %v2233_v46 = vrot.slane %v2231_v35, 5  ;;  %v5563_v35 = vld [vmem:[%s6860_s26 + $0x9c] sm:$0xf]  ;;  %v8448_v6 = vrot.slane %v2327_v12, 5 }
 0x136   : > { %6225 = vmatmul.mubr.msk.bf16.gmra.mrb[16].mxu1 %vm659_vm3, %v6730_v30  ;;  %6382 = vmatprep.mubr.msk.bf16.mxu0 %vm659_vm3, %v5854_v9  ;;  %v2241_v30 = vshll.u32 %v6781_v17, 16  ;;  %v2270_v9 = vshrl.u32 %v5557_v47, 16  ;;  %v2321_v47 = vshll.u32 %v5563_v35, 16  ;;  %v6785_v17 = vld [vmem:[%s6860_s26 + $0x8c] sm:$0x1] }
 0x137   : > { %6228 = vmatprep.mubr.msk.bf16.mxu1 %vm659_vm3, %v6731_v11  ;;  %v2238_v13 = vor.u32 %v2237_v28, %v2233_v46  ;;  %v6782_v11 = vld [vmem:[%s6860_s26 + $0x88] sm:$0xf]  ;;  %v2234_v7 = vsel %vm6886_vm4, %v2229_v52, %v2233_v46 }
 0x138   : > { %v2279_v19 = vshll.u32 %v6782_v11, 16  ;;  %v2283_v41 = vshrl.u32 %v6782_v11, 16  ;;  %v2243_v0 = vrot.slane %v2241_v30, 5  ;;  %v2272_v36 = vrot.slane %v2270_v9, 4 }
 0x139   : > { %v2239_v39 = vrot.slane %v2238_v13, 4  ;;  %v2289_v30 = vshll.u32 %v6785_v17, 16  ;;  %v2296_v9 = vrot.slane %v2294_v23, 4  ;;  %v2323_v11 = vrot.slane %v2321_v47, 5 }
 0x13a   : > { %v8425_v24 = vrot.slane %v2279_v19, 5  ;;  %v2285_v49 = vrot.slane %v2283_v41, 4  ;;  %v6736_v19 = vld [vmem:[%s6860_s26 + $0xc0] sm:$0xff]  }
 0x13b   : > { %v2244_v46 = vsel %vm6886_vm4, %v2239_v39, %v2243_v0  ;;  %v5566_v39 = vld [vmem:[%s6860_s26 + $0xa8] sm:$0xf] }
 0x13c   : > { %v2286_v13 = vor.u32 %v2285_v49, %v8425_v24  ;;  %v5584_v41 = vcombine.low %v2234_v7, %v2244_v46  ;;  %v2337_v7 = vshll.u32 %v6787_v25, 16  ;;  %v2345_v45 = vshll.u32 %v5566_v39, 16 }
 0x13d   : > { %6383 = vmatmul.mubr.msk.bf16.gmra.mrb[4].mxu0 %vm659_vm3, %v5855_v61  ;;  %v6783_v61 = vld [vmem:[%s6860_s26 + $0x94] sm:$0xf] }
 0x13e   : > { %6229 = vmatmul.mubr.msk.bf16.gmra.mrb[20].mxu1 %vm659_vm3, %v6732_v51  ;;  %6386 = vmatprep.mubr.msk.bf16.mxu0 %vm659_vm3, %v5856_v10  ;;  %v2275_v10 = vrot.slane %v2273_v18, 5  ;;  %v2303_v51 = vshll.u32 %v6783_v61, 16  ;;  %v2307_v28 = vshrl.u32 %v6783_v61, 16  ;;  %v2287_v0 = vrot.slane %v2286_v13, 4 }
 0x13f   : > { %6232 = vmatprep.mubr.msk.bf16.mxu1 %vm659_vm3, %v6733_v21  ;;  %v2318_v21 = vshrl.u32 %v5563_v35, 16  ;;  %v6786_v35 = vld [vmem:[%s6860_s26 + $0x98] sm:$0x1]  ;;  %v2342_v61 = vshrl.u32 %v5566_v39, 16  ;;  %v5572_v39 = vld [vmem:[%s6860_s26 + $0xc0] sm:$0xf] }
 0x140   : > { %v2276_v15 = vor.u32 %v2275_v10, %v2272_v36  ;;  %v8445_v26 = vrot.slane %v2303_v51, 5  ;;  %v2291_v36 = vrot.slane %v2289_v30, 5  ;;  %v2300_v10 = vor.u32 %v2299_v14, %v2296_v9  ;;  %v5569_v51 = vld [vmem:[%s6860_s26 + $0xb4] sm:$0xf] }
 0x141   : > { %v2320_v18 = vrot.slane %v2318_v21, 4  ;;  %v2355_v21 = vshrl.u32 %v6788_v27, 16  ;;  %v2366_v20 = vshrl.u32 %v5569_v51, 16  ;;  %v2369_v42 = vshll.u32 %v5569_v51, 16 }
 0x142   : > { %v2277_v52 = vrot.slane %v2276_v15, 4  ;;  %v2292_v46 = vsel %vm6886_vm4, %v2287_v0, %v2291_v36  ;;  %v2301_v15 = vrot.slane %v2300_v10, 4  ;;  %v2339_v30 = vrot.slane %v2337_v7, 5 }
 0x143   : > { %v2324_v23 = vor.u32 %v2323_v11, %v2320_v18  ;;  %v2344_v9 = vrot.slane %v2342_v61, 4  ;;  %v2357_v11 = vrot.slane %v2355_v21, 4  ;;  %v6792_v61 = vld [vmem:[%s6860_s26 + $0xbc] sm:$0x1] }
 0x144   : > { %v2282_v47 = vsel %vm6886_vm4, %v2277_v52, %v8425_v24  ;;  %v2306_v0 = vsel %vm6886_vm4, %v2301_v15, %v8445_v26  ;;  %v2385_v22 = vshll.u32 %v6792_v61, 16 }
 0x145   : > { %6387 = vmatmul.mubr.msk.bf16.gmra.mrb[8].mxu0 %vm659_vm3, %v5857_v40  ;;  %v2331_v40 = vshrl.u32 %v6784_v60, 16  ;;  %v2325_v17 = vrot.slane %v2324_v23, 4  ;;  %v5586_v24 = vcombine.low %v2282_v47, %v2292_v46 }
 0x146   : > { %6233 = vmatmul.mubr.msk.bf16.gmra.mrb[24].mxu1 %vm659_vm3, %v6734_v2  ;;  %6390 = vmatprep.mubr.msk.bf16.mxu0 %vm659_vm3, %v5858_v54  ;;  %v2309_v54 = vrot.slane %v2307_v28, 4 }
 0x147   : > { %6236 = vmatprep.mubr.msk.bf16.mxu1 %vm659_vm3, %v6735_v34  ;;  %v2333_v2 = vrot.slane %v2331_v40, 4  ;;  %v2313_v34 = vshll.u32 %v6786_v35, 16  ;;  %v2330_v10 = vsel %vm6886_vm4, %v2325_v17, %v8448_v6  ;;  %v2411_v17 = vrot.slane %v2409_v57, 5 }
 0x148   : > { %v2310_v49 = vor.u32 %v2309_v54, %v8445_v26  ;;  %v2347_v54 = vrot.slane %v2345_v45, 5  ;;  %v6790_v26 = vld [vmem:[%s6860_s26 + $0xb0] sm:$0x1] }
 0x149   : > { %v2334_v28 = vor.u32 %v2333_v2, %v8448_v6  ;;  %v2315_v60 = vrot.slane %v2313_v34, 5  ;;  %v2361_v35 = vshll.u32 %v6790_v26, 16  ;;  %v2390_v34 = vshrl.u32 %v5572_v39, 16 }
 0x14a   : > { %v2311_v13 = vrot.slane %v2310_v49, 4  ;;  %v2348_v38 = vor.u32 %v2347_v54, %v2344_v9  ;;  %v2393_v6 = vshll.u32 %v5572_v39, 16  ;;  %v6791_v49 = vld [vmem:[%s6860_s26 + $0xc4] sm:$0xf] }
 0x14b   : > { %v2335_v14 = vrot.slane %v2334_v28, 4  ;;  %v2399_v23 = vshll.u32 %v6791_v49, 16  ;;  %v2403_v25 = vshrl.u32 %v6791_v49, 16  ;;  %v2363_v45 = vrot.slane %v2361_v35, 5 }
 0x14c   : > { %v2316_v36 = vsel %vm6886_vm4, %v2311_v13, %v2315_v60  ;;  %v2349_v51 = vrot.slane %v2348_v38, 4  ;;  %v2387_v60 = vrot.slane %v2385_v22, 5 }
 0x14d   : > { %6391 = vmatmul.mubr.msk.bf16.gmra.mrb[12].mxu0 %vm659_vm3, %v5859_v53  ;;  %v2351_v53 = vshll.u32 %v6788_v27, 16  ;;  %v2340_v59 = vsel %vm6886_vm4, %v2335_v14, %v2339_v30  ;;  %v5587_v44 = vcombine.low %v2306_v0, %v2316_v36  ;;  %v2392_v27 = vrot.slane %v2390_v34, 4 }
 0x14e   : > { %6237 = vmatmul.mubr.msk.bf16.gmra.mrb[28].mxu1 %vm659_vm3, %v6736_v19  ;;  %6394 = vmatprep.mubr.msk.bf16.mxu0 %vm659_vm3, %v5860_v33  ;;  %v6789_v33 = vld [vmem:[%s6860_s26 + $0xb8] sm:$0xf]  ;;  %v2368_v19 = vrot.slane %v2366_v20, 4  ;;  %v2401_v21 = vrot.slane %v2399_v23, 5  ;;  %v2405_v47 = vrot.slane %v2403_v25, 4 }
 0x14f   : > { %6258 = vmatprep.mubr.msk.bf16.mxu1 %vm659_vm3, %v5584_v41  ;;  %v2375_v12 = vshll.u32 %v6789_v33, 16  ;;  %v2379_v40 = vshrl.u32 %v6789_v33, 16  ;;  %v2353_v18 = vrot.slane %v2351_v53, 5  ;;  %v2371_v41 = vrot.slane %v2369_v42, 5 }
 0x150   : > { %v2395_v53 = vrot.slane %v2393_v6, 5 }
 0x151   : > { %v2377_v52 = vrot.slane %v2375_v12, 5  ;;  %v2381_v2 = vrot.slane %v2379_v40, 4  ;;  %v2354_v20 = vsel %vm6886_vm4, %v2349_v51, %v2353_v18  ;;  %v2406_v12 = vor.u32 %v2405_v47, %v2401_v21 }
 0x152   : > { %v2396_v33 = vor.u32 %v2395_v53, %v2392_v27 }
 0x153   : > { %v2382_v7 = vor.u32 %v2381_v2, %v2377_v52  ;;  %v2407_v13 = vrot.slane %v2406_v12, 4 }
 0x154   : > { %v2397_v40 = vrot.slane %v2396_v33, 4 }
 0x155   : > { %6395 = vmatmul.mubr.msk.bf16.gmra.mrb[16].mxu0 %vm659_vm3, %v5861_v37  ;;  %v2358_v37 = vor.u32 %v2357_v11, %v2353_v18  ;;  %v2383_v15 = vrot.slane %v2382_v7, 4  ;;  %v2412_v9 = vsel %vm6886_vm4, %v2407_v13, %v2411_v17 }
 0x156   : > { %6259 = vmatmul.mubr.msk.bf16.vlgmr.msra.gmra.mrb[16].mxu1 %vm659_vm3, %v8254_v1  ;;  %6398 = vmatprep.mubr.msk.bf16.mxu0 %vm659_vm3, %v5862_v3  ;;  %v2372_v1 = vor.u32 %v2371_v41, %v2368_v19  ;;  %v5588_v3 = vcombine.low %v2330_v10, %v2340_v59  ;;  %v2402_v30 = vsel %vm6886_vm4, %v2397_v40, %v2401_v21 }
 0x157   : > { %6262 = vmatprep.mubr.msk.bf16.mxu1 %vm659_vm3, %v5586_v24  ;;  %v2359_v28 = vrot.slane %v2358_v37, 4  ;;  %v2388_v48 = vsel %vm6886_vm4, %v2383_v15, %v2387_v60  ;;  %v5591_v14 = vcombine.low %v2402_v30, %v2412_v9 }
 0x158   : > { %v2373_v46 = vrot.slane %v2372_v1, 4 }
 0x159   : > { %v2364_v42 = vsel %vm6886_vm4, %v2359_v28, %v2363_v45 }
 0x15a   : > { %v5589_v62 = vcombine.low %v2354_v20, %v2364_v42 }
 0x15d   : > { %6399 = vmatmul.mubr.msk.bf16.gmra.mrb[20].mxu0 %vm659_vm3, %v5863_v8  ;;  %v2378_v8 = vsel %vm6886_vm4, %v2373_v46, %v2377_v52 }
 0x15e   : > { %6263 = vmatmul.mubr.msk.bf16.gmra.mrb[20].mxu1 %vm659_vm3, %v5587_v44  ;;  %6402 = vmatprep.mubr.msk.bf16.mxu0 %vm659_vm3, %v5864_v56  ;;  %v5590_v56 = vcombine.low %v2378_v8, %v2388_v48 }
 0x15f   : > { %6266 = vmatprep.mubr.msk.bf16.mxu1 %vm659_vm3, %v5588_v3 }
 0x165   : > { %6403 = vmatmul.mubr.msk.bf16.gmra.mrb[24].mxu0 %vm659_vm3, %v5865_v43 }
 0x166   : > { %6267 = vmatmul.mubr.msk.bf16.gmra.mrb[24].mxu1 %vm659_vm3, %v5589_v62  ;;  %6406 = vmatprep.mubr.msk.bf16.mxu0 %vm659_vm3, %v5866_v50 }
 0x167   : > { %6270 = vmatprep.mubr.msk.bf16.mxu1 %vm659_vm3, %v5590_v56 }
 0x16d   : > { %6407 = vmatmul.mubr.msk.bf16.gmra.mrb[28].mxu0 %vm659_vm3, %v5867_v29 }
 0x16e   : > { %6271 = vmatmul.mubr.msk.bf16.gmra.mrb[28].mxu1 %vm659_vm3, %v5591_v14 }
 0x1e9   : > { %v6210_v63 = vpop.f32.mrb[0].mxu1 }
 0x1ea   : > { %v1822_v4 = vpop.f32.mrb[1].mxu1 }
 0x1eb   : > { %v6211_v43 = vpop.f32.mrb[2].mxu1 }
 0x1ec   : > { %v1825_v16 = vpop.f32.mrb[3].mxu1 }
 0x1f1   : > { %v6214_v58 = vpop.f32.mrb[4].mxu1 }
 0x1f2   : > { %v1838_v50 = vpop.f32.mrb[5].mxu1 }
 0x1f3   : > { %v6215_v54 = vpop.f32.mrb[6].mxu1 }
 0x1f4   : > { %v1841_v18 = vpop.f32.mrb[7].mxu1 }
 0x1f9   : > { %v6218_v11 = vpop.f32.mrb[8].mxu1 }
 0x1fa   : > { %v1854_v24 = vpop.f32.mrb[9].mxu1 }
 0x1fb   : > { %v6219_v32 = vpop.f32.mrb[10].mxu1 }
 0x1fc   : > { %v1857_v19 = vpop.f32.mrb[11].mxu1 }
 0x201   : > { %v6222_v41 = vpop.f32.mrb[12].mxu1 }
 0x202   : > { %v1870_v52 = vpop.f32.mrb[13].mxu1 }
 0x203   : > { %v6223_v2 = vpop.f32.mrb[14].mxu1 }
 0x204   : > { %v1873_v5 = vpop.f32.mrb[15].mxu1 }
 0x208   : > { %v6380_v55 = vpop.f32.mrb[0].mxu0 }
 0x209   : > { %v8536_v29 = vadd.f32 %v6380_v55, %v6210_v63  ;;  %v4573_v39 = vpop.f32.mrb[1].mxu0 }
 0x20a   : > { %v8538_v0 = vadd.f32 %v4573_v39, %v1822_v4  ;;  %v6381_v36 = vpop.f32.mrb[2].mxu0 }
 0x20b   : > { %v8540_v10 = vadd.f32 %v6381_v36, %v6211_v43  ;;  %v4576_v59 = vpop.f32.mrb[3].mxu0  ;;  %4768 = vrot.lane.b32.xlu1 %v8536_v29, %s6802_s16 }
 0x20c   : > { %v8544_v38 = vadd.f32 %v4576_v59, %v1825_v16  ;;  %4764 = vrot.lane.b32.xlu0 %v8538_v0, %s6802_s16 }
 0x20f   : > { %4770 = vrot.lane.b32.xlu1 %v8540_v10, %s6802_s16 }
 0x210   : > { %v6384_v37 = vpop.f32.mrb[4].mxu0  ;;  %4766 = vrot.lane.b32.xlu0 %v8544_v38, %s6802_s16 }
 0x211   : > { %v8552_v26 = vadd.f32 %v6384_v37, %v6214_v58  ;;  %v4589_v35 = vpop.f32.mrb[5].mxu0 }
 0x212   : > { %v8554_v34 = vadd.f32 %v4589_v35, %v1838_v50  ;;  %v6385_v6 = vpop.f32.mrb[6].mxu0 }
 0x213   : > { %v8556_v49 = vadd.f32 %v6385_v6, %v6215_v54  ;;  %v4592_v23 = vpop.f32.mrb[7].mxu0 }
 0x214   : > { %v8558_v25 = vadd.f32 %v4592_v23, %v1841_v18  ;;  %4776 = vrot.lane.b32.xlu0 %v8552_v26, %s6802_s16 }
 0x215   : > { %4778 = vrot.lane.b32.xlu1 %v8556_v49, %s6802_s16 }
 0x218   : > { %v6388_v1 = vpop.f32.mrb[8].mxu0  ;;  %4772 = vrot.lane.b32.xlu0 %v8554_v34, %s6802_s16 }
 0x219   : > { %v8566_v7 = vadd.f32 %v6388_v1, %v6218_v11  ;;  %v4605_v61 = vpop.f32.mrb[9].mxu0  ;;  %4774 = vrot.lane.b32.xlu1 %v8558_v25, %s6802_s16 }
 0x21a   : > { %v8570_v22 = vadd.f32 %v4605_v61, %v1854_v24  ;;  %v6389_v44 = vpop.f32.mrb[10].mxu0 }
 0x21b   : > { %v8572_v3 = vadd.f32 %v6389_v44, %v6219_v32  ;;  %v4608_v51 = vpop.f32.mrb[11].mxu0 }
 0x21c   : > { %v8574_v28 = vadd.f32 %v4608_v51, %v1857_v19  ;;  %4784 = vrot.lane.b32.xlu0 %v8566_v7, %s6802_s16 }
 0x21d   : > { %4786 = vrot.lane.b32.xlu1 %v8572_v3, %s6802_s16 }
 0x220   : > { %v6392_v45 = vpop.f32.mrb[12].mxu0  ;;  %4780 = vrot.lane.b32.xlu0 %v8570_v22, %s6802_s16 }
 0x221   : > { %v8582_v27 = vadd.f32 %v6392_v45, %v6222_v41  ;;  %v4621_v53 = vpop.f32.mrb[13].mxu0  ;;  %4782 = vrot.lane.b32.xlu1 %v8574_v28, %s6802_s16 }
 0x222   : > { %v8586_v21 = vadd.f32 %v4621_v53, %v1870_v52  ;;  %v6393_v47 = vpop.f32.mrb[14].mxu0 }
 0x223   : > { %v8588_v46 = vadd.f32 %v6393_v47, %v6223_v2  ;;  %v4624_v15 = vpop.f32.mrb[15].mxu0 }
 0x224   : > { %v8590_v60 = vadd.f32 %v4624_v15, %v1873_v5  ;;  %4792 = vrot.lane.b32.xlu0 %v8582_v27, %s6802_s16 }
 0x225   : > { %4794 = vrot.lane.b32.xlu1 %v8588_v46, %s6802_s16 }
 0x228   : > { %v6396_v20 = vpop.f32.mrb[16].mxu0  ;;  %4788 = vrot.lane.b32.xlu0 %v8586_v21, %s6802_s16 }
 0x229   : > { %v6260_v42 = vpop.f32.mrb[16].mxu1  ;;  %v4637_v33 = vpop.f32.mrb[17].mxu0  ;;  %4790 = vrot.lane.b32.xlu1 %v8590_v60, %s6802_s16 }
 0x22a   : > { %v8600_v12 = vadd.f32 %v6396_v20, %v6260_v42  ;;  %v2612_v31 = vpop.f32.mrb[17].mxu1  ;;  %v6397_v57 = vpop.f32.mrb[18].mxu0 }
 0x22b   : > { %v8602_v8 = vadd.f32 %v4637_v33, %v2612_v31  ;;  %v6261_v48 = vpop.f32.mrb[18].mxu1  ;;  %v4640_v62 = vpop.f32.mrb[19].mxu0 }
 0x22c   : > { %v8604_v56 = vadd.f32 %v6397_v57, %v6261_v48  ;;  %v2615_v40 = vpop.f32.mrb[19].mxu1  ;;  %4800 = vrot.lane.b32.xlu0 %v8600_v12, %s6802_s16 }
 0x22d   : > { %v8608_v13 = vadd.f32 %v4640_v62, %v2615_v40 }
 0x22e   : > { %4802 = vrot.lane.b32.xlu1 %v8604_v56, %s6802_s16 }
 0x230   : > { %v6400_v17 = vpop.f32.mrb[20].mxu0  ;;  %4796 = vrot.lane.b32.xlu0 %v8602_v8, %s6802_s16 }
 0x231   : > { %v6264_v30 = vpop.f32.mrb[20].mxu1  ;;  %v4653_v9 = vpop.f32.mrb[21].mxu0 }
 0x232   : > { %v8614_v14 = vadd.f32 %v6400_v17, %v6264_v30  ;;  %4798 = vrot.lane.b32.xlu1 %v8608_v13, %s6802_s16  ;;  %v2628_v63 = vpop.f32.mrb[21].mxu1  ;;  %v6401_v4 = vpop.f32.mrb[22].mxu0 }
 0x233   : > { %v8618_v43 = vadd.f32 %v4653_v9, %v2628_v63  ;;  %v6265_v16 = vpop.f32.mrb[22].mxu1  ;;  %v4656_v58 = vpop.f32.mrb[23].mxu0 }
 0x234   : > { %v8620_v50 = vadd.f32 %v6401_v4, %v6265_v16  ;;  %v2631_v54 = vpop.f32.mrb[23].mxu1  ;;  %4808 = vrot.lane.b32.xlu0 %v8614_v14, %s6802_s16 }
 0x235   : > { %v8624_v18 = vadd.f32 %v4656_v58, %v2631_v54 }
 0x236   : > { %4810 = vrot.lane.b32.xlu1 %v8620_v50, %s6802_s16 }
 0x238   : > { %v6404_v11 = vpop.f32.mrb[24].mxu0  ;;  %4804 = vrot.lane.b32.xlu0 %v8618_v43, %s6802_s16 }
 0x239   : > { %v6268_v24 = vpop.f32.mrb[24].mxu1  ;;  %v4669_v32 = vpop.f32.mrb[25].mxu0 }
 0x23a   : > { %v8630_v19 = vadd.f32 %v6404_v11, %v6268_v24  ;;  %4806 = vrot.lane.b32.xlu1 %v8624_v18, %s6802_s16  ;;  %v2644_v41 = vpop.f32.mrb[25].mxu1  ;;  %v6405_v52 = vpop.f32.mrb[26].mxu0 }
 0x23b   : > { %v8634_v2 = vadd.f32 %v4669_v32, %v2644_v41  ;;  %v6269_v5 = vpop.f32.mrb[26].mxu1  ;;  %v4672_v55 = vpop.f32.mrb[27].mxu0 }
 0x23c   : > { %v8636_v39 = vadd.f32 %v6405_v52, %v6269_v5  ;;  %v2647_v36 = vpop.f32.mrb[27].mxu1  ;;  %4816 = vrot.lane.b32.xlu0 %v8630_v19, %s6802_s16 }
 0x23d   : > { %v8640_v59 = vadd.f32 %v4672_v55, %v2647_v36 }
 0x23e   : > { %4818 = vrot.lane.b32.xlu1 %v8636_v39, %s6802_s16 }
 0x240   : > { %v6408_v37 = vpop.f32.mrb[28].mxu0  ;;  %4812 = vrot.lane.b32.xlu0 %v8634_v2, %s6802_s16 }
 0x241   : > { %v6272_v35 = vpop.f32.mrb[28].mxu1  ;;  %v4685_v6 = vpop.f32.mrb[29].mxu0 }
 0x242   : > { %v8646_v23 = vadd.f32 %v6408_v37, %v6272_v35  ;;  %4814 = vrot.lane.b32.xlu1 %v8640_v59, %s6802_s16  ;;  %v2660_v1 = vpop.f32.mrb[29].mxu1  ;;  %v6409_v61 = vpop.f32.mrb[30].mxu0 }
 0x243   : > { %v8650_v44 = vadd.f32 %v4685_v6, %v2660_v1  ;;  %v6273_v51 = vpop.f32.mrb[30].mxu1  ;;  %v4688_v45 = vpop.f32.mrb[31].mxu0 }
 0x244   : > { %v8652_v53 = vadd.f32 %v6409_v61, %v6273_v51  ;;  %v2663_v47 = vpop.f32.mrb[31].mxu1  ;;  %4824 = vrot.lane.b32.xlu0 %v8646_v23, %s6802_s16 }
 0x245   : > { %v8656_v15 = vadd.f32 %v4688_v45, %v2663_v47 }
 0x246   : > { %4826 = vrot.lane.b32.xlu1 %v8652_v53, %s6802_s16 }
 0x248   : > { %4820 = vrot.lane.b32.xlu0 %v8650_v44, %s6802_s16 }
 0x24a   : > { %4822 = vrot.lane.b32.xlu1 %v8656_v15, %s6802_s16 }
 0x27d   : > { %v4769_v20 = vpop.permute.xlu1 %4768 }
 0x27e   : > { %v8665_v42 = vmax.f32 %v8536_v29, %v4769_v20  ;;  %v4765_v33 = vpop.permute.xlu0 %4764 }
 0x27f   : > { %v8670_v57 = vmax.f32 %v8538_v0, %v4765_v33 }
 0x280   : > { %4928 = vrot.lane.b32.xlu0 %v8665_v42, %s6803_s17 }
 0x281   : > { %v4771_v31 = vpop.permute.xlu1 %4770 }
 0x282   : > { %v8673_v48 = vmax.f32 %v8540_v10, %v4771_v31  ;;  %v4767_v62 = vpop.permute.xlu0 %4766 }
 0x283   : > { %v8680_v29 = vmax.f32 %v8544_v38, %v4767_v62 }
 0x284   : > { %4924 = vrot.lane.b32.xlu0 %v8670_v57, %s6803_s17  ;;  %4930 = vrot.lane.b32.xlu1 %v8673_v48, %s6803_s17 }
 0x286   : > { %v4777_v40 = vpop.permute.xlu0 %4776 }
 0x287   : > { %v8683_v17 = vmax.f32 %v8552_v26, %v4777_v40  ;;  %v4779_v30 = vpop.permute.xlu1 %4778 }
 0x288   : > { %4926 = vrot.lane.b32.xlu1 %v8680_v29, %s6803_s17  ;;  %v8690_v0 = vmax.f32 %v8556_v49, %v4779_v30 }
 0x289   : > { %4936 = vrot.lane.b32.xlu0 %v8683_v17, %s6803_s17 }
 0x28a   : > { %v4773_v10 = vpop.permute.xlu0 %4772 }
 0x28b   : > { %v8693_v9 = vmax.f32 %v8554_v34, %v4773_v10  ;;  %v4775_v38 = vpop.permute.xlu1 %4774 }
 0x28c   : > { %4938 = vrot.lane.b32.xlu1 %v8690_v0, %s6803_s17  ;;  %v8700_v26 = vmax.f32 %v8558_v25, %v4775_v38 }
 0x28d   : > { %4932 = vrot.lane.b32.xlu0 %v8693_v9, %s6803_s17 }
 0x28e   : > { %v4785_v63 = vpop.permute.xlu0 %4784 }
 0x28f   : > { %v8703_v4 = vmax.f32 %v8566_v7, %v4785_v63  ;;  %v4787_v49 = vpop.permute.xlu1 %4786 }
 0x290   : > { %4934 = vrot.lane.b32.xlu1 %v8700_v26, %s6803_s17  ;;  %v8710_v34 = vmax.f32 %v8572_v3, %v4787_v49 }
 0x291   : > { %4944 = vrot.lane.b32.xlu0 %v8703_v4, %s6803_s17 }
 0x292   : > { %v4781_v16 = vpop.permute.xlu0 %4780 }
 0x293   : > { %v8713_v58 = vmax.f32 %v8570_v22, %v4781_v16  ;;  %v4783_v25 = vpop.permute.xlu1 %4782 }
 0x294   : > { %4946 = vrot.lane.b32.xlu1 %v8710_v34, %s6803_s17  ;;  %v8720_v7 = vmax.f32 %v8574_v28, %v4783_v25 }
 0x295   : > { %4940 = vrot.lane.b32.xlu0 %v8713_v58, %s6803_s17 }
 0x296   : > { %v4793_v54 = vpop.permute.xlu0 %4792 }
 0x297   : > { %v8723_v11 = vmax.f32 %v8582_v27, %v4793_v54  ;;  %v4795_v3 = vpop.permute.xlu1 %4794 }
 0x298   : > { %4942 = vrot.lane.b32.xlu1 %v8720_v7, %s6803_s17  ;;  %v8730_v22 = vmax.f32 %v8588_v46, %v4795_v3 }
 0x299   : > { %4952 = vrot.lane.b32.xlu0 %v8723_v11, %s6803_s17 }
 0x29a   : > { %v4789_v24 = vpop.permute.xlu0 %4788 }
 0x29b   : > { %v8733_v32 = vmax.f32 %v8586_v21, %v4789_v24  ;;  %v4791_v28 = vpop.permute.xlu1 %4790 }
 0x29c   : > { %4954 = vrot.lane.b32.xlu1 %v8730_v22, %s6803_s17  ;;  %v8740_v27 = vmax.f32 %v8590_v60, %v4791_v28 }
 0x29d   : > { %4948 = vrot.lane.b32.xlu0 %v8733_v32, %s6803_s17 }
 0x29e   : > { %v4801_v41 = vpop.permute.xlu0 %4800 }
 0x29f   : > { %v8743_v52 = vmax.f32 %v8600_v12, %v4801_v41 }
 0x2a0   : > { %v4803_v46 = vpop.permute.xlu1 %4802  ;;  %4950 = vrot.lane.b32.xlu1 %v8740_v27, %s6803_s17 }
 0x2a1   : > { %4960 = vrot.lane.b32.xlu0 %v8743_v52, %s6803_s17  ;;  %v8750_v21 = vmax.f32 %v8604_v56, %v4803_v46 }
 0x2a2   : > { %v4797_v5 = vpop.permute.xlu0 %4796 }
 0x2a3   : > { %v8753_v55 = vmax.f32 %v8602_v8, %v4797_v5 }
 0x2a4   : > { %v4799_v60 = vpop.permute.xlu1 %4798  ;;  %4962 = vrot.lane.b32.xlu1 %v8750_v21, %s6803_s17 }
 0x2a5   : > { %4956 = vrot.lane.b32.xlu0 %v8753_v55, %s6803_s17  ;;  %v8760_v12 = vmax.f32 %v8608_v13, %v4799_v60 }
 0x2a6   : > { %v4809_v36 = vpop.permute.xlu0 %4808 }
 0x2a7   : > { %v8763_v37 = vmax.f32 %v8614_v14, %v4809_v36 }
 0x2a8   : > { %v4811_v56 = vpop.permute.xlu1 %4810  ;;  %4958 = vrot.lane.b32.xlu1 %v8760_v12, %s6803_s17 }
 0x2a9   : > { %4968 = vrot.lane.b32.xlu0 %v8763_v37, %s6803_s17  ;;  %v8770_v8 = vmax.f32 %v8620_v50, %v4811_v56 }
 0x2aa   : > { %v4805_v35 = vpop.permute.xlu0 %4804 }
 0x2ab   : > { %v8773_v6 = vmax.f32 %v8618_v43, %v4805_v35 }
 0x2ac   : > { %v4807_v13 = vpop.permute.xlu1 %4806  ;;  %4970 = vrot.lane.b32.xlu1 %v8770_v8, %s6803_s17 }
 0x2ad   : > { %4964 = vrot.lane.b32.xlu0 %v8773_v6, %s6803_s17  ;;  %v8780_v14 = vmax.f32 %v8624_v18, %v4807_v13 }
 0x2ae   : > { %v4817_v1 = vpop.permute.xlu0 %4816 }
 0x2af   : > { %v8783_v61 = vmax.f32 %v8630_v19, %v4817_v1 }
 0x2b0   : > { %v4819_v50 = vpop.permute.xlu1 %4818  ;;  %4966 = vrot.lane.b32.xlu1 %v8780_v14, %s6803_s17 }
 0x2b1   : > { %4976 = vrot.lane.b32.xlu0 %v8783_v61, %s6803_s17  ;;  %v8790_v43 = vmax.f32 %v8636_v39, %v4819_v50 }
 0x2b2   : > { %v4813_v51 = vpop.permute.xlu0 %4812 }
 0x2b3   : > { %v8793_v45 = vmax.f32 %v8634_v2, %v4813_v51 }
 0x2b4   : > { %v4815_v18 = vpop.permute.xlu1 %4814  ;;  %4978 = vrot.lane.b32.xlu1 %v8790_v43, %s6803_s17 }
 0x2b5   : > { %4972 = vrot.lane.b32.xlu0 %v8793_v45, %s6803_s17  ;;  %v8800_v19 = vmax.f32 %v8640_v59, %v4815_v18 }
 0x2b6   : > { %v4825_v47 = vpop.permute.xlu0 %4824 }
 0x2b7   : > { %v8813_v62 = vmax.f32 %v8646_v23, %v4825_v47  ;;  %v8828_v23 = vld [vmem:[%s8968_s2] ss:$0 sm:$0xff] }
 0x2b8   : > { %v4827_v20 = vpop.permute.xlu1 %4826  ;;  %4974 = vrot.lane.b32.xlu1 %v8800_v19, %s6803_s17 }
 0x2b9   : > { %v8818_v59 = vmax.f32 %v8652_v53, %v4827_v20 }
 0x2ba   : > { %v4821_v39 = vpop.permute.xlu0 %4820 }
 0x2bb   : > { %v8805_v2 = vmax.f32 %v8650_v44, %v4821_v39 }
 0x2bc   : > { %v4823_v33 = vpop.permute.xlu1 %4822 }
 0x2bd   : > { %v8808_v31 = vmax.f32 %v8656_v15, %v4823_v33  ;;  %4980 = vrot.lane.b32.xlu0 %v8805_v2, %s6803_s17 }
 0x2bf   : > { %4982 = vrot.lane.b32.xlu1 %v8808_v31, %s6803_s17 }
 0x2c1   : > { %4984 = vrot.lane.b32.xlu0 %v8813_v62, %s6803_s17 }
 0x2c3   : > { %4986 = vrot.lane.b32.xlu1 %v8818_v59, %s6803_s17 }
 0x2f2   : > { %v4929_v44 = vpop.permute.xlu0 %4928 }
 0x2f3   : > { %v5022_v15 = vmax.f32 %v8665_v42, %v4929_v44 }
 0x2f5   : > { %v5061_v53 = vadd.f32 %v8828_v23, %v5022_v15 }
 0x2f6   : > { %v4925_v40 = vpop.permute.xlu0 %4924  ;;  %v4931_v30 = vpop.permute.xlu1 %4930 }
 0x2f7   : > { %v5093_v10 = vmax.f32 %v5061_v53, 0.0  ;;  %v5020_v38 = vmax.f32 %v8670_v57, %v4925_v40  ;;  %v5023_v63 = vmax.f32 %v8673_v48, %v4931_v30 }
 0x2f9   : > { %v5921_v49 = vpack.c.bf16 %v5093_v10, %v5093_v10  ;;  %v5059_v42 = vadd.f32 %v8828_v23, %v5020_v38  ;;  %v5062_v16 = vadd.f32 %v8828_v23, %v5023_v63 }
 0x2fa   : > { %v4927_v25 = vpop.permute.xlu1 %4926 }
 0x2fb   : > { %5254 = vst.msk [vmem:[%s8837_s23 + $0x8] sm:$0xf] %vm5251_vm8, %v5921_v49  ;;  %v5091_v57 = vmax.f32 %v5059_v42, 0.0  ;;  %v5094_v54 = vmax.f32 %v5062_v16, 0.0  ;;  %v5021_v48 = vmax.f32 %v8680_v29, %v4927_v25  ;;  %v4937_v3 = vpop.permute.xlu0 %4936 }
 0x2fc   : > { %v5026_v24 = vmax.f32 %v8683_v17, %v4937_v3 }
 0x2fd   : > { %v5919_v28 = vpack.c.bf16 %v5091_v57, %v5091_v57  ;;  %v5922_v41 = vpack.c.bf16 %v5094_v54, %v5094_v54  ;;  %v5060_v46 = vadd.f32 %v8828_v23, %v5021_v48 }
 0x2fe   : > { %v5065_v5 = vadd.f32 %v8828_v23, %v5026_v24  ;;  %v4939_v60 = vpop.permute.xlu1 %4938 }
 0x2ff   : > { %5252 = vst.msk [vmem:[%s8837_s23] sm:$0xf] %vm5251_vm8, %v5919_v28  ;;  %5255 = vst.msk [vmem:[%s8837_s23 + $0xc] sm:$0xf] %vm5251_vm8, %v5922_v41  ;;  %v5092_v36 = vmax.f32 %v5060_v46, 0.0  ;;  %v5027_v56 = vmax.f32 %v8690_v0, %v4939_v60  ;;  %v4933_v29 = vpop.permute.xlu0 %4932 }
 0x300   : > { %v5097_v35 = vmax.f32 %v5065_v5, 0.0  ;;  %v5024_v17 = vmax.f32 %v8693_v9, %v4933_v29 }
 0x301   : > { %v5920_v13 = vpack.c.bf16 %v5092_v36, %v5092_v36  ;;  %v5066_v1 = vadd.f32 %v8828_v23, %v5027_v56 }
 0x302   : > { %v5925_v50 = vpack.c.bf16 %v5097_v35, %v5097_v35  ;;  %v5063_v51 = vadd.f32 %v8828_v23, %v5024_v17  ;;  %v4935_v18 = vpop.permute.xlu1 %4934 }
 0x303   : > { %5253 = vst.msk [vmem:[%s8837_s23 + $0x4] sm:$0xf] %vm5251_vm8, %v5920_v13  ;;  %v5098_v47 = vmax.f32 %v5066_v1, 0.0  ;;  %v5025_v20 = vmax.f32 %v8700_v26, %v4935_v18  ;;  %v4945_v39 = vpop.permute.xlu0 %4944 }
 0x304   : > { %5258 = vst.msk [vmem:[%s8837_s23 + $0x18] sm:$0xf] %vm5251_vm8, %v5925_v50  ;;  %v5095_v0 = vmax.f32 %v5063_v51, 0.0  ;;  %v5030_v9 = vmax.f32 %v8703_v4, %v4945_v39 }
 0x305   : > { %v5926_v33 = vpack.c.bf16 %v5098_v47, %v5098_v47  ;;  %v5064_v44 = vadd.f32 %v8828_v23, %v5025_v20 }
 0x306   : > { %v5923_v15 = vpack.c.bf16 %v5095_v0, %v5095_v0  ;;  %v5069_v53 = vadd.f32 %v8828_v23, %v5030_v9  ;;  %v4947_v40 = vpop.permute.xlu1 %4946 }
 0x307   : > { %5259 = vst.msk [vmem:[%s8837_s23 + $0x1c] sm:$0xf] %vm5251_vm8, %v5926_v33  ;;  %v5096_v30 = vmax.f32 %v5064_v44, 0.0  ;;  %v5031_v26 = vmax.f32 %v8710_v34, %v4947_v40  ;;  %v4941_v10 = vpop.permute.xlu0 %4940 }
 0x308   : > { %5256 = vst.msk [vmem:[%s8837_s23 + $0x10] sm:$0xf] %vm5251_vm8, %v5923_v15  ;;  %v5101_v38 = vmax.f32 %v5069_v53, 0.0  ;;  %v5028_v4 = vmax.f32 %v8713_v58, %v4941_v10 }
 0x309   : > { %v5924_v63 = vpack.c.bf16 %v5096_v30, %v5096_v30  ;;  %v5070_v49 = vadd.f32 %v8828_v23, %v5031_v26 }
 0x30a   : > { %v5929_v42 = vpack.c.bf16 %v5101_v38, %v5101_v38  ;;  %v5067_v16 = vadd.f32 %v8828_v23, %v5028_v4  ;;  %v4943_v25 = vpop.permute.xlu1 %4942 }
 0x30b   : > { %5257 = vst.msk [vmem:[%s8837_s23 + $0x14] sm:$0xf] %vm5251_vm8, %v5924_v63  ;;  %v5102_v57 = vmax.f32 %v5070_v49, 0.0  ;;  %v5029_v34 = vmax.f32 %v8720_v7, %v4943_v25  ;;  %v4953_v54 = vpop.permute.xlu0 %4952 }
 0x30c   : > { %5262 = vst.msk [vmem:[%s8837_s23 + $0x28] sm:$0xf] %vm5251_vm8, %v5929_v42  ;;  %v5099_v48 = vmax.f32 %v5067_v16, 0.0  ;;  %v5034_v58 = vmax.f32 %v8723_v11, %v4953_v54 }
 0x30d   : > { %v5930_v3 = vpack.c.bf16 %v5102_v57, %v5102_v57  ;;  %v5068_v24 = vadd.f32 %v8828_v23, %v5029_v34 }
 0x30e   : > { %v5927_v28 = vpack.c.bf16 %v5099_v48, %v5099_v48  ;;  %v5073_v41 = vadd.f32 %v8828_v23, %v5034_v58  ;;  %v4955_v46 = vpop.permute.xlu1 %4954 }
 0x30f   : > { %5263 = vst.msk [vmem:[%s8837_s23 + $0x2c] sm:$0xf] %vm5251_vm8, %v5930_v3  ;;  %v5100_v5 = vmax.f32 %v5068_v24, 0.0  ;;  %v5035_v7 = vmax.f32 %v8730_v22, %v4955_v46  ;;  %v4949_v60 = vpop.permute.xlu0 %4948 }
 0x310   : > { %5260 = vst.msk [vmem:[%s8837_s23 + $0x20] sm:$0xf] %vm5251_vm8, %v5927_v28  ;;  %v5105_v36 = vmax.f32 %v5073_v41, 0.0  ;;  %v5032_v11 = vmax.f32 %v8733_v32, %v4949_v60 }
 0x311   : > { %v5928_v56 = vpack.c.bf16 %v5100_v5, %v5100_v5  ;;  %v5074_v29 = vadd.f32 %v8828_v23, %v5035_v7 }
 0x312   : > { %v5933_v35 = vpack.c.bf16 %v5105_v36, %v5105_v36  ;;  %v5071_v17 = vadd.f32 %v8828_v23, %v5032_v11  ;;  %v4951_v13 = vpop.permute.xlu1 %4950 }
 0x313   : > { %5261 = vst.msk [vmem:[%s8837_s23 + $0x24] sm:$0xf] %vm5251_vm8, %v5928_v56  ;;  %v5106_v1 = vmax.f32 %v5074_v29, 0.0  ;;  %v5033_v22 = vmax.f32 %v8740_v27, %v4951_v13  ;;  %v4961_v50 = vpop.permute.xlu0 %4960 }
 0x314   : > { %5266 = vst.msk [vmem:[%s8837_s23 + $0x38] sm:$0xf] %vm5251_vm8, %v5933_v35  ;;  %v5103_v51 = vmax.f32 %v5071_v17, 0.0  ;;  %v5038_v32 = vmax.f32 %v8743_v52, %v4961_v50 }
 0x315   : > { %v5934_v18 = vpack.c.bf16 %v5106_v1, %v5106_v1  ;;  %v5072_v47 = vadd.f32 %v8828_v23, %v5033_v22 }
 0x316   : > { %v5931_v20 = vpack.c.bf16 %v5103_v51, %v5103_v51  ;;  %v5077_v39 = vadd.f32 %v8828_v23, %v5038_v32  ;;  %v4963_v0 = vpop.permute.xlu1 %4962 }
 0x317   : > { %5267 = vst.msk [vmem:[%s8837_s23 + $0x3c] sm:$0xf] %vm5251_vm8, %v5934_v18  ;;  %v5104_v9 = vmax.f32 %v5072_v47, 0.0  ;;  %v5039_v27 = vmax.f32 %v8750_v21, %v4963_v0  ;;  %v4957_v33 = vpop.permute.xlu0 %4956 }
 0x318   : > { %5264 = vst.msk [vmem:[%s8837_s23 + $0x30] sm:$0xf] %vm5251_vm8, %v5931_v20  ;;  %v5109_v44 = vmax.f32 %v5077_v39, 0.0  ;;  %v5036_v52 = vmax.f32 %v8753_v55, %v4957_v33 }
 0x319   : > { %v5932_v15 = vpack.c.bf16 %v5104_v9, %v5104_v9  ;;  %v5078_v53 = vadd.f32 %v8828_v23, %v5039_v27 }
 0x31a   : > { %v5937_v40 = vpack.c.bf16 %v5109_v44, %v5109_v44  ;;  %v5075_v30 = vadd.f32 %v8828_v23, %v5036_v52  ;;  %v4959_v26 = vpop.permute.xlu1 %4958 }
 0x31b   : > { %5265 = vst.msk [vmem:[%s8837_s23 + $0x34] sm:$0xf] %vm5251_vm8, %v5932_v15  ;;  %v5110_v10 = vmax.f32 %v5078_v53, 0.0  ;;  %v5037_v21 = vmax.f32 %v8760_v12, %v4959_v26  ;;  %v4969_v38 = vpop.permute.xlu0 %4968 }
 0x31c   : > { %5270 = vst.msk [vmem:[%s8837_s23 + $0x48] sm:$0xf] %vm5251_vm8, %v5937_v40  ;;  %v5107_v4 = vmax.f32 %v5075_v30, 0.0  ;;  %v5042_v55 = vmax.f32 %v8763_v37, %v4969_v38 }
 0x31d   : > { %v5938_v63 = vpack.c.bf16 %v5110_v10, %v5110_v10  ;;  %v5076_v49 = vadd.f32 %v8828_v23, %v5037_v21 }
 0x31e   : > { %v5935_v42 = vpack.c.bf16 %v5107_v4, %v5107_v4  ;;  %v5081_v16 = vadd.f32 %v8828_v23, %v5042_v55  ;;  %v4971_v25 = vpop.permute.xlu1 %4970 }
 0x31f   : > { %5271 = vst.msk [vmem:[%s8837_s23 + $0x4c] sm:$0xf] %vm5251_vm8, %v5938_v63  ;;  %v5108_v57 = vmax.f32 %v5076_v49, 0.0  ;;  %v5043_v12 = vmax.f32 %v8770_v8, %v4971_v25  ;;  %v4965_v34 = vpop.permute.xlu0 %4964 }
 0x320   : > { %5268 = vst.msk [vmem:[%s8837_s23 + $0x40] sm:$0xf] %vm5251_vm8, %v5935_v42  ;;  %v5113_v54 = vmax.f32 %v5081_v16, 0.0  ;;  %v5040_v37 = vmax.f32 %v8773_v6, %v4965_v34 }
 0x321   : > { %v5936_v48 = vpack.c.bf16 %v5108_v57, %v5108_v57  ;;  %v5082_v58 = vadd.f32 %v8828_v23, %v5043_v12 }
 0x322   : > { %v5941_v3 = vpack.c.bf16 %v5113_v54, %v5113_v54  ;;  %v5079_v24 = vadd.f32 %v8828_v23, %v5040_v37  ;;  %v4967_v28 = vpop.permute.xlu1 %4966 }
 0x323   : > { %5269 = vst.msk [vmem:[%s8837_s23 + $0x44] sm:$0xf] %vm5251_vm8, %v5936_v48  ;;  %v5114_v41 = vmax.f32 %v5082_v58, 0.0  ;;  %v5041_v8 = vmax.f32 %v8780_v14, %v4967_v28  ;;  %v4977_v46 = vpop.permute.xlu0 %4976 }
 0x324   : > { %5274 = vst.msk [vmem:[%s8837_s23 + $0x58] sm:$0xf] %vm5251_vm8, %v5941_v3  ;;  %v5111_v5 = vmax.f32 %v5079_v24, 0.0  ;;  %v5046_v6 = vmax.f32 %v8783_v61, %v4977_v46 }
 0x325   : > { %v5942_v7 = vpack.c.bf16 %v5114_v41, %v5114_v41  ;;  %v5080_v60 = vadd.f32 %v8828_v23, %v5041_v8 }
 0x326   : > { %v5939_v36 = vpack.c.bf16 %v5111_v5, %v5111_v5  ;;  %v5085_v11 = vadd.f32 %v8828_v23, %v5046_v6  ;;  %v4979_v56 = vpop.permute.xlu1 %4978 }
 0x327   : > { %5275 = vst.msk [vmem:[%s8837_s23 + $0x5c] sm:$0xf] %vm5251_vm8, %v5942_v7  ;;  %v5112_v29 = vmax.f32 %v5080_v60, 0.0  ;;  %v5047_v14 = vmax.f32 %v8790_v43, %v4979_v56  ;;  %v4973_v35 = vpop.permute.xlu0 %4972 }
 0x328   : > { %5272 = vst.msk [vmem:[%s8837_s23 + $0x50] sm:$0xf] %vm5251_vm8, %v5939_v36  ;;  %v5117_v17 = vmax.f32 %v5085_v11, 0.0  ;;  %v5044_v61 = vmax.f32 %v8793_v45, %v4973_v35 }
 0x329   : > { %v5940_v13 = vpack.c.bf16 %v5112_v29, %v5112_v29  ;;  %v5086_v1 = vadd.f32 %v8828_v23, %v5047_v14 }
 0x32a   : > { %v5945_v22 = vpack.c.bf16 %v5117_v17, %v5117_v17  ;;  %v5083_v50 = vadd.f32 %v8828_v23, %v5044_v61  ;;  %v4975_v51 = vpop.permute.xlu1 %4974 }
 0x32b   : > { %5273 = vst.msk [vmem:[%s8837_s23 + $0x54] sm:$0xf] %vm5251_vm8, %v5940_v13  ;;  %v5118_v32 = vmax.f32 %v5086_v1, 0.0  ;;  %v5045_v43 = vmax.f32 %v8800_v19, %v4975_v51 }
 0x32c   : > { %5278 = vst.msk [vmem:[%s8837_s23 + $0x68] sm:$0xf] %vm5251_vm8, %v5945_v22  ;;  %v5115_v18 = vmax.f32 %v5083_v50, 0.0 }
 0x32d   : > { %v5946_v47 = vpack.c.bf16 %v5118_v32, %v5118_v32  ;;  %v5084_v45 = vadd.f32 %v8828_v23, %v5045_v43 }
 0x32e   : > { %v5943_v20 = vpack.c.bf16 %v5115_v18, %v5115_v18 }
 0x32f   : > { %5279 = vst.msk [vmem:[%s8837_s23 + $0x6c] sm:$0xf] %vm5251_vm8, %v5946_v47  ;;  %v5116_v39 = vmax.f32 %v5084_v45, 0.0  ;;  %v4981_v0 = vpop.permute.xlu0 %4980 }
 0x330   : > { %5276 = vst.msk [vmem:[%s8837_s23 + $0x60] sm:$0xf] %vm5251_vm8, %v5943_v20  ;;  %v5048_v9 = vmax.f32 %v8805_v2, %v4981_v0 }
 0x331   : > { %v5944_v27 = vpack.c.bf16 %v5116_v39, %v5116_v39  ;;  %v4983_v33 = vpop.permute.xlu1 %4982 }
 0x332   : > { %v5087_v19 = vadd.f32 %v8828_v23, %v5048_v9  ;;  %v5049_v44 = vmax.f32 %v8808_v31, %v4983_v33 }
 0x333   : > { %5277 = vst.msk [vmem:[%s8837_s23 + $0x64] sm:$0xf] %vm5251_vm8, %v5944_v27  ;;  %v4985_v52 = vpop.permute.xlu0 %4984 }
 0x334   : > { %v5119_v15 = vmax.f32 %v5087_v19, 0.0  ;;  %v5088_v53 = vadd.f32 %v8828_v23, %v5049_v44  ;;  %v5050_v40 = vmax.f32 %v8813_v62, %v4985_v52 }
 0x335   : > { %v4987_v30 = vpop.permute.xlu1 %4986 }
 0x336   : > { %v5947_v26 = vpack.c.bf16 %v5119_v15, %v5119_v15  ;;  %v5120_v2 = vmax.f32 %v5088_v53, 0.0  ;;  %v5089_v10 = vadd.f32 %v8828_v23, %v5050_v40  ;;  %v5051_v21 = vmax.f32 %v8818_v59, %v4987_v30 }
 0x338   : > { %5280 = vst.msk [vmem:[%s8837_s23 + $0x70] sm:$0xf] %vm5251_vm8, %v5947_v26  ;;  %v5948_v31 = vpack.c.bf16 %v5120_v2, %v5120_v2  ;;  %v5121_v38 = vmax.f32 %v5089_v10, 0.0  ;;  %v5090_v4 = vadd.f32 %v8828_v23, %v5051_v21 }
 0x33a   : > { %5281 = vst.msk [vmem:[%s8837_s23 + $0x74] sm:$0xf] %vm5251_vm8, %v5948_v31  ;;  %v5949_v55 = vpack.c.bf16 %v5121_v38, %v5121_v38  ;;  %v5122_v63 = vmax.f32 %v5090_v4, 0.0 }
 0x33c   : > { %5282 = vst.msk [vmem:[%s8837_s23 + $0x78] sm:$0xf] %vm5251_vm8, %v5949_v55  ;;  %v5950_v62 = vpack.c.bf16 %v5122_v63, %v5122_v63 }
 0x33e   : > { %5283 = vst.msk [vmem:[%s8837_s23 + $0x7c] sm:$0xf] %vm5251_vm8, %v5950_v62 }
 0x33f PF: > { %s13_s12 = sadd.s32 1, %s6800_s12  }
 0x340   : > { %p10_p5 = scmp.ge.s32.totalorder %s13_s12, 4  }
 0x342   :  { %12 = sbr.rel (!%p10_p5) target bundleno = 1 (0x1), region = 72 }

// kernel: fashion_simple_net.5
= control target key start
LH: loop header
LB: loop body
LE: loop exit
PB: predicated region body
PF: predicated region fallthrough
CT: control target
= control target key end

     0   :  { %s3421_s18 = smov 0   ;;  %s4093_s0 = inlined_call_operand.vmem [shape: bf16[16,3136], index: 0, kind: input, shape index: {}]   ;;  %s4094_s1 = inlined_call_operand.vmem [shape: bf16[3136,128], index: 1, kind: input, shape index: {}]   ;;  %s4095_s2 = inlined_call_operand.vmem [shape: f32[1,128], index: 2, kind: input, shape index: {}]   ;;  %s4096_s3 = inlined_call_operand.vmem [shape: bf16[128,128], index: 3, kind: input, shape index: {}]   ;;  %s4097_s4 = inlined_call_operand.vmem [shape: f32[1,128], index: 4, kind: input, shape index: {}]   ;;  %s4098_s5 = inlined_call_operand.vmem [shape: f32[16,128], index: 5, kind: output, shape index: {}]  }
   0x1 LB: > { %s2590_s19 = sadd.s32 4294967295, %s3387_s18   ;;  %p2594_p0 = scmp.ge.s32.totalorder %s3387_s18, 1  ;;  %s3387_s18 = sphi %s3421_s18, %s15_s18  }
   0x2   : > { %p187_p1 = scmp.lt.s32.totalorder %s3387_s18, 3 }
   0x4   : > { %p188_p2 = pnand %p2594_p0, %p187_p1 }
   0x5   : > { %v3152_v0 = vld [vmem:[%s4094_s1 + $0x40] sm:$0xff] (!%p188_p2)   ;;  %v3156_v4 = vld [vmem:[%s4094_s1 + $0x48] sm:$0xff] (!%p188_p2)   ;;  %v3160_v8 = vld [vmem:[%s4094_s1 + $0x50] sm:$0xff] (!%p188_p2)   ;;  %p214_p3 = scmp.lt.s32.totalorder (!%p188_p2), %s2590_s19, 1  ;;  %vm3390_vm0 = vmmov (!%p188_p2), 0   ;;  %vm1899_vm1 = vcmask (!%p188_p2), 523264  }
   0x6   : > { %191 = sbr.rel (%p188_p2) target bundleno = 647 (0x287), region = 40  ;;  %v3153_v1 = vld [vmem:[%s4094_s1] sm:$0xff] (!%p188_p2)   ;;  %2831 = vmatprep.subr.bf16.mxu0 (!%p188_p2), %v3152_v0  ;;  %v3157_v5 = vld [vmem:[%s4094_s1 + $0x8] sm:$0xff] (!%p188_p2)   ;;  %v3161_v9 = vld [vmem:[%s4094_s1 + $0x10] sm:$0xff] (!%p188_p2)  }
   0x7   : > { %v3154_v2 = vld [vmem:[%s4094_s1 + $0xc0] sm:$0xff] (!%p188_p2)   ;;  %2832 = vmatpush3.bf16.msra.mxu0 (!%p188_p2), %v3153_v1  ;;  %v3158_v6 = vld [vmem:[%s4094_s1 + $0xc8] sm:$0xff] (!%p188_p2)   ;;  %v3162_v10 = vld [vmem:[%s4094_s1 + $0xd0] sm:$0xff] (!%p188_p2)  }
   0x8   : > { %v3155_v3 = vld [vmem:[%s4094_s1 + $0x80] sm:$0xff] (!%p188_p2)   ;;  %2853 = vmatprep.subr.bf16.mxu1 (!%p188_p2), %v3154_v2  ;;  %2833 = vmatprep.subr.bf16.mxu0 (!%p188_p2), %v3156_v4  ;;  %v3159_v7 = vld [vmem:[%s4094_s1 + $0x88] sm:$0xff] (!%p188_p2)   ;;  %v3163_v11 = vld [vmem:[%s4094_s1 + $0x90] sm:$0xff] (!%p188_p2)  }
   0x9   : > { %2854 = vmatpush3.bf16.msra.mxu1 (!%p188_p2), %v3155_v3  ;;  %v3164_v12 = vld [vmem:[%s4094_s1 + $0x58] sm:$0xff] (!%p188_p2)   ;;  %v3168_v16 = vld [vmem:[%s4094_s1 + $0x60] sm:$0xff] (!%p188_p2)   ;;  %v3172_v20 = vld [vmem:[%s4094_s1 + $0x68] sm:$0xff] (!%p188_p2)  }
   0xa   : > { %2855 = vmatprep.subr.bf16.mxu1 (!%p188_p2), %v3158_v6  ;;  %v3165_v13 = vld [vmem:[%s4094_s1 + $0x18] sm:$0xff] (!%p188_p2)   ;;  %v3169_v17 = vld [vmem:[%s4094_s1 + $0x20] sm:$0xff] (!%p188_p2)   ;;  %v3173_v21 = vld [vmem:[%s4094_s1 + $0x28] sm:$0xff] (!%p188_p2)  }
   0xb   : > { %2834 = vmatpush3.bf16.msra.mxu0 (!%p188_p2), %v3157_v5  ;;  %v3166_v14 = vld [vmem:[%s4094_s1 + $0xd8] sm:$0xff] (!%p188_p2)   ;;  %v3170_v18 = vld [vmem:[%s4094_s1 + $0xe0] sm:$0xff] (!%p188_p2)   ;;  %v3174_v22 = vld [vmem:[%s4094_s1 + $0xe8] sm:$0xff] (!%p188_p2)  }
   0xc   : > { %2835 = vmatprep.subr.bf16.mxu0 (!%p188_p2), %v3160_v8  ;;  %v3167_v15 = vld [vmem:[%s4094_s1 + $0x98] sm:$0xff] (!%p188_p2)   ;;  %v3171_v19 = vld [vmem:[%s4094_s1 + $0xa0] sm:$0xff] (!%p188_p2)   ;;  %v3175_v23 = vld [vmem:[%s4094_s1 + $0xa8] sm:$0xff] (!%p188_p2)  }
   0xd   : > { %2856 = vmatpush3.bf16.msra.mxu1 %v3159_v7  ;;  %s4100_s19 = smov (!%p214_p3, %s2590_s19), 1  ;;  %v3176_v24 = vld [vmem:[%s4094_s1 + $0x70] sm:$0xff]   ;;  %v3180_v28 = vld [vmem:[%s4094_s1 + $0x78] sm:$0xff]   ;;  %v3186_v35 = vld [vmem:[%s4094_s1 + $0x140] sm:$0xff]  }
   0xe   : > { %2857 = vmatprep.subr.bf16.mxu1 %v3162_v10  ;;  %s3141_s24 = smul.u32 100, %s4100_s19  ;;  %v3177_v25 = vld [vmem:[%s4094_s1 + $0x30] sm:$0xff]   ;;  %v3181_v29 = vld [vmem:[%s4094_s1 + $0x38] sm:$0xff]   ;;  %v3189_v39 = vld [vmem:[%s4094_s1 + $0x100] sm:$0xff]   ;;  %s2596_s9 = sshll.u32 %s4100_s19, 3 }
   0xf   : > { %2836 = vmatpush3.bf16.msra.mxu0 %v3161_v9  ;;  %v3178_v26 = vld [vmem:[%s4094_s1 + $0xf0] sm:$0xff]   ;;  %v3182_v30 = vld [vmem:[%s4094_s1 + $0xf8] sm:$0xff]   ;;  %v3190_v40 = vld [vmem:[%s4094_s1 + $0x1c0] sm:$0xff]   ;;  %s222_s15 = scalar_lea.vmem %s4098_s5, %s2596_s9 }
  0x10   : > { %2837 = vmatprep.subr.bf16.mxu0 %v3164_v12  ;;  %v3179_v27 = vld [vmem:[%s4094_s1 + $0xb0] sm:$0xff]   ;;  %s3526_s10 = scalar_lea.vmem %s4093_s0, %s3141_s24  ;;  %v3185_v34 = vld [vmem:[%s4094_s1 + $0xb8] sm:$0xff]   ;;  %v3191_v41 = vld [vmem:[%s4094_s1 + $0x180] sm:$0xff]  }
  0x11   : > { %2858 = vmatpush3.bf16.msra.mxu1 %v3163_v11  ;;  %v224_v31 = vld [vmem:[%s3526_s10] sm:$0xff]  ;;  %v225_v36 = vld [vmem:[%s3526_s10 + $0x8] sm:$0xff]  ;;  %v3196_v46 = vld [vmem:[%s4094_s1 + $0x150] sm:$0xff]  }
  0x12   : > { %2859 = vmatprep.subr.bf16.mxu1 %v3166_v14  ;;  %v2598_v32 = vcombine.low %v224_v31, %v224_v31  ;;  %v2599_v33 = vcombine.high %v224_v31, %v224_v31  ;;  %v2600_v37 = vcombine.low %v225_v36, %v225_v36  ;;  %v2601_v38 = vcombine.high %v225_v36, %v225_v36  ;;  %v3192_v42 = vld [vmem:[%s4094_s1 + $0x148] sm:$0xff]   ;;  %v3197_v47 = vld [vmem:[%s4094_s1 + $0x110] sm:$0xff]   ;;  %v3200_v50 = vld [vmem:[%s4094_s1 + $0x158] sm:$0xff]  }
  0x13   : > { %2838 = vmatpush3.bf16.msra.mxu0 %v3165_v13  ;;  %v3193_v43 = vld [vmem:[%s4094_s1 + $0x108] sm:$0xff]   ;;  %v3198_v48 = vld [vmem:[%s4094_s1 + $0x1d0] sm:$0xff]   ;;  %v3201_v51 = vld [vmem:[%s4094_s1 + $0x118] sm:$0xff]  }
  0x14   : > { %2839 = vmatprep.subr.bf16.mxu0 %v3168_v16  ;;  %1935 = vmatprep.mubr.bf16.mxu0 %v2599_v33  ;;  %v3194_v44 = vld [vmem:[%s4094_s1 + $0x1c8] sm:$0xff]   ;;  %v3199_v49 = vld [vmem:[%s4094_s1 + $0x190] sm:$0xff]   ;;  %v3202_v52 = vld [vmem:[%s4094_s1 + $0x1d8] sm:$0xff]  }
  0x15   : > { %2860 = vmatpush3.bf16.msra.mxu1 %v3167_v15  ;;  %1975 = vmatprep.mubr.bf16.mxu1 %v2601_v38  ;;  %v3195_v45 = vld [vmem:[%s4094_s1 + $0x188] sm:$0xff]   ;;  %v3203_v53 = vld [vmem:[%s4094_s1 + $0x198] sm:$0xff]   ;;  %v3204_v54 = vld [vmem:[%s4094_s1 + $0x160] sm:$0xff]  }
  0x16   : > { %2861 = vmatprep.subr.bf16.mxu1 %v3170_v18  ;;  %v3205_v55 = vld [vmem:[%s4094_s1 + $0x120] sm:$0xff]   ;;  %v3208_v58 = vld [vmem:[%s4094_s1 + $0x168] sm:$0xff]   ;;  %v3212_v62 = vld [vmem:[%s4094_s1 + $0x170] sm:$0xff]  }
  0x17   : > { %2840 = vmatpush3.bf16.msra.mxu0 %v3169_v17  ;;  %v3206_v56 = vld [vmem:[%s4094_s1 + $0x1e0] sm:$0xff]   ;;  %v3209_v59 = vld [vmem:[%s4094_s1 + $0x128] sm:$0xff]   ;;  %v3213_v63 = vld [vmem:[%s4094_s1 + $0x130] sm:$0xff]  }
  0x18   : > { %2841 = vmatprep.subr.bf16.mxu0 %v3172_v20  ;;  %v3207_v57 = vld [vmem:[%s4094_s1 + $0x1a0] sm:$0xff]   ;;  %v3210_v60 = vld [vmem:[%s4094_s1 + $0x1e8] sm:$0xff]   ;;  %v3214_v0 = vld [vmem:[%s4094_s1 + $0x1f0] sm:$0xff]  }
  0x19   : > { %2862 = vmatpush3.bf16.msra.mxu1 %v3171_v19  ;;  %v3211_v61 = vld [vmem:[%s4094_s1 + $0x1a8] sm:$0xff]   ;;  %v3215_v1 = vld [vmem:[%s4094_s1 + $0x1b0] sm:$0xff]   ;;  %v3216_v2 = vld [vmem:[%s4094_s1 + $0x178] sm:$0xff]  }
  0x1a   : > { %2863 = vmatprep.subr.bf16.mxu1 %v3174_v22  ;;  %v3217_v3 = vld [vmem:[%s4094_s1 + $0x138] sm:$0xff]   ;;  %v226_v5 = vld [vmem:[%s3526_s10 + $0x10] sm:$0xff]  ;;  %v3222_v9 = vld [vmem:[%s4094_s1 + $0x240] sm:$0xff]  }
  0x1b   : > { %2842 = vmatpush3.bf16.msra.mxu0 %v3173_v21  ;;  %v3218_v4 = vld [vmem:[%s4094_s1 + $0x1f8] sm:$0xff]   ;;  %v2602_v6 = vcombine.low %v226_v5, %v226_v5  ;;  %v2603_v7 = vcombine.high %v226_v5, %v226_v5  ;;  %v3225_v13 = vld [vmem:[%s4094_s1 + $0x200] sm:$0xff]   ;;  %v3228_v16 = vld [vmem:[%s4094_s1 + $0x248] sm:$0xff]  }
  0x1c   : > { %2843 = vmatprep.subr.bf16.mxu0 %v3176_v24  ;;  %v3221_v8 = vld [vmem:[%s4094_s1 + $0x1b8] sm:$0xff]   ;;  %v3226_v14 = vld [vmem:[%s4094_s1 + $0x2c0] sm:$0xff]   ;;  %v3229_v17 = vld [vmem:[%s4094_s1 + $0x208] sm:$0xff]  }
  0x1d   : > { %2864 = vmatpush3.bf16.msra.mxu1 %v3175_v23  ;;  %v227_v10 = vld [vmem:[%s3526_s10 + $0x18] sm:$0xff]  ;;  %v3227_v15 = vld [vmem:[%s4094_s1 + $0x280] sm:$0xff]   ;;  %v3230_v18 = vld [vmem:[%s4094_s1 + $0x2c8] sm:$0xff]  }
  0x1e   : > { %2865 = vmatprep.subr.bf16.mxu1 %v3178_v26  ;;  %v2604_v11 = vcombine.low %v227_v10, %v227_v10  ;;  %v2605_v12 = vcombine.high %v227_v10, %v227_v10  ;;  %v3231_v19 = vld [vmem:[%s4094_s1 + $0x288] sm:$0xff]   ;;  %v3232_v20 = vld [vmem:[%s4094_s1 + $0x250] sm:$0xff]   ;;  %v3236_v24 = vld [vmem:[%s4094_s1 + $0x258] sm:$0xff]  }
  0x1f   : > { %2844 = vmatpush3.bf16.msra.mxu0 %v3177_v25  ;;  %v3233_v21 = vld [vmem:[%s4094_s1 + $0x210] sm:$0xff]   ;;  %v3237_v25 = vld [vmem:[%s4094_s1 + $0x218] sm:$0xff]   ;;  %v3243_v31 = vld [vmem:[%s4094_s1 + $0x2a0] sm:$0xff]  }
  0x20   : > { %2845 = vmatprep.subr.bf16.mxu0 %v3180_v28  ;;  %v3234_v22 = vld [vmem:[%s4094_s1 + $0x2d0] sm:$0xff]   ;;  %v3238_v26 = vld [vmem:[%s4094_s1 + $0x2d8] sm:$0xff]   ;;  %v3240_v28 = vld [vmem:[%s4094_s1 + $0x260] sm:$0xff]  }
  0x21   : > { %2866 = vmatpush3.bf16.msra.mxu1 %v3179_v27  ;;  %v3235_v23 = vld [vmem:[%s4094_s1 + $0x290] sm:$0xff]   ;;  %v3239_v27 = vld [vmem:[%s4094_s1 + $0x298] sm:$0xff]   ;;  %v3245_v33 = vld [vmem:[%s4094_s1 + $0x228] sm:$0xff]  }
  0x22   : > { %2867 = vmatprep.subr.bf16.mxu1 %v3182_v30  ;;  %v3242_v30 = vld [vmem:[%s4094_s1 + $0x2e0] sm:$0xff]   ;;  %v3248_v36 = vld [vmem:[%s4094_s1 + $0x270] sm:$0xff]  }
  0x23   : > { %2846 = vmatpush3.bf16.msra.mxu0 %v3181_v29  ;;  %v3241_v29 = vld [vmem:[%s4094_s1 + $0x220] sm:$0xff]   ;;  %v3250_v38 = vld [vmem:[%s4094_s1 + $0x2f0] sm:$0xff]  }
  0x24   : > { %2875 = vmatprep.subr.bf16.mxu0 %v3186_v35  ;;  %v3247_v35 = vld [vmem:[%s4094_s1 + $0x2a8] sm:$0xff]   ;;  %v3279_v5 = vld [vmem:[%s4094_s1 + $0x3a0] sm:$0xff]   ;;  %v3284_v10 = vld [vmem:[%s4094_s1 + $0x370] sm:$0xff]  }
  0x25   : > { %2868 = vmatpush3.bf16.msra.mxu1 %v3185_v34  ;;  %v3246_v34 = vld [vmem:[%s4094_s1 + $0x2e8] sm:$0xff]  }
  0x26   : > { %1936 = vmatmul.mubr.bf16.vlgmr.msra.gmra.mrb[0].mxu0 %v2598_v32  ;;  %2897 = vmatprep.subr.bf16.mxu1 %v3190_v40  ;;  %v3244_v32 = vld [vmem:[%s4094_s1 + $0x268] sm:$0xff]   ;;  %v3252_v40 = vld [vmem:[%s4094_s1 + $0x278] sm:$0xff]  }
  0x27   : > { %2876 = vmatpush3.bf16.msra.mxu0 %v3189_v39  ;;  %2015 = vmatprep.mubr.bf16.mxu0 %v2603_v7  ;;  %v3251_v39 = vld [vmem:[%s4094_s1 + $0x2b0] sm:$0xff]   ;;  %v3281_v7 = vld [vmem:[%s4094_s1 + $0x328] sm:$0xff]  }
  0x28   : > { %1976 = vmatmul.mubr.bf16.vlgmr.msra.gmra.mrb[0].mxu1 %v2600_v37  ;;  %2877 = vmatprep.subr.bf16.mxu0 %v3192_v42  ;;  %v3249_v37 = vld [vmem:[%s4094_s1 + $0x230] sm:$0xff]   ;;  %v3254_v42 = vld [vmem:[%s4094_s1 + $0x2f8] sm:$0xff]  }
  0x29   : > { %2898 = vmatpush3.bf16.msra.mxu1 %v3191_v41  ;;  %2055 = vmatprep.mubr.bf16.mxu1 %v2605_v12  ;;  %v3253_v41 = vld [vmem:[%s4094_s1 + $0x238] sm:$0xff]   ;;  %v3286_v12 = vld [vmem:[%s4094_s1 + $0x3f0] sm:$0xff]  }
  0x2a   : > { %2899 = vmatprep.subr.bf16.mxu1 %v3194_v44 }
  0x2b   : > { %2878 = vmatpush3.bf16.msra.mxu0 %v3193_v43  ;;  %v228_v43 = vld [vmem:[%s3526_s10 + $0x20] sm:$0xff] }
  0x2c   : > { %2879 = vmatprep.subr.bf16.mxu0 %v3196_v46  ;;  %v2606_v44 = vcombine.low %v228_v43, %v228_v43  ;;  %v3257_v46 = vld [vmem:[%s4094_s1 + $0x2b8] sm:$0xff]  }
  0x2d   : > { %2900 = vmatpush3.bf16.msra.mxu1 %v3195_v45  ;;  %v2607_v45 = vcombine.high %v228_v43, %v228_v43  ;;  %v3315_v43 = vld [vmem:[%s4094_s1 + $0x4a0] sm:$0xff]  }
  0x2e   : > { %2901 = vmatprep.subr.bf16.mxu1 %v3198_v48  ;;  %v229_v48 = vld [vmem:[%s3526_s10 + $0x28] sm:$0xff] }
  0x2f   : > { %2880 = vmatpush3.bf16.msra.mxu0 %v3197_v47  ;;  %v3258_v47 = vld [vmem:[%s4094_s1 + $0x340] sm:$0xff]  }
  0x30   : > { %2881 = vmatprep.subr.bf16.mxu0 %v3200_v50  ;;  %v2609_v50 = vcombine.high %v229_v48, %v229_v48 }
  0x31   : > { %2902 = vmatpush3.bf16.msra.mxu1 %v3199_v49  ;;  %v2608_v49 = vcombine.low %v229_v48, %v229_v48  ;;  %v3320_v48 = vld [vmem:[%s4094_s1 + $0x470] sm:$0xff]  }
  0x32   : > { %2903 = vmatprep.subr.bf16.mxu1 %v3202_v52  ;;  %v3262_v52 = vld [vmem:[%s4094_s1 + $0x3c0] sm:$0xff]  }
  0x33   : > { %2882 = vmatpush3.bf16.msra.mxu0 %v3201_v51  ;;  %v3261_v51 = vld [vmem:[%s4094_s1 + $0x300] sm:$0xff]  }
  0x34   : > { %2883 = vmatprep.subr.bf16.mxu0 %v3204_v54  ;;  %v3264_v54 = vld [vmem:[%s4094_s1 + $0x348] sm:$0xff]  }
  0x35   : > { %2904 = vmatpush3.bf16.msra.mxu1 %v3203_v53  ;;  %v3263_v53 = vld [vmem:[%s4094_s1 + $0x380] sm:$0xff]  }
  0x36   : > { %2905 = vmatprep.subr.bf16.mxu1 %v3206_v56  ;;  %v3266_v56 = vld [vmem:[%s4094_s1 + $0x3c8] sm:$0xff]  }
  0x37   : > { %2884 = vmatpush3.bf16.msra.mxu0 %v3205_v55  ;;  %v3265_v55 = vld [vmem:[%s4094_s1 + $0x308] sm:$0xff]  }
  0x38   : > { %2885 = vmatprep.subr.bf16.mxu0 %v3208_v58  ;;  %v3268_v58 = vld [vmem:[%s4094_s1 + $0x350] sm:$0xff]  }
  0x39   : > { %2906 = vmatpush3.bf16.msra.mxu1 %v3207_v57  ;;  %v3267_v57 = vld [vmem:[%s4094_s1 + $0x388] sm:$0xff]  }
  0x3a   : > { %2907 = vmatprep.subr.bf16.mxu1 %v3210_v60  ;;  %v3270_v60 = vld [vmem:[%s4094_s1 + $0x3d0] sm:$0xff]  }
  0x3b   : > { %2886 = vmatpush3.bf16.msra.mxu0 %v3209_v59  ;;  %v3269_v59 = vld [vmem:[%s4094_s1 + $0x310] sm:$0xff]  }
  0x3c   : > { %2887 = vmatprep.subr.bf16.mxu0 %v3212_v62  ;;  %v3272_v62 = vld [vmem:[%s4094_s1 + $0x358] sm:$0xff]  }
  0x3d   : > { %2908 = vmatpush3.bf16.msra.mxu1 %v3211_v61  ;;  %v3271_v61 = vld [vmem:[%s4094_s1 + $0x390] sm:$0xff]  }
  0x3e   : > { %2909 = vmatprep.subr.bf16.mxu1 %v3214_v0  ;;  %v3274_v0 = vld [vmem:[%s4094_s1 + $0x3d8] sm:$0xff]  }
  0x3f   : > { %2888 = vmatpush3.bf16.msra.mxu0 %v3213_v63  ;;  %v3273_v63 = vld [vmem:[%s4094_s1 + $0x318] sm:$0xff]  }
  0x40   : > { %2889 = vmatprep.subr.bf16.mxu0 %v3216_v2  ;;  %v3276_v2 = vld [vmem:[%s4094_s1 + $0x360] sm:$0xff]  }
  0x41   : > { %2910 = vmatpush3.bf16.msra.mxu1 %v3215_v1  ;;  %v3275_v1 = vld [vmem:[%s4094_s1 + $0x398] sm:$0xff]  }
  0x42   : > { %2911 = vmatprep.subr.bf16.mxu1 %v3218_v4  ;;  %v3278_v4 = vld [vmem:[%s4094_s1 + $0x3e0] sm:$0xff]  }
  0x43   : > { %2890 = vmatpush3.bf16.msra.mxu0 %v3217_v3  ;;  %v3277_v3 = vld [vmem:[%s4094_s1 + $0x320] sm:$0xff]  }
  0x44   : > { %2919 = vmatprep.subr.bf16.mxu0 %v3222_v9  ;;  %v3283_v9 = vld [vmem:[%s4094_s1 + $0x3a8] sm:$0xff]  }
  0x45   : > { %2912 = vmatpush3.bf16.msra.mxu1 %v3221_v8  ;;  %v3282_v8 = vld [vmem:[%s4094_s1 + $0x3e8] sm:$0xff]  }
  0x46   : > { %2016 = vmatmul.mubr.bf16.vlgmr.msra.gmra.mrb[4].mxu0 %v2602_v6  ;;  %2941 = vmatprep.subr.bf16.mxu1 %v3226_v14  ;;  %v3280_v6 = vld [vmem:[%s4094_s1 + $0x368] sm:$0xff]   ;;  %v3288_v14 = vld [vmem:[%s4094_s1 + $0x378] sm:$0xff]  }
  0x47   : > { %2920 = vmatpush3.bf16.msra.mxu0 %v3225_v13  ;;  %2095 = vmatprep.mubr.bf16.mxu0 %v2607_v45  ;;  %v3287_v13 = vld [vmem:[%s4094_s1 + $0x3b0] sm:$0xff]   ;;  %v3317_v45 = vld [vmem:[%s4094_s1 + $0x428] sm:$0xff]  }
  0x48   : > { %2056 = vmatmul.mubr.bf16.vlgmr.msra.gmra.mrb[4].mxu1 %v2604_v11  ;;  %2921 = vmatprep.subr.bf16.mxu0 %v3228_v16  ;;  %v3285_v11 = vld [vmem:[%s4094_s1 + $0x330] sm:$0xff]   ;;  %v3290_v16 = vld [vmem:[%s4094_s1 + $0x3f8] sm:$0xff]  }
  0x49   : > { %2942 = vmatpush3.bf16.msra.mxu1 %v3227_v15  ;;  %2135 = vmatprep.mubr.bf16.mxu1 %v2609_v50  ;;  %v3289_v15 = vld [vmem:[%s4094_s1 + $0x338] sm:$0xff]   ;;  %v3322_v50 = vld [vmem:[%s4094_s1 + $0x4f0] sm:$0xff]  }
  0x4a   : > { %2943 = vmatprep.subr.bf16.mxu1 %v3230_v18 }
  0x4b   : > { %2922 = vmatpush3.bf16.msra.mxu0 %v3229_v17  ;;  %v230_v17 = vld [vmem:[%s3526_s10 + $0x30] sm:$0xff] }
  0x4c   : > { %2923 = vmatprep.subr.bf16.mxu0 %v3232_v20  ;;  %v2610_v18 = vcombine.low %v230_v17, %v230_v17  ;;  %v3293_v20 = vld [vmem:[%s4094_s1 + $0x3b8] sm:$0xff]  }
  0x4d   : > { %2944 = vmatpush3.bf16.msra.mxu1 %v3231_v19  ;;  %v2611_v19 = vcombine.high %v230_v17, %v230_v17  ;;  %v3351_v17 = vld [vmem:[%s4094_s1 + $0x5a0] sm:$0xff]  }
  0x4e   : > { %2945 = vmatprep.subr.bf16.mxu1 %v3234_v22  ;;  %v231_v22 = vld [vmem:[%s3526_s10 + $0x38] sm:$0xff] }
  0x4f   : > { %2924 = vmatpush3.bf16.msra.mxu0 %v3233_v21  ;;  %v3294_v21 = vld [vmem:[%s4094_s1 + $0x440] sm:$0xff]  }
  0x50   : > { %2925 = vmatprep.subr.bf16.mxu0 %v3236_v24  ;;  %v2613_v24 = vcombine.high %v231_v22, %v231_v22 }
  0x51   : > { %2946 = vmatpush3.bf16.msra.mxu1 %v3235_v23  ;;  %v2612_v23 = vcombine.low %v231_v22, %v231_v22  ;;  %v3356_v22 = vld [vmem:[%s4094_s1 + $0x570] sm:$0xff]  }
  0x52   : > { %2947 = vmatprep.subr.bf16.mxu1 %v3238_v26  ;;  %v3298_v26 = vld [vmem:[%s4094_s1 + $0x4c0] sm:$0xff]  }
  0x53   : > { %2926 = vmatpush3.bf16.msra.mxu0 %v3237_v25  ;;  %v3297_v25 = vld [vmem:[%s4094_s1 + $0x400] sm:$0xff]  }
  0x54   : > { %2927 = vmatprep.subr.bf16.mxu0 %v3240_v28  ;;  %v3300_v28 = vld [vmem:[%s4094_s1 + $0x448] sm:$0xff]  }
  0x55   : > { %2948 = vmatpush3.bf16.msra.mxu1 %v3239_v27  ;;  %v3299_v27 = vld [vmem:[%s4094_s1 + $0x480] sm:$0xff]  }
  0x56   : > { %2949 = vmatprep.subr.bf16.mxu1 %v3242_v30  ;;  %v3302_v30 = vld [vmem:[%s4094_s1 + $0x4c8] sm:$0xff]  }
  0x57   : > { %2928 = vmatpush3.bf16.msra.mxu0 %v3241_v29  ;;  %v3301_v29 = vld [vmem:[%s4094_s1 + $0x408] sm:$0xff]  }
  0x58   : > { %2929 = vmatprep.subr.bf16.mxu0 %v3244_v32  ;;  %v3304_v32 = vld [vmem:[%s4094_s1 + $0x450] sm:$0xff]  }
  0x59   : > { %2950 = vmatpush3.bf16.msra.mxu1 %v3243_v31  ;;  %v3303_v31 = vld [vmem:[%s4094_s1 + $0x488] sm:$0xff]  }
  0x5a   : > { %2951 = vmatprep.subr.bf16.mxu1 %v3246_v34  ;;  %v3306_v34 = vld [vmem:[%s4094_s1 + $0x4d0] sm:$0xff]  }
  0x5b   : > { %2930 = vmatpush3.bf16.msra.mxu0 %v3245_v33  ;;  %v3305_v33 = vld [vmem:[%s4094_s1 + $0x410] sm:$0xff]  }
  0x5c   : > { %2931 = vmatprep.subr.bf16.mxu0 %v3248_v36  ;;  %v3308_v36 = vld [vmem:[%s4094_s1 + $0x458] sm:$0xff]  }
  0x5d   : > { %2952 = vmatpush3.bf16.msra.mxu1 %v3247_v35  ;;  %v3307_v35 = vld [vmem:[%s4094_s1 + $0x490] sm:$0xff]  }
  0x5e   : > { %2953 = vmatprep.subr.bf16.mxu1 %v3250_v38  ;;  %v3310_v38 = vld [vmem:[%s4094_s1 + $0x4d8] sm:$0xff]  }
  0x5f   : > { %2932 = vmatpush3.bf16.msra.mxu0 %v3249_v37  ;;  %v3309_v37 = vld [vmem:[%s4094_s1 + $0x418] sm:$0xff]  }
  0x60   : > { %2933 = vmatprep.subr.bf16.mxu0 %v3252_v40  ;;  %v3312_v40 = vld [vmem:[%s4094_s1 + $0x460] sm:$0xff]  }
  0x61   : > { %2954 = vmatpush3.bf16.msra.mxu1 %v3251_v39  ;;  %v3311_v39 = vld [vmem:[%s4094_s1 + $0x498] sm:$0xff]  }
  0x62   : > { %2955 = vmatprep.subr.bf16.mxu1 %v3254_v42  ;;  %v3314_v42 = vld [vmem:[%s4094_s1 + $0x4e0] sm:$0xff]  }
  0x63   : > { %2934 = vmatpush3.bf16.msra.mxu0 %v3253_v41  ;;  %v3313_v41 = vld [vmem:[%s4094_s1 + $0x420] sm:$0xff]  }
  0x64   : > { %2963 = vmatprep.subr.bf16.mxu0 %v3258_v47  ;;  %v3319_v47 = vld [vmem:[%s4094_s1 + $0x4a8] sm:$0xff]  }
  0x65   : > { %2956 = vmatpush3.bf16.msra.mxu1 %v3257_v46  ;;  %v3318_v46 = vld [vmem:[%s4094_s1 + $0x4e8] sm:$0xff]  }
  0x66   : > { %2096 = vmatmul.mubr.bf16.vlgmr.msra.gmra.mrb[8].mxu0 %v2606_v44  ;;  %2985 = vmatprep.subr.bf16.mxu1 %v3262_v52  ;;  %v3316_v44 = vld [vmem:[%s4094_s1 + $0x468] sm:$0xff]   ;;  %v3324_v52 = vld [vmem:[%s4094_s1 + $0x478] sm:$0xff]  }
  0x67   : > { %2964 = vmatpush3.bf16.msra.mxu0 %v3261_v51  ;;  %2175 = vmatprep.mubr.bf16.mxu0 %v2611_v19  ;;  %v3323_v51 = vld [vmem:[%s4094_s1 + $0x4b0] sm:$0xff]   ;;  %v3353_v19 = vld [vmem:[%s4094_s1 + $0x528] sm:$0xff]  }
  0x68   : > { %2136 = vmatmul.mubr.bf16.vlgmr.msra.gmra.mrb[8].mxu1 %v2608_v49  ;;  %2965 = vmatprep.subr.bf16.mxu0 %v3264_v54  ;;  %v3321_v49 = vld [vmem:[%s4094_s1 + $0x430] sm:$0xff]   ;;  %v3326_v54 = vld [vmem:[%s4094_s1 + $0x4f8] sm:$0xff]  }
  0x69   : > { %2986 = vmatpush3.bf16.msra.mxu1 %v3263_v53  ;;  %2215 = vmatprep.mubr.bf16.mxu1 %v2613_v24  ;;  %v3325_v53 = vld [vmem:[%s4094_s1 + $0x438] sm:$0xff]   ;;  %v3358_v24 = vld [vmem:[%s4094_s1 + $0x5f0] sm:$0xff]  }
  0x6a   : > { %2987 = vmatprep.subr.bf16.mxu1 %v3266_v56 }
  0x6b   : > { %2966 = vmatpush3.bf16.msra.mxu0 %v3265_v55  ;;  %v232_v55 = vld [vmem:[%s3526_s10 + $0x40] sm:$0xff] }
  0x6c   : > { %2967 = vmatprep.subr.bf16.mxu0 %v3268_v58  ;;  %v2614_v56 = vcombine.low %v232_v55, %v232_v55  ;;  %v3329_v58 = vld [vmem:[%s4094_s1 + $0x4b8] sm:$0xff]  }
  0x6d   : > { %2988 = vmatpush3.bf16.msra.mxu1 %v3267_v57  ;;  %v2615_v57 = vcombine.high %v232_v55, %v232_v55  ;;  %v3373_v55 = vld [vmem:[%s4096_s3] sm:$0xff]  }
  0x6e   : > { %2989 = vmatprep.subr.bf16.mxu1 %v3270_v60  ;;  %v233_v60 = vld [vmem:[%s3526_s10 + $0x48] sm:$0xff] }
  0x6f   : > { %2968 = vmatpush3.bf16.msra.mxu0 %v3269_v59  ;;  %v3330_v59 = vld [vmem:[%s4094_s1 + $0x540] sm:$0xff]  }
  0x70   : > { %2969 = vmatprep.subr.bf16.mxu0 %v3272_v62  ;;  %v2617_v62 = vcombine.high %v233_v60, %v233_v60 }
  0x71   : > { %2990 = vmatpush3.bf16.msra.mxu1 %v3271_v61  ;;  %v2616_v61 = vcombine.low %v233_v60, %v233_v60 }
  0x72   : > { %2991 = vmatprep.subr.bf16.mxu1 %v3274_v0  ;;  %v3334_v0 = vld [vmem:[%s4094_s1 + $0x5c0] sm:$0xff]  }
  0x73   : > { %2970 = vmatpush3.bf16.msra.mxu0 %v3273_v63  ;;  %v3333_v63 = vld [vmem:[%s4094_s1 + $0x500] sm:$0xff]  }
  0x74   : > { %2971 = vmatprep.subr.bf16.mxu0 %v3276_v2  ;;  %v3336_v2 = vld [vmem:[%s4094_s1 + $0x548] sm:$0xff]  }
  0x75   : > { %2992 = vmatpush3.bf16.msra.mxu1 %v3275_v1  ;;  %v3335_v1 = vld [vmem:[%s4094_s1 + $0x580] sm:$0xff]  }
  0x76   : > { %2993 = vmatprep.subr.bf16.mxu1 %v3278_v4  ;;  %v3338_v4 = vld [vmem:[%s4094_s1 + $0x5c8] sm:$0xff]  }
  0x77   : > { %2972 = vmatpush3.bf16.msra.mxu0 %v3277_v3  ;;  %v3337_v3 = vld [vmem:[%s4094_s1 + $0x508] sm:$0xff]  }
  0x78   : > { %2973 = vmatprep.subr.bf16.mxu0 %v3280_v6  ;;  %v3340_v6 = vld [vmem:[%s4094_s1 + $0x550] sm:$0xff]  }
  0x79   : > { %2994 = vmatpush3.bf16.msra.mxu1 %v3279_v5  ;;  %v3339_v5 = vld [vmem:[%s4094_s1 + $0x588] sm:$0xff]  }
  0x7a   : > { %2995 = vmatprep.subr.bf16.mxu1 %v3282_v8  ;;  %v3342_v8 = vld [vmem:[%s4094_s1 + $0x5d0] sm:$0xff]  }
  0x7b   : > { %2974 = vmatpush3.bf16.msra.mxu0 %v3281_v7  ;;  %v3341_v7 = vld [vmem:[%s4094_s1 + $0x510] sm:$0xff]  }
  0x7c   : > { %2975 = vmatprep.subr.bf16.mxu0 %v3284_v10  ;;  %v3344_v10 = vld [vmem:[%s4094_s1 + $0x558] sm:$0xff]  }
  0x7d   : > { %2996 = vmatpush3.bf16.msra.mxu1 %v3283_v9  ;;  %v3343_v9 = vld [vmem:[%s4094_s1 + $0x590] sm:$0xff]  }
  0x7e   : > { %2997 = vmatprep.subr.bf16.mxu1 %v3286_v12  ;;  %v3346_v12 = vld [vmem:[%s4094_s1 + $0x5d8] sm:$0xff]  }
  0x7f   : > { %2976 = vmatpush3.bf16.msra.mxu0 %v3285_v11  ;;  %v3345_v11 = vld [vmem:[%s4094_s1 + $0x518] sm:$0xff]  }
  0x80   : > { %2977 = vmatprep.subr.bf16.mxu0 %v3288_v14  ;;  %v3348_v14 = vld [vmem:[%s4094_s1 + $0x560] sm:$0xff]  }
  0x81   : > { %2998 = vmatpush3.bf16.msra.mxu1 %v3287_v13  ;;  %v3347_v13 = vld [vmem:[%s4094_s1 + $0x598] sm:$0xff]  }
  0x82   : > { %2999 = vmatprep.subr.bf16.mxu1 %v3290_v16  ;;  %v3350_v16 = vld [vmem:[%s4094_s1 + $0x5e0] sm:$0xff]  }
  0x83   : > { %2978 = vmatpush3.bf16.msra.mxu0 %v3289_v15  ;;  %v3349_v15 = vld [vmem:[%s4094_s1 + $0x520] sm:$0xff]  }
  0x84   : > { %3007 = vmatprep.subr.bf16.mxu0 %v3294_v21  ;;  %v3355_v21 = vld [vmem:[%s4094_s1 + $0x5a8] sm:$0xff]  }
  0x85   : > { %3000 = vmatpush3.bf16.msra.mxu1 %v3293_v20  ;;  %v3354_v20 = vld [vmem:[%s4094_s1 + $0x5e8] sm:$0xff]  }
  0x86   : > { %2176 = vmatmul.mubr.bf16.vlgmr.msra.gmra.mrb[12].mxu0 %v2610_v18  ;;  %3029 = vmatprep.subr.bf16.mxu1 %v3298_v26  ;;  %v3352_v18 = vld [vmem:[%s4094_s1 + $0x568] sm:$0xff]   ;;  %v3360_v26 = vld [vmem:[%s4094_s1 + $0x578] sm:$0xff]  }
  0x87   : > { %3008 = vmatpush3.bf16.msra.mxu0 %v3297_v25  ;;  %2255 = vmatprep.mubr.bf16.mxu0 %v2615_v57  ;;  %v3359_v25 = vld [vmem:[%s4094_s1 + $0x5b0] sm:$0xff]  }
  0x88   : > { %2216 = vmatmul.mubr.bf16.vlgmr.msra.gmra.mrb[12].mxu1 %v2612_v23  ;;  %3009 = vmatprep.subr.bf16.mxu0 %v3300_v28  ;;  %v3357_v23 = vld [vmem:[%s4094_s1 + $0x530] sm:$0xff]   ;;  %v3362_v28 = vld [vmem:[%s4094_s1 + $0x5f8] sm:$0xff]  }
  0x89   : > { %3030 = vmatpush3.bf16.msra.mxu1 %v3299_v27  ;;  %2295 = vmatprep.mubr.bf16.mxu1 %v2617_v62  ;;  %v3361_v27 = vld [vmem:[%s4094_s1 + $0x538] sm:$0xff]  }
  0x8a   : > { %3031 = vmatprep.subr.bf16.mxu1 %v3302_v30 }
  0x8b   : > { %3010 = vmatpush3.bf16.msra.mxu0 %v3301_v29  ;;  %v234_v29 = vld [vmem:[%s3526_s10 + $0x50] sm:$0xff] }
  0x8c   : > { %3011 = vmatprep.subr.bf16.mxu0 %v3304_v32  ;;  %v2618_v30 = vcombine.low %v234_v29, %v234_v29  ;;  %v3365_v32 = vld [vmem:[%s4094_s1 + $0x5b8] sm:$0xff]  }
  0x8d   : > { %3032 = vmatpush3.bf16.msra.mxu1 %v3303_v31  ;;  %v2619_v31 = vcombine.high %v234_v29, %v234_v29 }
  0x8e   : > { %3033 = vmatprep.subr.bf16.mxu1 %v3306_v34  ;;  %v3389_v34 = vmov 0.0  }
  0x8f   : > { %3012 = vmatpush3.bf16.msra.mxu0 %v3305_v33  ;;  %v235_v33 = vld [vmem:[%s3526_s10 + $0x58] sm:$0xff] }
  0x90   : > { %3013 = vmatprep.subr.bf16.mxu0 %v3308_v36  ;;  %v2621_v36 = vcombine.high %v235_v33, %v235_v33 }
  0x91   : > { %3034 = vmatpush3.bf16.msra.mxu1 %v3307_v35  ;;  %v2620_v35 = vcombine.low %v235_v33, %v235_v33 }
  0x92   : > { %3035 = vmatprep.subr.bf16.mxu1 %v3310_v38  ;;  %v3369_v38 = vld [vmem:[%s4094_s1 + $0x608] sm:$0xff]  }
  0x93   : > { %3014 = vmatpush3.bf16.msra.mxu0 %v3309_v37  ;;  %v3368_v37 = vld [vmem:[%s4094_s1 + $0x600] sm:$0xff]  }
  0x94   : > { %3015 = vmatprep.subr.bf16.mxu0 %v3312_v40  ;;  %v3371_v40 = vld [vmem:[%s4094_s1 + $0x618] sm:$0xff]  }
  0x95   : > { %3036 = vmatpush3.bf16.msra.mxu1 %v3311_v39  ;;  %v3370_v39 = vld [vmem:[%s4094_s1 + $0x610] sm:$0xff]  }
  0x96   : > { %3037 = vmatprep.subr.bf16.mxu1 %v3314_v42 }
  0x97   : > { %3016 = vmatpush3.bf16.msra.mxu0 %v3313_v41  ;;  %v3372_v41 = vld [vmem:[%s3526_s10 + $0x60] ss:$0 sps:$4 sm:$0xff]  }
  0x98   : > { %3017 = vmatprep.subr.bf16.mxu0 %v3316_v44 }
  0x99   : > { %3038 = vmatpush3.bf16.msra.mxu1 %v3315_v43  ;;  %v2597_v43 = vld [vmem:[%s4095_s2] ss:$0 sm:$0xff] }
  0x9a   : > { %3039 = vmatprep.subr.bf16.mxu1 %v3318_v46 }
  0x9b   : > { %3018 = vmatpush3.bf16.msra.mxu0 %v3317_v45 }
  0x9c   : > { %3019 = vmatprep.subr.bf16.mxu0 %v3320_v48 }
  0x9d   : > { %3040 = vmatpush3.bf16.msra.mxu1 %v3319_v47 }
  0x9e   : > { %3041 = vmatprep.subr.bf16.mxu1 %v3322_v50 }
  0x9f   : > { %3020 = vmatpush3.bf16.msra.mxu0 %v3321_v49 }
  0xa0   : > { %3021 = vmatprep.subr.bf16.mxu0 %v3324_v52 }
  0xa1   : > { %3042 = vmatpush3.bf16.msra.mxu1 %v3323_v51 }
  0xa2   : > { %3043 = vmatprep.subr.bf16.mxu1 %v3326_v54 }
  0xa3   : > { %3022 = vmatpush3.bf16.msra.mxu0 %v3325_v53 }
  0xa4   : > { %3051 = vmatprep.subr.bf16.mxu0 %v3330_v59  ;;  %v3375_v59 = vld [vmem:[%s4096_s3 + $0x10] sm:$0xff]  }
  0xa5   : > { %3044 = vmatpush3.bf16.msra.mxu1 %v3329_v58 }
  0xa6   : > { %2256 = vmatmul.mubr.bf16.vlgmr.msra.gmra.mrb[16].mxu0 %v2614_v56  ;;  %3073 = vmatprep.subr.bf16.mxu1 %v3334_v0  ;;  %v3374_v56 = vld [vmem:[%s4096_s3 + $0x8] sm:$0xff]  }
  0xa7   : > { %3052 = vmatpush3.bf16.msra.mxu0 %v3333_v63  ;;  %2335 = vmatprep.mubr.bf16.mxu0 %v2619_v31 }
  0xa8   : > { %2296 = vmatmul.mubr.bf16.vlgmr.msra.gmra.mrb[16].mxu1 %v2616_v61  ;;  %3053 = vmatprep.subr.bf16.mxu0 %v3336_v2 }
  0xa9   : > { %3074 = vmatpush3.bf16.msra.mxu1 %v3335_v1  ;;  %2375 = vmatprep.mubr.bf16.mxu1 %v2621_v36 }
  0xaa   : > { %3075 = vmatprep.subr.bf16.mxu1 %v3338_v4  ;;  %v3376_v4 = vld [vmem:[%s4096_s3 + $0x18] sm:$0xff]  }
  0xab   : > { %3054 = vmatpush3.bf16.msra.mxu0 %v3337_v3 }
  0xac   : > { %3055 = vmatprep.subr.bf16.mxu0 %v3340_v6 }
  0xad   : > { %3076 = vmatpush3.bf16.msra.mxu1 %v3339_v5 }
  0xae   : > { %3077 = vmatprep.subr.bf16.mxu1 %v3342_v8  ;;  %v3378_v8 = vld [vmem:[%s4096_s3 + $0x28] sm:$0xff]  }
  0xaf   : > { %3056 = vmatpush3.bf16.msra.mxu0 %v3341_v7  ;;  %v3377_v7 = vld [vmem:[%s4096_s3 + $0x20] sm:$0xff]  }
  0xb0   : > { %3057 = vmatprep.subr.bf16.mxu0 %v3344_v10  ;;  %v3380_v10 = vld [vmem:[%s4096_s3 + $0x38] sm:$0xff]  }
  0xb1   : > { %3078 = vmatpush3.bf16.msra.mxu1 %v3343_v9  ;;  %v3379_v9 = vld [vmem:[%s4096_s3 + $0x30] sm:$0xff]  }
  0xb2   : > { %3079 = vmatprep.subr.bf16.mxu1 %v3346_v12 }
  0xb3   : > { %3058 = vmatpush3.bf16.msra.mxu0 %v3345_v11 }
  0xb4   : > { %3059 = vmatprep.subr.bf16.mxu0 %v3348_v14 }
  0xb5   : > { %3080 = vmatpush3.bf16.msra.mxu1 %v3347_v13 }
  0xb6   : > { %3081 = vmatprep.subr.bf16.mxu1 %v3350_v16 }
  0xb7   : > { %3060 = vmatpush3.bf16.msra.mxu0 %v3349_v15 }
  0xb8   : > { %3061 = vmatprep.subr.bf16.mxu0 %v3352_v18 }
  0xb9   : > { %3082 = vmatpush3.bf16.msra.mxu1 %v3351_v17 }
  0xba   : > { %3083 = vmatprep.subr.bf16.mxu1 %v3354_v20 }
  0xbb   : > { %3062 = vmatpush3.bf16.msra.mxu0 %v3353_v19 }
  0xbc   : > { %3063 = vmatprep.subr.bf16.mxu0 %v3356_v22 }
  0xbd   : > { %3084 = vmatpush3.bf16.msra.mxu1 %v3355_v21 }
  0xbe   : > { %3085 = vmatprep.subr.bf16.mxu1 %v3358_v24 }
  0xbf   : > { %3064 = vmatpush3.bf16.msra.mxu0 %v3357_v23 }
  0xc0   : > { %3065 = vmatprep.subr.bf16.mxu0 %v3360_v26 }
  0xc1   : > { %3086 = vmatpush3.bf16.msra.mxu1 %v3359_v25 }
  0xc2   : > { %3087 = vmatprep.subr.bf16.mxu1 %v3362_v28 }
  0xc3   : > { %3066 = vmatpush3.bf16.msra.mxu0 %v3361_v27 }
  0xc4   : > { %3109 = vmatprep.subr.bf16.mxu0 %v3389_v34 }
  0xc5   : > { %3088 = vmatpush3.bf16.msra.mxu1 %v3365_v32 }
  0xc6   : > { %2336 = vmatmul.mubr.bf16.vlgmr.msra.gmra.mrb[20].mxu0 %v2618_v30  ;;  %3121 = vmatprep.subr.bf16.mxu1 %v3389_v34 }
  0xc7   : > { %3110 = vmatpush3.bf16.msra.mxu0 %v3368_v37  ;;  %3117 = vmatprep.mubr.msk.bf16.mxu0 %vm3390_vm0, %v3389_v34 }
  0xc8   : > { %2376 = vmatmul.mubr.bf16.vlgmr.msra.gmra.mrb[20].mxu1 %v2620_v35  ;;  %3111 = vmatprep.subr.bf16.mxu0 %v3389_v34 }
  0xc9   : > { %3137 = vmatprep.mubr.msk.bf16.mxu1 %vm3390_vm0, %v3389_v34  ;;  %3122 = vmatpush3.bf16.msra.mxu1 %v3373_v55 }
  0xca   : > { %3123 = vmatprep.subr.bf16.mxu1 %v3389_v34 }
  0xcb   : > { %3112 = vmatpush3.bf16.msra.mxu0 %v3369_v38 }
  0xcc   : > { %3113 = vmatprep.subr.bf16.mxu0 %v3389_v34 }
  0xcd   : > { %3124 = vmatpush3.bf16.msra.mxu1 %v3374_v56 }
  0xce   : > { %3125 = vmatprep.subr.bf16.mxu1 %v3389_v34 }
  0xcf   : > { %3114 = vmatpush3.bf16.msra.mxu0 %v3370_v39 }
  0xd0   : > { %3115 = vmatprep.subr.bf16.mxu0 %v3389_v34 }
  0xd1   : > { %3126 = vmatpush3.bf16.msra.mxu1 %v3375_v59 }
  0xd2   : > { %3127 = vmatprep.subr.bf16.mxu1 %v3389_v34 }
  0xd3   : > { %3116 = vmatpush3.bf16.msra.mxu0 %v3371_v40 }
  0xd5   : > { %3128 = vmatpush3.bf16.msra.mxu1 %v3376_v4 }
  0xd6   : > { %3118 = vmatmul.mubr.msk.bf16.vlgmr.msra.gmra.mrb[24].mxu0 %vm1899_vm1, %v3372_v41  ;;  %3129 = vmatprep.subr.bf16.mxu1 %v3389_v34 }
  0xd9   : > { %3130 = vmatpush3.bf16.msra.mxu1 %v3377_v7 }
  0xda   : > { %3131 = vmatprep.subr.bf16.mxu1 %v3389_v34 }
  0xdd   : > { %3132 = vmatpush3.bf16.msra.mxu1 %v3378_v8 }
  0xde   : > { %3133 = vmatprep.subr.bf16.mxu1 %v3389_v34 }
  0xe1   : > { %3134 = vmatpush3.bf16.msra.mxu1 %v3379_v9 }
  0xe2   : > { %3135 = vmatprep.subr.bf16.mxu1 %v3389_v34 }
  0xe5   : > { %3136 = vmatpush3.bf16.msra.mxu1 %v3380_v10 }
  0xf9   : > { %v2847_v42 = vpop.f32.mrb[0].mxu0 }
  0xfa   : > { %v2848_v44 = vpop.f32.mrb[1].mxu0 }
  0xfb   : > { %v2849_v45 = vadd.f32 %v2848_v44, %v2847_v42  ;;  %v2850_v46 = vpop.f32.mrb[2].mxu0  ;;  %v2869_v47 = vpop.f32.mrb[0].mxu1 }
  0xfc   : > { %v2851_v48 = vpop.f32.mrb[3].mxu0  ;;  %v2870_v49 = vpop.f32.mrb[1].mxu1 }
  0xfd   : > { %v1938_v50 = vadd.f32 %v2849_v45, %v2597_v43  ;;  %v2871_v51 = vadd.f32 %v2870_v49, %v2869_v47  ;;  %v2872_v52 = vpop.f32.mrb[2].mxu1 }
  0xfe   : > { %v2873_v53 = vpop.f32.mrb[3].mxu1 }
  0xff   : > { %v1978_v54 = vadd.f32 %v2871_v51, %v1938_v50 }
 0x119   : > { %v2891_v57 = vpop.f32.mrb[4].mxu0 }
 0x11a   : > { %v2892_v58 = vpop.f32.mrb[5].mxu0 }
 0x11b   : > { %v2893_v60 = vadd.f32 %v2892_v58, %v2891_v57  ;;  %v2894_v61 = vpop.f32.mrb[6].mxu0  ;;  %v2913_v62 = vpop.f32.mrb[4].mxu1 }
 0x11c   : > { %v2895_v63 = vpop.f32.mrb[7].mxu0  ;;  %v2914_v1 = vpop.f32.mrb[5].mxu1 }
 0x11d   : > { %v2018_v0 = vadd.f32 %v2893_v60, %v1978_v54  ;;  %v2915_v2 = vadd.f32 %v2914_v1, %v2913_v62  ;;  %v2916_v3 = vpop.f32.mrb[6].mxu1 }
 0x11e   : > { %v2917_v5 = vpop.f32.mrb[7].mxu1 }
 0x11f   : > { %v2058_v6 = vadd.f32 %v2915_v2, %v2018_v0  ;;  %v2820_v2 = vld [vmem:[%s4097_s4] ss:$0 sm:$0xff] }
 0x139   : > { %v2935_v11 = vpop.f32.mrb[8].mxu0 }
 0x13a   : > { %v2936_v12 = vpop.f32.mrb[9].mxu0 }
 0x13b   : > { %v2937_v13 = vadd.f32 %v2936_v12, %v2935_v11  ;;  %v2938_v14 = vpop.f32.mrb[10].mxu0  ;;  %v2957_v15 = vpop.f32.mrb[8].mxu1 }
 0x13c   : > { %v2939_v16 = vpop.f32.mrb[11].mxu0  ;;  %v2958_v17 = vpop.f32.mrb[9].mxu1 }
 0x13d   : > { %v2098_v18 = vadd.f32 %v2937_v13, %v2058_v6  ;;  %v2959_v19 = vadd.f32 %v2958_v17, %v2957_v15  ;;  %v2960_v20 = vpop.f32.mrb[10].mxu1 }
 0x13e   : > { %v2961_v21 = vpop.f32.mrb[11].mxu1 }
 0x13f   : > { %v2138_v22 = vadd.f32 %v2959_v19, %v2098_v18 }
 0x159   : > { %v2979_v23 = vpop.f32.mrb[12].mxu0 }
 0x15a   : > { %v2980_v24 = vpop.f32.mrb[13].mxu0 }
 0x15b   : > { %v2981_v25 = vadd.f32 %v2980_v24, %v2979_v23  ;;  %v2982_v26 = vpop.f32.mrb[14].mxu0  ;;  %v3001_v27 = vpop.f32.mrb[12].mxu1 }
 0x15c   : > { %v2983_v28 = vpop.f32.mrb[15].mxu0  ;;  %v3002_v29 = vpop.f32.mrb[13].mxu1 }
 0x15d   : > { %v2178_v30 = vadd.f32 %v2981_v25, %v2138_v22  ;;  %v3003_v31 = vadd.f32 %v3002_v29, %v3001_v27  ;;  %v3004_v32 = vpop.f32.mrb[14].mxu1 }
 0x15e   : > { %v3005_v33 = vpop.f32.mrb[15].mxu1 }
 0x15f   : > { %v2218_v34 = vadd.f32 %v3003_v31, %v2178_v30 }
 0x179   : > { %v3023_v35 = vpop.f32.mrb[16].mxu0 }
 0x17a   : > { %v3024_v36 = vpop.f32.mrb[17].mxu0 }
 0x17b   : > { %v3025_v37 = vadd.f32 %v3024_v36, %v3023_v35  ;;  %v3026_v38 = vpop.f32.mrb[18].mxu0  ;;  %v3045_v39 = vpop.f32.mrb[16].mxu1 }
 0x17c   : > { %v3027_v40 = vpop.f32.mrb[19].mxu0  ;;  %v3046_v42 = vpop.f32.mrb[17].mxu1 }
 0x17d   : > { %v2258_v41 = vadd.f32 %v3025_v37, %v2218_v34  ;;  %v3047_v43 = vadd.f32 %v3046_v42, %v3045_v39  ;;  %v3048_v44 = vpop.f32.mrb[18].mxu1 }
 0x17e   : > { %v3049_v45 = vpop.f32.mrb[19].mxu1 }
 0x17f   : > { %v2298_v46 = vadd.f32 %v3047_v43, %v2258_v41 }
 0x199   : > { %v3067_v47 = vpop.f32.mrb[20].mxu0 }
 0x19a   : > { %v3068_v48 = vpop.f32.mrb[21].mxu0 }
 0x19b   : > { %v3069_v49 = vadd.f32 %v3068_v48, %v3067_v47  ;;  %v3070_v50 = vpop.f32.mrb[22].mxu0  ;;  %v3089_v51 = vpop.f32.mrb[20].mxu1 }
 0x19c   : > { %v3071_v52 = vpop.f32.mrb[23].mxu0  ;;  %v3090_v53 = vpop.f32.mrb[21].mxu1 }
 0x19d   : > { %v2338_v54 = vadd.f32 %v3069_v49, %v2298_v46  ;;  %v3091_v55 = vadd.f32 %v3090_v53, %v3089_v51  ;;  %v3092_v56 = vpop.f32.mrb[22].mxu1 }
 0x19e   : > { %v3093_v57 = vpop.f32.mrb[23].mxu1 }
 0x19f   : > { %v2378_v58 = vadd.f32 %v3091_v55, %v2338_v54 }
 0x1a9   : > { %v2417_v59 = vpop.f32.mrb[24].mxu0 }
 0x1aa   : > { %v2418_v60 = vadd.f32 %v2417_v59, %v2378_v58  ;;  %v3119_v61 = vpop.f32.mrb[25].mxu0 }
 0x1ab   : > { %v2420_v62 = vpop.f32.mrb[26].mxu0 }
 0x1ac   : > { %v2423_v63 = vmax.f32 %v2418_v60, 0.0  ;;  %v3120_v0 = vpop.f32.mrb[27].mxu0 }
 0x1ae   : > { %v2424_v1 = vpack.c.bf16 %v2423_v63, %v2423_v63 }
 0x1b0   : > { %3138 = vmatmul.mubr.bf16.vlgmr.msra.gmra.mrb[24].mxu1 %v2424_v1 }
 0x283   : > { %v2530_v3 = vpop.f32.mrb[24].mxu1 }
 0x284   : > { %v2531_v4 = vadd.f32 %v2820_v2, %v2530_v3  ;;  %v3139_v5 = vpop.f32.mrb[25].mxu1 }
 0x285   : > { %v2533_v6 = vpop.f32.mrb[26].mxu1 }
 0x286   : > { %2536 = vst [vmem:[%s222_s15] sm:$0xff] %v2531_v4  ;;  %v3140_v7 = vpop.f32.mrb[27].mxu1 }
 0x287 PF: > { %s15_s18 = sadd.s32 1, %s3387_s18  }
 0x288   : > { %p12_p4 = scmp.ge.s32.totalorder %s15_s18, 4  }
 0x28a   :  { %14 = sbr.rel (!%p12_p4) target bundleno = 1 (0x1), region = 70 }

</bundles_post_ra>
